<compile_context>
chip_gen: v7x
topology: tpu7x:2x2x1
jax: 0.10.0
libtpu: 0.0.40
codegen_flags: <defaults>
</compile_context>

<pallas_src>
import functools

import jax
import jax.numpy as jnp
from jax import lax
from jax.experimental import pallas as pl
from jax.experimental.pallas import tpu as pltpu

LANE = 128
SUBLANE = 8
VMEM_LIMIT = 48 * 1024 * 1024  # explicit scoped-VMEM budget; < v7x 64 MiB phys


def _round_up(n, m):
    return ((n + m - 1) // m) * m


def _pick_row_tile(h, wp, max_rows=1024):
    """Largest row-tile TH dividing H with TH*Wp <= max_rows; prefer >= 2 row
    tiles so the (N, R) grid pipelines and splits across TensorCores."""
    divs = [t for t in range(1, h + 1) if h % t == 0 and t * wp <= max_rows]
    if not divs:
        return 1
    if len(divs) > 1 and divs[-1] == h:
        return divs[-2]
    return divs[-1]


def _pick_m_tile(m):
    """M-tile for the VQ kernel: up to 1024 rows, prefer >= 2 tiles."""
    for t in (1024, 512, 256, 128, 64, 32, 16, 8):
        if m % t == 0 and m // t >= 2:
            return t
    for t in (1024, 512, 256, 128, 64, 32, 16, 8):
        if m % t == 0:
            return t
    return m  # tiny/odd M: single full block (block dim == array dim is legal)


# ----------------------------------------------------------------------------
# Fused 3x3 conv (+bias, +ReLU): kw pre-shifted along channels, K = 3*Cp
# ----------------------------------------------------------------------------
def _conv3x3_kernel(x_ref, w_ref, b_ref, o_ref, acc_ref, *, TH, Wp, relu):
    """One (batch n, row-tile r) grid step.

    x_ref : ((H+2)*Wp, 3*Cp) bf16  kw-expanded, spatially padded image,
                                   rows flattened padded-row-major.
    w_ref : (3, 3*Cp, Co)    bf16  kh-major; (kw, cin) fused along K.
    b_ref : (1, Co)          f32
    o_ref : (TH*Wp, Co)      out dtype
    acc_ref: (TH*Wp, Co)     f32 VMEM scratch accumulator.
    """
    r = pl.program_id(1)
    rows = TH * Wp
    base = r * rows
    for kh in range(3):                       # 3 accumulated MXU matmuls
        start = pl.multiple_of(base + kh * Wp, SUBLANE)
        patch = x_ref[pl.ds(start, rows), :]  # sublane-aligned row window
        tap = jnp.dot(patch, w_ref[kh], preferred_element_type=jnp.float32)
        if kh == 0:
            acc_ref[...] = tap
        else:
            acc_ref[...] += tap
    out = acc_ref[...] + b_ref[...]
    if relu:
        out = jnp.maximum(out, 0.0)
    o_ref[...] = out.astype(o_ref.dtype)


def conv3x3(x_nhwc, w3, b_row, *, relu, out_dtype):
    """3x3 'same' conv with fused bias (+ReLU).

    x_nhwc: (N, H, W, Cp) bf16, Cp a multiple of 128.  Returns (N, H, W, Co).
    """
    N, H, W, Cp = x_nhwc.shape
    Co = w3.shape[2]
    Wp = _round_up(W, SUBLANE)

    # spatial halo + right-pad W to a sublane multiple (extra columns are
    # computed on zeros and sliced off below).
    xp = jnp.pad(x_nhwc, ((0, 0), (1, 1), (1, 1 + Wp - W), (0, 0)))
    # wrapper-side W pre-shift: xs[..., w, kw*Cp + c] == xp[..., w + kw, c]
    xs = jnp.concatenate([xp[:, :, 0:Wp, :],
                          xp[:, :, 1:Wp + 1, :],
                          xp[:, :, 2:Wp + 2, :]], axis=-1)
    xs = xs.reshape(N, (H + 2) * Wp, 3 * Cp)

    TH = _pick_row_tile(H, Wp)
    R = H // TH
    kern = functools.partial(_conv3x3_kernel, TH=TH, Wp=Wp, relu=relu)

    flops = 2 * N * H * Wp * 9 * Cp * Co
    bytes_acc = (xs.size * 2 + w3.size * 2 + b_row.size * 4
                 + N * H * Wp * Co * jnp.dtype(out_dtype).itemsize)

    out = pl.pallas_call(
        kern,
        out_shape=jax.ShapeDtypeStruct((N, H * Wp, Co), out_dtype),
        grid=(N, R),
        in_specs=[
            # Full (row-flattened) image resident per batch item; only the
            # output / compute window is row-tiled.
            # TODO(synk): for very large H*W switch to a haloed element-offset
            # BlockSpec or manual DMA so the input is row-tiled in VMEM too.
            pl.BlockSpec((None, (H + 2) * Wp, 3 * Cp), lambda n, r: (n, 0, 0)),
            pl.BlockSpec((3, 3 * Cp, Co), lambda n, r: (0, 0, 0)),   # resident
            pl.BlockSpec((1, Co), lambda n, r: (0, 0)),
        ],
        out_specs=pl.BlockSpec((None, TH * Wp, Co), lambda n, r: (n, r, 0)),
        scratch_shapes=[pltpu.VMEM((TH * Wp, Co), jnp.float32)],
        compiler_params=pltpu.CompilerParams(
            dimension_semantics=("parallel", "parallel"),
            vmem_limit_bytes=VMEM_LIMIT),
        cost_estimate=pl.CostEstimate(flops=int(flops), transcendentals=0,
                                      bytes_accessed=int(bytes_acc)),
    )(xs, w3, b_row)
    return out.reshape(N, H, Wp, Co)[:, :, :W, :]


# ----------------------------------------------------------------------------
# Fused (pre-VQ 1x1 conv) + vector quantizer, tiled over M, fully parallel
# ----------------------------------------------------------------------------
def _vq_kernel(h_ref, pw_ref, pb_ref, ef_ref, eb_ref, esq_ref,
               z_ref, zq_ref, zqb_ref, idx_ref, err_ref, cnt_ref, *, k_real):
    # fused pre-VQ 1x1 conv: z = h @ W + b (bf16 operands, f32 accumulate)
    z = jnp.dot(h_ref[...], pw_ref[...],
                preferred_element_type=jnp.float32) + pb_ref[...]
    z_ref[...] = z

    tm = z.shape[0]
    kp = eb_ref.shape[0]

    # dist(z, e_k) = ||e_k||^2 - 2 z.e_k  (+ const ||z||^2, dropped: argmin
    # unchanged).  ||e||^2 is precomputed in the wrapper; the distance matmul
    # runs with bf16 operands (near-tie argmin may differ from f32 reference).
    ze = lax.dot_general(z.astype(jnp.bfloat16), eb_ref[...],
                         (((1,), (1,)), ((), ())),
                         preferred_element_type=jnp.float32)        # (tm, Kp)
    score = esq_ref[...] - 2.0 * ze
    iota = lax.broadcasted_iota(jnp.int32, (tm, kp), 1)
    score = jnp.where(iota < k_real, score, jnp.float32(1e30))      # mask pads

    s_min = jnp.min(score, axis=1, keepdims=True)
    idx = jnp.min(jnp.where(score == s_min, iota, kp),
                  axis=1, keepdims=True)                            # (tm, 1)
    one_hot = (iota == idx).astype(jnp.float32)                     # (tm, Kp)

    zq = jnp.dot(one_hot, ef_ref[...], preferred_element_type=jnp.float32)
    zq_ref[...] = zq
    zqb_ref[...] = zq.astype(jnp.bfloat16)   # decoder feed, no extra HBM pass
    idx_ref[...] = idx

    # per-tile lane-dense partial sums; reduced in the wrapper (keeps this
    # grid axis "parallel" -> both TensorCores on v7x).
    diff = zq - z
    err_ref[0] = jnp.sum(diff * diff, axis=0, keepdims=True)        # (1, Dp)
    cnt_ref[0] = jnp.sum(one_hot, axis=0, keepdims=True)            # (1, Kp)


def vq_quantize(h_flat, prevq_w, prevq_b, ebook_f32, ebook_bf16, e_sq,
                *, k_real, tm):
    M, hp = h_flat.shape
    dp = prevq_w.shape[1]
    kp = ebook_f32.shape[0]
    grid_m = M // tm
    kern = functools.partial(_vq_kernel, k_real=k_real)
    out_shape = (
        jax.ShapeDtypeStruct((M, dp), jnp.float32),          # z (pre-VQ latent)
        jax.ShapeDtypeStruct((M, dp), jnp.float32),          # quantized (f32)
        jax.ShapeDtypeStruct((M, dp), jnp.bfloat16),         # quantized (bf16)
        jax.ShapeDtypeStruct((M, 1), jnp.int32),             # encoding indices
        jax.ShapeDtypeStruct((grid_m, 1, dp), jnp.float32),  # per-tile sum (zq-z)^2
        jax.ShapeDtypeStruct((grid_m, 1, kp), jnp.float32),  # per-tile code counts
    )
    flops = 2 * M * (hp * dp + 2 * dp * kp)
    bytes_acc = (M * hp * 2 + hp * dp * 2 + dp * 4 + kp * dp * 6 + kp * 4
                 + M * dp * (4 + 4 + 2) + M * 4 + grid_m * (dp + kp) * 4)
    return pl.pallas_call(
        kern,
        out_shape=out_shape,
        grid=(grid_m,),
        in_specs=[
            pl.BlockSpec((tm, hp), lambda i: (i, 0)),
            pl.BlockSpec((hp, dp), lambda i: (0, 0)),   # pre-VQ weight resident
            pl.BlockSpec((1, dp), lambda i: (0, 0)),
            pl.BlockSpec((kp, dp), lambda i: (0, 0)),   # codebook f32 resident
            pl.BlockSpec((kp, dp), lambda i: (0, 0)),   # codebook bf16 resident
            pl.BlockSpec((1, kp), lambda i: (0, 0)),    # hoisted ||e||^2 row
        ],
        out_specs=(
            pl.BlockSpec((tm, dp), lambda i: (i, 0)),
            pl.BlockSpec((tm, dp), lambda i: (i, 0)),
            pl.BlockSpec((tm, dp), lambda i: (i, 0)),
            pl.BlockSpec((tm, 1), lambda i: (i, 0)),
            pl.BlockSpec((1, 1, dp), lambda i: (i, 0, 0)),
            pl.BlockSpec((1, 1, kp), lambda i: (i, 0, 0)),
        ),
        compiler_params=pltpu.CompilerParams(
            dimension_semantics=("parallel",),     # no cross-tile state
            vmem_limit_bytes=VMEM_LIMIT),
        cost_estimate=pl.CostEstimate(flops=int(flops), transcendentals=0,
                                      bytes_accessed=int(bytes_acc)),
    )(h_flat, prevq_w, prevq_b, ebook_f32, ebook_bf16, e_sq)


# ----------------------------------------------------------------------------
# Plain-JAX glue: weight layout / padding, parameter init
# ----------------------------------------------------------------------------
def _conv_w3(w_oihw, cin_p, cout_p):
    """PyTorch (Cout,Cin,3,3) -> (3, 3*Cin_p, Cout_p) bf16; kh leading, the K
    axis fuses (kw, cin) to match the kw-expanded image layout."""
    cout, cin, _, _ = w_oihw.shape
    w = jnp.transpose(w_oihw, (2, 3, 1, 0))                # (kh, kw, cin, cout)
    w = jnp.pad(w, ((0, 0), (0, 0), (0, cin_p - cin), (0, cout_p - cout)))
    return w.reshape(3, 3 * cin_p, cout_p).astype(jnp.bfloat16)


def _bias_row(b, cp):
    return jnp.pad(b, (0, cp - b.shape[0])).reshape(1, cp).astype(jnp.float32)


def init_params(key, cin, hidden, embed_dim, num_embeddings):
    ks = jax.random.split(key, 10)

    def uconv(k, cout, cin_, kh, kw):
        bound = 1.0 / jnp.sqrt(cin_ * kh * kw)
        return jax.random.uniform(k, (cout, cin_, kh, kw), jnp.float32,
                                  -bound, bound)

    def ubias(k, cout, fan_in):
        bound = 1.0 / jnp.sqrt(fan_in)
        return jax.random.uniform(k, (cout,), jnp.float32, -bound, bound)

    return {
        "enc_w": uconv(ks[0], hidden, cin, 3, 3),
        "enc_b": ubias(ks[1], hidden, cin * 9),
        "prevq_w": uconv(ks[2], embed_dim, hidden, 1, 1),
        "prevq_b": ubias(ks[3], embed_dim, hidden),
        "codebook": jax.random.uniform(
            ks[4], (num_embeddings, embed_dim), jnp.float32,
            -1.0 / num_embeddings, 1.0 / num_embeddings),
        "dec1_w": uconv(ks[5], hidden, embed_dim, 3, 3),
        "dec1_b": ubias(ks[6], hidden, embed_dim * 9),
        "dec2_w": uconv(ks[7], cin, hidden, 3, 3),
        "dec2_b": ubias(ks[8], cin, hidden * 9),
    }


# ----------------------------------------------------------------------------
# VQVAE forward
# ----------------------------------------------------------------------------
def vqvae_forward(params, x_nchw, *, beta=0.25):
    N, Cin, H, W = x_nchw.shape
    hidden = params["enc_b"].shape[0]
    K, D = params["codebook"].shape

    Cp, Hidp, Dp, Kp = (_round_up(Cin, LANE), _round_up(hidden, LANE),
                        _round_up(D, LANE), _round_up(K, LANE))
    M = N * H * W

    # NCHW -> NHWC, pad channels to 128 lanes, cast to bf16 for the MXU.
    x = jnp.transpose(x_nchw, (0, 2, 3, 1))
    x_p = jnp.pad(x, ((0, 0), (0, 0), (0, 0), (0, Cp - Cin))).astype(jnp.bfloat16)

    enc_w = _conv_w3(params["enc_w"], Cp, Hidp)
    enc_b = _bias_row(params["enc_b"], Hidp)
    dec1_w = _conv_w3(params["dec1_w"], Dp, Hidp)
    dec1_b = _bias_row(params["dec1_b"], Hidp)
    dec2_w = _conv_w3(params["dec2_w"], Hidp, Cp)
    dec2_b = _bias_row(params["dec2_b"], Cp)
    pvq_w = jnp.pad(params["prevq_w"][:, :, 0, 0].T,
                    ((0, Hidp - hidden), (0, Dp - D))).astype(jnp.bfloat16)
    pvq_b = _bias_row(params["prevq_b"], Dp)
    ebook = jnp.pad(params["codebook"],
                    ((0, Kp - K), (0, Dp - D))).astype(jnp.float32)
    ebook_bf = ebook.astype(jnp.bfloat16)
    e_sq = jnp.sum(ebook * ebook, axis=1).reshape(1, Kp)   # hoisted ||e||^2

    # ---- encoder: fused conv3x3 + ReLU ----
    h = conv3x3(x_p, enc_w, enc_b, relu=True, out_dtype=jnp.bfloat16)
    h_flat = h.reshape(M, Hidp)

    # ---- fused pre-VQ 1x1 conv + vector quantizer ----
    tm = _pick_m_tile(M)
    z_flat, zq_flat, zqb_flat, idx, err, cnt = vq_quantize(
        h_flat, pvq_w, pvq_b, ebook, ebook_bf, e_sq, k_real=K, tm=tm)

    # loss / perplexity from lane-dense per-tile partial sums (tiny XLA reduce)
    mse = jnp.sum(err) / jnp.float32(M * D)
    loss = (1.0 + beta) * mse
    avg = jnp.sum(cnt, axis=(0, 1))[:K] / jnp.float32(M)
    perplexity = jnp.exp(-jnp.sum(avg * jnp.log(avg + 1e-10)))

    # ---- decoder (forward value of straight-through quantized == zq) ----
    zq_img = zqb_flat.reshape(N, H, W, Dp)
    d1 = conv3x3(zq_img, dec1_w, dec1_b, relu=True, out_dtype=jnp.bfloat16)
    xr = conv3x3(d1, dec2_w, dec2_b, relu=False, out_dtype=jnp.float32)

    # slice off channel padding, back to NCHW for public outputs
    z = jnp.transpose(z_flat.reshape(N, H, W, Dp)[..., :D], (0, 3, 1, 2))
    quantized = jnp.transpose(zq_flat.reshape(N, H, W, Dp)[..., :D], (0, 3, 1, 2))
    x_rec = jnp.transpose(xr[..., :Cin], (0, 3, 1, 2))
    enc_idx = idx.reshape(N, H, W)

    vq_output = {
        "quantized": quantized,
        "encoding_indices": enc_idx,
        "loss": loss,
        "perplexity": perplexity,
    }
    return {"z": z, "x_reconstructed": x_rec, "vq_output": vq_output}


# ----------------------------------------------------------------------------
if __name__ == "__main__":
    key = jax.random.PRNGKey(0)
    k_params, k_x = jax.random.split(key)

    N, Cin, H, W = 2, 4, 16, 16
    hidden, embed_dim, num_embeddings = 32, 8, 16

    params = init_params(k_params, Cin, hidden, embed_dim, num_embeddings)
    x = jax.random.normal(k_x, (N, Cin, H, W), jnp.float32)

    fwd = jax.jit(functools.partial(vqvae_forward, beta=0.25))
    out = fwd(params, x)
    jax.block_until_ready(out)

    assert out["z"].shape == (N, embed_dim, H, W)
    assert out["x_reconstructed"].shape == (N, Cin, H, W)
    assert out["vq_output"]["quantized"].shape == (N, embed_dim, H, W)
    assert out["vq_output"]["encoding_indices"].shape == (N, H, W)
    idx_min = int(jnp.min(out["vq_output"]["encoding_indices"]))
    idx_max = int(jnp.max(out["vq_output"]["encoding_indices"]))
    assert 0 <= idx_min and idx_max < num_embeddings  # padded codes never chosen
    assert bool(jnp.isfinite(out["vq_output"]["loss"]))
    assert bool(jnp.isfinite(out["vq_output"]["perplexity"]))

    print("KERNEL_OK")
</pallas_src>

<mosaic_0001>
module attributes {stable_mosaic.version = 11 : i64} {
  func.func @_conv3x3_kernel(%arg0: i32, %arg1: i32, %arg2: memref<1x288x384xbf16, #tpu.memory_space<vmem>>, %arg3: memref<3x384x128xbf16, #tpu.memory_space<vmem>>, %arg4: memref<1x128xf32, #tpu.memory_space<vmem>>, %arg5: memref<1x128x128xbf16, #tpu.memory_space<vmem>>, %arg6: memref<128x128xf32, #tpu.memory_space<vmem>>) attributes {dimension_semantics = [#tpu.dimension_semantics<parallel>, #tpu.dimension_semantics<parallel>], iteration_bounds = array<i64: 2, 2>, scalar_prefetch = 0 : i64, scratch_operands = 1 : i64, tpu.core_type = #tpu.core_type<tc>, window_params = [{transform_indices = @transform_0, window_bounds = array<i64: 1, 288, 384>}, {pipeline_mode = #tpu.pipeline_mode<synchronous>, transform_indices = @transform_1, window_bounds = array<i64: 3, 384, 128>}, {pipeline_mode = #tpu.pipeline_mode<synchronous>, transform_indices = @transform_2, window_bounds = array<i64: 1, 128>}, {transform_indices = @transform_3, window_bounds = array<i64: 1, 128, 128>}]} {
    %c128_i32 = arith.constant 128 : i32
    %0 = arith.muli %arg1, %c128_i32 : i32
    %c0_i32 = arith.constant 0 : i32
    %1 = arith.addi %0, %c0_i32 : i32
    %2 = tpu.assume_multiple %1, 8 : i32
    %c0 = arith.constant 0 : index
    %3 = arith.index_cast %2 : i32 to index
    %c0_0 = arith.constant 0 : index
    %4 = vector.load %arg2[%c0, %3, %c0_0] : memref<1x288x384xbf16, #tpu.memory_space<vmem>>, vector<1x128x384xbf16>
    %5 = vector.shape_cast %4 : vector<1x128x384xbf16> to vector<128x384xbf16>
    %c0_1 = arith.constant 0 : index
    %c0_2 = arith.constant 0 : index
    %c0_3 = arith.constant 0 : index
    %6 = vector.load %arg3[%c0_1, %c0_2, %c0_3] : memref<3x384x128xbf16, #tpu.memory_space<vmem>>, vector<1x384x128xbf16>
    %7 = vector.shape_cast %6 : vector<1x384x128xbf16> to vector<384x128xbf16>
    %cst = arith.constant dense<0.000000e+00> : vector<128x128xf32>
    %8 = tpu.matmul %5, %7, %cst {dimension_numbers = #tpu.dot_dimension_numbers<[1], [0], [0], [1], [0, 0, 1, 1], [], []>} : vector<128x384xbf16>, vector<384x128xbf16>, vector<128x128xf32> -> vector<128x128xf32>
    %c0_4 = arith.constant 0 : index
    %c0_5 = arith.constant 0 : index
    %9 = vector.load %arg6[%c0_4, %c0_5] : memref<128x128xf32, #tpu.memory_space<vmem>>, vector<128x128xf32>
    tpu.vector_store %arg6[%c0_4, %c0_5], %8 {strides = array<i32>} : memref<128x128xf32, #tpu.memory_space<vmem>>, vector<128x128xf32>,
    %c16_i32 = arith.constant 16 : i32
    %10 = arith.addi %0, %c16_i32 : i32
    %11 = tpu.assume_multiple %10, 8 : i32
    %c0_6 = arith.constant 0 : index
    %12 = arith.index_cast %11 : i32 to index
    %c0_7 = arith.constant 0 : index
    %13 = vector.load %arg2[%c0_6, %12, %c0_7] : memref<1x288x384xbf16, #tpu.memory_space<vmem>>, vector<1x128x384xbf16>
    %14 = vector.shape_cast %13 : vector<1x128x384xbf16> to vector<128x384xbf16>
    %c1 = arith.constant 1 : index
    %c0_8 = arith.constant 0 : index
    %c0_9 = arith.constant 0 : index
    %15 = vector.load %arg3[%c1, %c0_8, %c0_9] : memref<3x384x128xbf16, #tpu.memory_space<vmem>>, vector<1x384x128xbf16>
    %16 = vector.shape_cast %15 : vector<1x384x128xbf16> to vector<384x128xbf16>
    %cst_10 = arith.constant dense<0.000000e+00> : vector<128x128xf32>
    %17 = tpu.matmul %14, %16, %cst_10 {dimension_numbers = #tpu.dot_dimension_numbers<[1], [0], [0], [1], [0, 0, 1, 1], [], []>} : vector<128x384xbf16>, vector<384x128xbf16>, vector<128x128xf32> -> vector<128x128xf32>
    %c0_11 = arith.constant 0 : index
    %c0_12 = arith.constant 0 : index
    %18 = vector.load %arg6[%c0_11, %c0_12] : memref<128x128xf32, #tpu.memory_space<vmem>>, vector<128x128xf32>
    %19 = arith.addf %18, %17 : vector<128x128xf32>
    %c0_13 = arith.constant 0 : index
    %c0_14 = arith.constant 0 : index
    %20 = vector.load %arg6[%c0_13, %c0_14] : memref<128x128xf32, #tpu.memory_space<vmem>>, vector<128x128xf32>
    tpu.vector_store %arg6[%c0_13, %c0_14], %19 {strides = array<i32>} : memref<128x128xf32, #tpu.memory_space<vmem>>, vector<128x128xf32>,
    %c32_i32 = arith.constant 32 : i32
    %21 = arith.addi %0, %c32_i32 : i32
    %22 = tpu.assume_multiple %21, 8 : i32
    %c0_15 = arith.constant 0 : index
    %23 = arith.index_cast %22 : i32 to index
    %c0_16 = arith.constant 0 : index
    %24 = vector.load %arg2[%c0_15, %23, %c0_16] : memref<1x288x384xbf16, #tpu.memory_space<vmem>>, vector<1x128x384xbf16>
    %25 = vector.shape_cast %24 : vector<1x128x384xbf16> to vector<128x384xbf16>
    %c2 = arith.constant 2 : index
    %c0_17 = arith.constant 0 : index
    %c0_18 = arith.constant 0 : index
    %26 = vector.load %arg3[%c2, %c0_17, %c0_18] : memref<3x384x128xbf16, #tpu.memory_space<vmem>>, vector<1x384x128xbf16>
    %27 = vector.shape_cast %26 : vector<1x384x128xbf16> to vector<384x128xbf16>
    %cst_19 = arith.constant dense<0.000000e+00> : vector<128x128xf32>
    %28 = tpu.matmul %25, %27, %cst_19 {dimension_numbers = #tpu.dot_dimension_numbers<[1], [0], [0], [1], [0, 0, 1, 1], [], []>} : vector<128x384xbf16>, vector<384x128xbf16>, vector<128x128xf32> -> vector<128x128xf32>
    %c0_20 = arith.constant 0 : index
    %c0_21 = arith.constant 0 : index
    %29 = vector.load %arg6[%c0_20, %c0_21] : memref<128x128xf32, #tpu.memory_space<vmem>>, vector<128x128xf32>
    %30 = arith.addf %29, %28 : vector<128x128xf32>
    %c0_22 = arith.constant 0 : index
    %c0_23 = arith.constant 0 : index
    %31 = vector.load %arg6[%c0_22, %c0_23] : memref<128x128xf32, #tpu.memory_space<vmem>>, vector<128x128xf32>
    tpu.vector_store %arg6[%c0_22, %c0_23], %30 {strides = array<i32>} : memref<128x128xf32, #tpu.memory_space<vmem>>, vector<128x128xf32>,
    %c0_24 = arith.constant 0 : index
    %c0_25 = arith.constant 0 : index
    %32 = vector.load %arg6[%c0_24, %c0_25] : memref<128x128xf32, #tpu.memory_space<vmem>>, vector<128x128xf32>
    %c0_26 = arith.constant 0 : index
    %c0_27 = arith.constant 0 : index
    %33 = vector.load %arg4[%c0_26, %c0_27] : memref<1x128xf32, #tpu.memory_space<vmem>>, vector<1x128xf32>
    %34 = vector.broadcast %33 : vector<1x128xf32> to vector<128x128xf32>
    %35 = arith.addf %32, %34 : vector<128x128xf32>
    %cst_28 = arith.constant 0.000000e+00 : f32
    %36 = vector.broadcast %cst_28 : f32 to vector<128x128xf32>
    %37 = arith.maximumf %35, %36 : vector<128x128xf32>
    %38 = arith.truncf %37 : vector<128x128xf32> to vector<128x128xbf16>
    %c0_29 = arith.constant 0 : index
    %c0_30 = arith.constant 0 : index
    %c0_31 = arith.constant 0 : index
    %39 = vector.load %arg5[%c0_29, %c0_30, %c0_31] : memref<1x128x128xbf16, #tpu.memory_space<vmem>>, vector<1x128x128xbf16>
    %40 = vector.shape_cast %39 : vector<1x128x128xbf16> to vector<128x128xbf16>
    %41 = vector.shape_cast %38 : vector<128x128xbf16> to vector<1x128x128xbf16>
    tpu.vector_store %arg5[%c0_29, %c0_30, %c0_31], %41 {strides = array<i32>} : memref<1x128x128xbf16, #tpu.memory_space<vmem>>, vector<1x128x128xbf16>,
    return
  }
  func.func @transform_0(%arg0: i32, %arg1: i32) -> (i32, i32, i32) {
    %c0_i32 = arith.constant 0 : i32
    %c0_i32_0 = arith.constant 0 : i32
    %c0_i32_1 = arith.constant 0 : i32
    return %arg0, %c0_i32, %c0_i32_0 : i32, i32, i32
  }
  func.func @transform_1(%arg0: i32, %arg1: i32) -> (i32, i32, i32) {
    %c0_i32 = arith.constant 0 : i32
    %c0_i32_0 = arith.constant 0 : i32
    %c0_i32_1 = arith.constant 0 : i32
    %c0_i32_2 = arith.constant 0 : i32
    return %c0_i32, %c0_i32_0, %c0_i32_1 : i32, i32, i32
  }
  func.func @transform_2(%arg0: i32, %arg1: i32) -> (i32, i32) {
    %c0_i32 = arith.constant 0 : i32
    %c0_i32_0 = arith.constant 0 : i32
    %c0_i32_1 = arith.constant 0 : i32
    return %c0_i32, %c0_i32_0 : i32, i32
  }
  func.func @transform_3(%arg0: i32, %arg1: i32) -> (i32, i32, i32) {
    %c0_i32 = arith.constant 0 : i32
    %c0_i32_0 = arith.constant 0 : i32
    return %arg0, %arg1, %c0_i32 : i32, i32, i32
  }
}

module attributes {stable_mosaic.version = 11 : i64} {
  func.func @_vq_kernel(%arg0: i32, %arg1: memref<256x128xbf16, #tpu.memory_space<vmem>>, %arg2: memref<128x128xbf16, #tpu.memory_space<vmem>>, %arg3: memref<1x128xf32, #tpu.memory_space<vmem>>, %arg4: memref<128x128xf32, #tpu.memory_space<vmem>>, %arg5: memref<128x128xbf16, #tpu.memory_space<vmem>>, %arg6: memref<1x128xf32, #tpu.memory_space<vmem>>, %arg7: memref<256x128xf32, #tpu.memory_space<vmem>>, %arg8: memref<256x128xf32, #tpu.memory_space<vmem>>, %arg9: memref<256x128xbf16, #tpu.memory_space<vmem>>, %arg10: memref<256x1xi32, #tpu.memory_space<vmem>>, %arg11: memref<1x1x128xf32, #tpu.memory_space<vmem>>, %arg12: memref<1x1x128xf32, #tpu.memory_space<vmem>>) attributes {dimension_semantics = [#tpu.dimension_semantics<parallel>], iteration_bounds = array<i64: 2>, scalar_prefetch = 0 : i64, scratch_operands = 0 : i64, tpu.core_type = #tpu.core_type<tc>, window_params = [{transform_indices = @transform_0, window_bounds = array<i64: 256, 128>}, {pipeline_mode = #tpu.pipeline_mode<synchronous>, transform_indices = @transform_1, window_bounds = array<i64: 128, 128>}, {pipeline_mode = #tpu.pipeline_mode<synchronous>, transform_indices = @transform_2, window_bounds = array<i64: 1, 128>}, {pipeline_mode = #tpu.pipeline_mode<synchronous>, transform_indices = @transform_3, window_bounds = array<i64: 128, 128>}, {pipeline_mode = #tpu.pipeline_mode<synchronous>, transform_indices = @transform_4, window_bounds = array<i64: 128, 128>}, {pipeline_mode = #tpu.pipeline_mode<synchronous>, transform_indices = @transform_5, window_bounds = array<i64: 1, 128>}, {transform_indices = @transform_6, window_bounds = array<i64: 256, 128>}, {transform_indices = @transform_7, window_bounds = array<i64: 256, 128>}, {transform_indices = @transform_8, window_bounds = array<i64: 256, 128>}, {transform_indices = @transform_9, window_bounds = array<i64: 256, 1>}, {transform_indices = @transform_10, window_bounds = array<i64: 1, 1, 128>}, {transform_indices = @transform_11, window_bounds = array<i64: 1, 1, 128>}]} {
    %c0 = arith.constant 0 : index
    %c0_0 = arith.constant 0 : index
    %0 = vector.load %arg1[%c0, %c0_0] : memref<256x128xbf16, #tpu.memory_space<vmem>>, vector<256x128xbf16>
    %c0_1 = arith.constant 0 : index
    %c0_2 = arith.constant 0 : index
    %1 = vector.load %arg2[%c0_1, %c0_2] : memref<128x128xbf16, #tpu.memory_space<vmem>>, vector<128x128xbf16>
    %cst = arith.constant dense<0.000000e+00> : vector<256x128xf32>
    %2 = tpu.matmul %0, %1, %cst {dimension_numbers = #tpu.dot_dimension_numbers<[1], [0], [0], [1], [0, 0, 1, 1], [], []>} : vector<256x128xbf16>, vector<128x128xbf16>, vector<256x128xf32> -> vector<256x128xf32>
    %c0_3 = arith.constant 0 : index
    %c0_4 = arith.constant 0 : index
    %3 = vector.load %arg3[%c0_3, %c0_4] : memref<1x128xf32, #tpu.memory_space<vmem>>, vector<1x128xf32>
    %4 = vector.broadcast %3 : vector<1x128xf32> to vector<256x128xf32>
    %5 = arith.addf %2, %4 : vector<256x128xf32>
    %c0_5 = arith.constant 0 : index
    %c0_6 = arith.constant 0 : index
    %6 = vector.load %arg7[%c0_5, %c0_6] : memref<256x128xf32, #tpu.memory_space<vmem>>, vector<256x128xf32>
    tpu.vector_store %arg7[%c0_5, %c0_6], %5 {strides = array<i32>} : memref<256x128xf32, #tpu.memory_space<vmem>>, vector<256x128xf32>,
    %7 = arith.truncf %5 : vector<256x128xf32> to vector<256x128xbf16>
    %c0_7 = arith.constant 0 : index
    %c0_8 = arith.constant 0 : index
    %8 = vector.load %arg5[%c0_7, %c0_8] : memref<128x128xbf16, #tpu.memory_space<vmem>>, vector<128x128xbf16>
    %cst_9 = arith.constant dense<0.000000e+00> : vector<256x128xf32>
    %9 = tpu.matmul %7, %8, %cst_9 {dimension_numbers = #tpu.dot_dimension_numbers<[1], [1], [0], [0], [0, 0, 1, 0], [], []>} : vector<256x128xbf16>, vector<128x128xbf16>, vector<256x128xf32> -> vector<256x128xf32>
    %c0_10 = arith.constant 0 : index
    %c0_11 = arith.constant 0 : index
    %10 = vector.load %arg6[%c0_10, %c0_11] : memref<1x128xf32, #tpu.memory_space<vmem>>, vector<1x128xf32>
    %cst_12 = arith.constant 2.000000e+00 : f32
    %11 = vector.broadcast %cst_12 : f32 to vector<256x128xf32>
    %12 = arith.mulf %11, %9 : vector<256x128xf32>
    %13 = vector.broadcast %10 : vector<1x128xf32> to vector<256x128xf32>
    %14 = arith.subf %13, %12 : vector<256x128xf32>
    %15 = tpu.iota {dimensions = array<i32: 1>} : vector<256x128xi32>
    %c16_i32 = arith.constant 16 : i32
    %16 = vector.broadcast %c16_i32 : i32 to vector<256x128xi32>
    %17 = arith.cmpi slt, %15, %16 : vector<256x128xi32>
    %cst_13 = arith.constant 1.000000e+30 : f32
    %18 = vector.broadcast %cst_13 : f32 to vector<256x128xf32>
    %19 = arith.select %17, %14, %18 : vector<256x128xi1>, vector<256x128xf32>
    %cst_14 = arith.constant dense<0x7F800000> : vector<256xf32>
    %20 = vector.multi_reduction <minimumf>, %19, %cst_14 [1] : vector<256x128xf32> to vector<256xf32>
    %21 = vector.shape_cast %20 : vector<256xf32> to vector<256x1xf32>
    %22 = vector.broadcast %21 : vector<256x1xf32> to vector<256x128xf32>
    %23 = arith.cmpf oeq, %19, %22 : vector<256x128xf32>
    %c128_i32 = arith.constant 128 : i32
    %24 = vector.broadcast %c128_i32 : i32 to vector<256x128xi32>
    %25 = arith.select %23, %15, %24 : vector<256x128xi1>, vector<256x128xi32>
    %cst_15 = arith.constant dense<2147483647> : vector<256xi32>
    %26 = vector.multi_reduction <minsi>, %25, %cst_15 [1] : vector<256x128xi32> to vector<256xi32>
    %27 = vector.shape_cast %26 : vector<256xi32> to vector<256x1xi32>
    %28 = vector.broadcast %27 : vector<256x1xi32> to vector<256x128xi32>
    %29 = arith.cmpi eq, %15, %28 : vector<256x128xi32>
    %30 = arith.extui %29 : vector<256x128xi1> to vector<256x128xi32>
    %31 = arith.sitofp %30 : vector<256x128xi32> to vector<256x128xf32>
    %c0_16 = arith.constant 0 : index
    %c0_17 = arith.constant 0 : index
    %32 = vector.load %arg4[%c0_16, %c0_17] : memref<128x128xf32, #tpu.memory_space<vmem>>, vector<128x128xf32>
    %cst_18 = arith.constant dense<0.000000e+00> : vector<256x128xf32>
    %33 = tpu.matmul %31, %32, %cst_18 {dimension_numbers = #tpu.dot_dimension_numbers<[1], [0], [0], [1], [0, 0, 1, 1], [], []>} : vector<256x128xf32>, vector<128x128xf32>, vector<256x128xf32> -> vector<256x128xf32>
    %c0_19 = arith.constant 0 : index
    %c0_20 = arith.constant 0 : index
    %34 = vector.load %arg8[%c0_19, %c0_20] : memref<256x128xf32, #tpu.memory_space<vmem>>, vector<256x128xf32>
    tpu.vector_store %arg8[%c0_19, %c0_20], %33 {strides = array<i32>} : memref<256x128xf32, #tpu.memory_space<vmem>>, vector<256x128xf32>,
    %35 = arith.truncf %33 : vector<256x128xf32> to vector<256x128xbf16>
    %c0_21 = arith.constant 0 : index
    %c0_22 = arith.constant 0 : index
    %36 = vector.load %arg9[%c0_21, %c0_22] : memref<256x128xbf16, #tpu.memory_space<vmem>>, vector<256x128xbf16>
    tpu.vector_store %arg9[%c0_21, %c0_22], %35 {strides = array<i32>} : memref<256x128xbf16, #tpu.memory_space<vmem>>, vector<256x128xbf16>,
    %c0_23 = arith.constant 0 : index
    %c0_24 = arith.constant 0 : index
    %37 = vector.load %arg10[%c0_23, %c0_24] : memref<256x1xi32, #tpu.memory_space<vmem>>, vector<256x1xi32>
    tpu.vector_store %arg10[%c0_23, %c0_24], %27 {strides = array<i32>} : memref<256x1xi32, #tpu.memory_space<vmem>>, vector<256x1xi32>,
    %38 = arith.subf %33, %5 : vector<256x128xf32>
    %39 = arith.mulf %38, %38 : vector<256x128xf32>
    %cst_25 = arith.constant dense<0.000000e+00> : vector<128xf32>
    %40 = vector.multi_reduction <add>, %39, %cst_25 [0] : vector<256x128xf32> to vector<128xf32>
    %41 = vector.shape_cast %40 : vector<128xf32> to vector<1x128xf32>
    %c0_26 = arith.constant 0 : index
    %c0_27 = arith.constant 0 : index
    %c0_28 = arith.constant 0 : index
    %42 = vector.load %arg11[%c0_26, %c0_27, %c0_28] : memref<1x1x128xf32, #tpu.memory_space<vmem>>, vector<1x1x128xf32>
    %43 = vector.shape_cast %42 : vector<1x1x128xf32> to vector<1x128xf32>
    %44 = vector.shape_cast %41 : vector<1x128xf32> to vector<1x1x128xf32>
    tpu.vector_store %arg11[%c0_26, %c0_27, %c0_28], %44 {strides = array<i32>} : memref<1x1x128xf32, #tpu.memory_space<vmem>>, vector<1x1x128xf32>,
    %cst_29 = arith.constant dense<0.000000e+00> : vector<128xf32>
    %45 = vector.multi_reduction <add>, %31, %cst_29 [0] : vector<256x128xf32> to vector<128xf32>
    %46 = vector.shape_cast %45 : vector<128xf32> to vector<1x128xf32>
    %c0_30 = arith.constant 0 : index
    %c0_31 = arith.constant 0 : index
    %c0_32 = arith.constant 0 : index
    %47 = vector.load %arg12[%c0_30, %c0_31, %c0_32] : memref<1x1x128xf32, #tpu.memory_space<vmem>>, vector<1x1x128xf32>
    %48 = vector.shape_cast %47 : vector<1x1x128xf32> to vector<1x128xf32>
    %49 = vector.shape_cast %46 : vector<1x128xf32> to vector<1x1x128xf32>
    tpu.vector_store %arg12[%c0_30, %c0_31, %c0_32], %49 {strides = array<i32>} : memref<1x1x128xf32, #tpu.memory_space<vmem>>, vector<1x1x128xf32>,
    return
  }
  func.func @transform_0(%arg0: i32) -> (i32, i32) {
    %c0_i32 = arith.constant 0 : i32
    %c0_i32_0 = arith.constant 0 : i32
    return %arg0, %c0_i32 : i32, i32
  }
  func.func @transform_1(%arg0: i32) -> (i32, i32) {
    %c0_i32 = arith.constant 0 : i32
    %c0_i32_0 = arith.constant 0 : i32
    %c0_i32_1 = arith.constant 0 : i32
    return %c0_i32, %c0_i32_0 : i32, i32
  }
  func.func @transform_2(%arg0: i32) -> (i32, i32) {
    %c0_i32 = arith.constant 0 : i32
    %c0_i32_0 = arith.constant 0 : i32
    %c0_i32_1 = arith.constant 0 : i32
    return %c0_i32, %c0_i32_0 : i32, i32
  }
  func.func @transform_3(%arg0: i32) -> (i32, i32) {
    %c0_i32 = arith.constant 0 : i32
    %c0_i32_0 = arith.constant 0 : i32
    %c0_i32_1 = arith.constant 0 : i32
    return %c0_i32, %c0_i32_0 : i32, i32
  }
  func.func @transform_4(%arg0: i32) -> (i32, i32) {
    %c0_i32 = arith.constant 0 : i32
    %c0_i32_0 = arith.constant 0 : i32
    %c0_i32_1 = arith.constant 0 : i32
    return %c0_i32, %c0_i32_0 : i32, i32
  }
  func.func @transform_5(%arg0: i32) -> (i32, i32) {
    %c0_i32 = arith.constant 0 : i32
    %c0_i32_0 = arith.constant 0 : i32
    %c0_i32_1 = arith.constant 0 : i32
    return %c0_i32, %c0_i32_0 : i32, i32
  }
  func.func @transform_6(%arg0: i32) -> (i32, i32) {
    %c0_i32 = arith.constant 0 : i32
    %c0_i32_0 = arith.constant 0 : i32
    return %arg0, %c0_i32 : i32, i32
  }
  func.func @transform_7(%arg0: i32) -> (i32, i32) {
    %c0_i32 = arith.constant 0 : i32
    %c0_i32_0 = arith.constant 0 : i32
    return %arg0, %c0_i32 : i32, i32
  }
  func.func @transform_8(%arg0: i32) -> (i32, i32) {
    %c0_i32 = arith.constant 0 : i32
    %c0_i32_0 = arith.constant 0 : i32
    return %arg0, %c0_i32 : i32, i32
  }
  func.func @transform_9(%arg0: i32) -> (i32, i32) {
    %c0_i32 = arith.constant 0 : i32
    %c0_i32_0 = arith.constant 0 : i32
    return %arg0, %c0_i32 : i32, i32
  }
  func.func @transform_10(%arg0: i32) -> (i32, i32, i32) {
    %c0_i32 = arith.constant 0 : i32
    %c0_i32_0 = arith.constant 0 : i32
    %c0_i32_1 = arith.constant 0 : i32
    return %arg0, %c0_i32, %c0_i32_0 : i32, i32, i32
  }
  func.func @transform_11(%arg0: i32) -> (i32, i32, i32) {
    %c0_i32 = arith.constant 0 : i32
    %c0_i32_0 = arith.constant 0 : i32
    %c0_i32_1 = arith.constant 0 : i32
    return %arg0, %c0_i32, %c0_i32_0 : i32, i32, i32
  }
}

module attributes {stable_mosaic.version = 11 : i64} {
  func.func @_conv3x3_kernel(%arg0: i32, %arg1: i32, %arg2: memref<1x288x384xbf16, #tpu.memory_space<vmem>>, %arg3: memref<3x384x128xbf16, #tpu.memory_space<vmem>>, %arg4: memref<1x128xf32, #tpu.memory_space<vmem>>, %arg5: memref<1x128x128xf32, #tpu.memory_space<vmem>>, %arg6: memref<128x128xf32, #tpu.memory_space<vmem>>) attributes {dimension_semantics = [#tpu.dimension_semantics<parallel>, #tpu.dimension_semantics<parallel>], iteration_bounds = array<i64: 2, 2>, scalar_prefetch = 0 : i64, scratch_operands = 1 : i64, tpu.core_type = #tpu.core_type<tc>, window_params = [{transform_indices = @transform_0, window_bounds = array<i64: 1, 288, 384>}, {pipeline_mode = #tpu.pipeline_mode<synchronous>, transform_indices = @transform_1, window_bounds = array<i64: 3, 384, 128>}, {pipeline_mode = #tpu.pipeline_mode<synchronous>, transform_indices = @transform_2, window_bounds = array<i64: 1, 128>}, {transform_indices = @transform_3, window_bounds = array<i64: 1, 128, 128>}]} {
    %c128_i32 = arith.constant 128 : i32
    %0 = arith.muli %arg1, %c128_i32 : i32
    %c0_i32 = arith.constant 0 : i32
    %1 = arith.addi %0, %c0_i32 : i32
    %2 = tpu.assume_multiple %1, 8 : i32
    %c0 = arith.constant 0 : index
    %3 = arith.index_cast %2 : i32 to index
    %c0_0 = arith.constant 0 : index
    %4 = vector.load %arg2[%c0, %3, %c0_0] : memref<1x288x384xbf16, #tpu.memory_space<vmem>>, vector<1x128x384xbf16>
    %5 = vector.shape_cast %4 : vector<1x128x384xbf16> to vector<128x384xbf16>
    %c0_1 = arith.constant 0 : index
    %c0_2 = arith.constant 0 : index
    %c0_3 = arith.constant 0 : index
    %6 = vector.load %arg3[%c0_1, %c0_2, %c0_3] : memref<3x384x128xbf16, #tpu.memory_space<vmem>>, vector<1x384x128xbf16>
    %7 = vector.shape_cast %6 : vector<1x384x128xbf16> to vector<384x128xbf16>
    %cst = arith.constant dense<0.000000e+00> : vector<128x128xf32>
    %8 = tpu.matmul %5, %7, %cst {dimension_numbers = #tpu.dot_dimension_numbers<[1], [0], [0], [1], [0, 0, 1, 1], [], []>} : vector<128x384xbf16>, vector<384x128xbf16>, vector<128x128xf32> -> vector<128x128xf32>
    %c0_4 = arith.constant 0 : index
    %c0_5 = arith.constant 0 : index
    %9 = vector.load %arg6[%c0_4, %c0_5] : memref<128x128xf32, #tpu.memory_space<vmem>>, vector<128x128xf32>
    tpu.vector_store %arg6[%c0_4, %c0_5], %8 {strides = array<i32>} : memref<128x128xf32, #tpu.memory_space<vmem>>, vector<128x128xf32>,
    %c16_i32 = arith.constant 16 : i32
    %10 = arith.addi %0, %c16_i32 : i32
    %11 = tpu.assume_multiple %10, 8 : i32
    %c0_6 = arith.constant 0 : index
    %12 = arith.index_cast %11 : i32 to index
    %c0_7 = arith.constant 0 : index
    %13 = vector.load %arg2[%c0_6, %12, %c0_7] : memref<1x288x384xbf16, #tpu.memory_space<vmem>>, vector<1x128x384xbf16>
    %14 = vector.shape_cast %13 : vector<1x128x384xbf16> to vector<128x384xbf16>
    %c1 = arith.constant 1 : index
    %c0_8 = arith.constant 0 : index
    %c0_9 = arith.constant 0 : index
    %15 = vector.load %arg3[%c1, %c0_8, %c0_9] : memref<3x384x128xbf16, #tpu.memory_space<vmem>>, vector<1x384x128xbf16>
    %16 = vector.shape_cast %15 : vector<1x384x128xbf16> to vector<384x128xbf16>
    %cst_10 = arith.constant dense<0.000000e+00> : vector<128x128xf32>
    %17 = tpu.matmul %14, %16, %cst_10 {dimension_numbers = #tpu.dot_dimension_numbers<[1], [0], [0], [1], [0, 0, 1, 1], [], []>} : vector<128x384xbf16>, vector<384x128xbf16>, vector<128x128xf32> -> vector<128x128xf32>
    %c0_11 = arith.constant 0 : index
    %c0_12 = arith.constant 0 : index
    %18 = vector.load %arg6[%c0_11, %c0_12] : memref<128x128xf32, #tpu.memory_space<vmem>>, vector<128x128xf32>
    %19 = arith.addf %18, %17 : vector<128x128xf32>
    %c0_13 = arith.constant 0 : index
    %c0_14 = arith.constant 0 : index
    %20 = vector.load %arg6[%c0_13, %c0_14] : memref<128x128xf32, #tpu.memory_space<vmem>>, vector<128x128xf32>
    tpu.vector_store %arg6[%c0_13, %c0_14], %19 {strides = array<i32>} : memref<128x128xf32, #tpu.memory_space<vmem>>, vector<128x128xf32>,
    %c32_i32 = arith.constant 32 : i32
    %21 = arith.addi %0, %c32_i32 : i32
    %22 = tpu.assume_multiple %21, 8 : i32
    %c0_15 = arith.constant 0 : index
    %23 = arith.index_cast %22 : i32 to index
    %c0_16 = arith.constant 0 : index
    %24 = vector.load %arg2[%c0_15, %23, %c0_16] : memref<1x288x384xbf16, #tpu.memory_space<vmem>>, vector<1x128x384xbf16>
    %25 = vector.shape_cast %24 : vector<1x128x384xbf16> to vector<128x384xbf16>
    %c2 = arith.constant 2 : index
    %c0_17 = arith.constant 0 : index
    %c0_18 = arith.constant 0 : index
    %26 = vector.load %arg3[%c2, %c0_17, %c0_18] : memref<3x384x128xbf16, #tpu.memory_space<vmem>>, vector<1x384x128xbf16>
    %27 = vector.shape_cast %26 : vector<1x384x128xbf16> to vector<384x128xbf16>
    %cst_19 = arith.constant dense<0.000000e+00> : vector<128x128xf32>
    %28 = tpu.matmul %25, %27, %cst_19 {dimension_numbers = #tpu.dot_dimension_numbers<[1], [0], [0], [1], [0, 0, 1, 1], [], []>} : vector<128x384xbf16>, vector<384x128xbf16>, vector<128x128xf32> -> vector<128x128xf32>
    %c0_20 = arith.constant 0 : index
    %c0_21 = arith.constant 0 : index
    %29 = vector.load %arg6[%c0_20, %c0_21] : memref<128x128xf32, #tpu.memory_space<vmem>>, vector<128x128xf32>
    %30 = arith.addf %29, %28 : vector<128x128xf32>
    %c0_22 = arith.constant 0 : index
    %c0_23 = arith.constant 0 : index
    %31 = vector.load %arg6[%c0_22, %c0_23] : memref<128x128xf32, #tpu.memory_space<vmem>>, vector<128x128xf32>
    tpu.vector_store %arg6[%c0_22, %c0_23], %30 {strides = array<i32>} : memref<128x128xf32, #tpu.memory_space<vmem>>, vector<128x128xf32>,
    %c0_24 = arith.constant 0 : index
    %c0_25 = arith.constant 0 : index
    %32 = vector.load %arg6[%c0_24, %c0_25] : memref<128x128xf32, #tpu.memory_space<vmem>>, vector<128x128xf32>
    %c0_26 = arith.constant 0 : index
    %c0_27 = arith.constant 0 : index
    %33 = vector.load %arg4[%c0_26, %c0_27] : memref<1x128xf32, #tpu.memory_space<vmem>>, vector<1x128xf32>
    %34 = vector.broadcast %33 : vector<1x128xf32> to vector<128x128xf32>
    %35 = arith.addf %32, %34 : vector<128x128xf32>
    %c0_28 = arith.constant 0 : index
    %c0_29 = arith.constant 0 : index
    %c0_30 = arith.constant 0 : index
    %36 = vector.load %arg5[%c0_28, %c0_29, %c0_30] : memref<1x128x128xf32, #tpu.memory_space<vmem>>, vector<1x128x128xf32>
    %37 = vector.shape_cast %36 : vector<1x128x128xf32> to vector<128x128xf32>
    %38 = vector.shape_cast %35 : vector<128x128xf32> to vector<1x128x128xf32>
    tpu.vector_store %arg5[%c0_28, %c0_29, %c0_30], %38 {strides = array<i32>} : memref<1x128x128xf32, #tpu.memory_space<vmem>>, vector<1x128x128xf32>,
    return
  }
  func.func @transform_0(%arg0: i32, %arg1: i32) -> (i32, i32, i32) {
    %c0_i32 = arith.constant 0 : i32
    %c0_i32_0 = arith.constant 0 : i32
    %c0_i32_1 = arith.constant 0 : i32
    return %arg0, %c0_i32, %c0_i32_0 : i32, i32, i32
  }
  func.func @transform_1(%arg0: i32, %arg1: i32) -> (i32, i32, i32) {
    %c0_i32 = arith.constant 0 : i32
    %c0_i32_0 = arith.constant 0 : i32
    %c0_i32_1 = arith.constant 0 : i32
    %c0_i32_2 = arith.constant 0 : i32
    return %c0_i32, %c0_i32_0, %c0_i32_1 : i32, i32, i32
  }
  func.func @transform_2(%arg0: i32, %arg1: i32) -> (i32, i32) {
    %c0_i32 = arith.constant 0 : i32
    %c0_i32_0 = arith.constant 0 : i32
    %c0_i32_1 = arith.constant 0 : i32
    return %c0_i32, %c0_i32_0 : i32, i32
  }
  func.func @transform_3(%arg0: i32, %arg1: i32) -> (i32, i32, i32) {
    %c0_i32 = arith.constant 0 : i32
    %c0_i32_0 = arith.constant 0 : i32
    return %arg0, %arg1, %c0_i32 : i32, i32, i32
  }
}

</mosaic_0001>

<bundles_post_ra>
// kernel: vqvae_forward.5
= control target key start
LH: loop header
LB: loop body
LE: loop exit
PB: predicated region body
PF: predicated region fallthrough
CT: control target
= control target key end

     0   :  { %s3410_s17 = smov 0   ;;  %s4547_s0 = inlined_call_operand.vmem [shape: bf16[512,128], index: 0, kind: input, shape index: {}]   ;;  %s4548_s1 = inlined_call_operand.vmem [shape: bf16[128,128], index: 1, kind: input, shape index: {}]   ;;  %s4549_s2 = inlined_call_operand.vmem [shape: f32[1,128], index: 2, kind: input, shape index: {}]   ;;  %s4550_s3 = inlined_call_operand.vmem [shape: f32[128,128], index: 3, kind: input, shape index: {}]   ;;  %s4551_s4 = inlined_call_operand.vmem [shape: bf16[128,128], index: 4, kind: input, shape index: {}]   ;;  %s4552_s5 = inlined_call_operand.vmem [shape: f32[1,128], index: 5, kind: input, shape index: {}]   ;;  %s4553_s6 = inlined_call_operand.vmem [shape: f32[512,128], index: 6, kind: output, shape index: {0}]   ;;  %s4554_s7 = inlined_call_operand.vmem [shape: f32[512,128], index: 7, kind: output, shape index: {1}]   ;;  %s4555_s8 = inlined_call_operand.vmem [shape: bf16[512,128], index: 8, kind: output, shape index: {2}]   ;;  %s4556_s9 = inlined_call_operand.vmem [shape: s32[512,1], index: 9, kind: output, shape index: {3}]   ;;  %s4557_s10 = inlined_call_operand.vmem [shape: f32[2,1,128], index: 10, kind: output, shape index: {4}]   ;;  %s4558_s11 = inlined_call_operand.vmem [shape: f32[2,1,128], index: 11, kind: output, shape index: {5}]  }
   0x1 LB: > { %s3416_s18 = sadd.s32 4294967295, %s3346_s17   ;;  %p2676_p0 = scmp.ge.s32.totalorder %s3346_s17, 1  ;;  %s3346_s17 = sphi %s3410_s17, %s22_s17  }
   0x2   : > { %p349_p1 = scmp.lt.s32.totalorder %s3346_s17, 3 }
   0x4   : > { %p350_p2 = pnand %p2676_p0, %p349_p1 }
   0x6   : > { %353 = sbr.rel (%p350_p2) target bundleno = 1221 (0x4c5), region = 44 }
   0xd   : > { %v3276_v0 = vld [vmem:[%s4548_s1] sm:$0xff]   ;;  %s2677_s21 = sshll.u32 %s3416_s18, 5  ;;  %v3277_v1 = vld [vmem:[%s4548_s1 + $0x8] sm:$0xff]   ;;  %v3278_v2 = vld [vmem:[%s4548_s1 + $0x10] sm:$0xff]   ;;  %p440_p4 = scmp.lt.s32.totalorder %s3416_s18, 1 }
   0xe   : > { %p411_p3 = scmp.lt.s32.totalorder %s2677_s21, 63  ;;  %3042 = vmatprep.subr.bf16.mxu0 %v3276_v0  ;;  %v3279_v3 = vld [vmem:[%s4548_s1 + $0x18] sm:$0xff]   ;;  %v3280_v5 = vld [vmem:[%s4548_s1 + $0x20] sm:$0xff]   ;;  %v3281_v6 = vld [vmem:[%s4548_s1 + $0x28] sm:$0xff]  }
   0xf   : > { %3043 = vmatpush3.bf16.msra.mxu0 %v3276_v0  ;;  %v3282_v7 = vld [vmem:[%s4548_s1 + $0x30] sm:$0xff]   ;;  %v3283_v8 = vld [vmem:[%s4548_s1 + $0x38] sm:$0xff]   ;;  %v3300_v9 = vld [vmem:[%s4551_s4] sm:$0xff]   ;;  %s4596_s18 = smov (!%p440_p4, %s3416_s18), 1 }
  0x10   : > { %s4594_s21 = smov (!%p411_p3, %s2677_s21), 63  ;;  %3044 = vmatprep.subr.bf16.mxu0 %v3277_v1  ;;  %v3301_v10 = vld [vmem:[%s4551_s4 + $0x8] sm:$0xff]   ;;  %3090 = vmatprep.subr.bf16.mxu1 %v3300_v9  ;;  %v3302_v13 = vld [vmem:[%s4551_s4 + $0x10] sm:$0xff]   ;;  %v3303_v16 = vld [vmem:[%s4551_s4 + $0x18] sm:$0xff]  }
  0x11   : > { %s2678_s26 = sshll.u32 %s4594_s21, 2  ;;  %3091 = vmatpush3.bf16.xpose.msra.mxu1 %v3300_v9  ;;  %v3304_v19 = vld [vmem:[%s4551_s4 + $0x20] sm:$0xff]   ;;  %v3305_v22 = vld [vmem:[%s4551_s4 + $0x28] sm:$0xff]   ;;  %v3306_v25 = vld [vmem:[%s4551_s4 + $0x30] sm:$0xff]   ;;  %s3496_s27 = sshll.u32 %s4594_s21, 3 }
  0x12   : > { %s3438_s29 = scalar_lea.vmem %s4547_s0, %s2678_s26  ;;  %3092 = vmatprep.subr.bf16.mxu1 %v3301_v10  ;;  %v3307_v31 = vld [vmem:[%s4551_s4 + $0x38] sm:$0xff]   ;;  %v3501_v32 = vld [vmem:[%s4549_s2] ss:$0 sm:$0xff]  ;;  %s3507_s14 = scalar_lea.vmem %s4553_s6, %s3496_s27 }
  0x13   : > { %3045 = vmatpush3.bf16.msra.mxu0 %v3277_v1  ;;  %v3284_v4 = vld [vmem:[%s3438_s29] sm:$0xff]   ;;  %v3285_v11 = vld [vmem:[%s3438_s29 + $0x8] sm:$0xff]   ;;  %v3286_v12 = vld [vmem:[%s3438_s29 + $0x10] sm:$0xff]   ;;  %s4244_s30 = scalar_lea.vmem %s4556_s9, %s3496_s27  ;;  %s4451_s19 = scalar_lea.vmem %s4554_s7, %s3496_s27 }
  0x14   : > { %3046 = vmatprep.subr.bf16.mxu0 %v3278_v2  ;;  %3058 = vmatprep.mubr.bf16.mxu0 %v3284_v4  ;;  %v3287_v14 = vld [vmem:[%s3438_s29 + $0x18] sm:$0xff]   ;;  %v3288_v15 = vld [vmem:[%s3438_s29 + $0x20] sm:$0xff]   ;;  %v3289_v17 = vld [vmem:[%s3438_s29 + $0x28] sm:$0xff]   ;;  %s4460_s23 = scalar_lea.vmem %s4555_s8, %s2678_s26  ;;  %s442_s27 = scalar_lea.vmem %s4557_s10, %s4596_s18 }
  0x15   : > { %v3290_v18 = vld [vmem:[%s3438_s29 + $0x30] sm:$0xff]   ;;  %v3291_v20 = vld [vmem:[%s3438_s29 + $0x38] sm:$0xff]   ;;  %v3292_v21 = vld [vmem:[%s3438_s29 + $0x40] sm:$0xff]  }
  0x16   : > { %v3293_v23 = vld [vmem:[%s3438_s29 + $0x48] sm:$0xff]   ;;  %v3294_v24 = vld [vmem:[%s3438_s29 + $0x50] sm:$0xff]   ;;  %v3295_v26 = vld [vmem:[%s3438_s29 + $0x58] sm:$0xff]  }
  0x17   : > { %3047 = vmatpush3.bf16.msra.mxu0 %v3278_v2  ;;  %v3296_v27 = vld [vmem:[%s3438_s29 + $0x60] sm:$0xff]   ;;  %v3297_v28 = vld [vmem:[%s3438_s29 + $0x68] sm:$0xff]   ;;  %v3298_v29 = vld [vmem:[%s3438_s29 + $0x70] sm:$0xff]  }
  0x18   : > { %3048 = vmatprep.subr.bf16.mxu0 %v3279_v3  ;;  %v3299_v30 = vld [vmem:[%s3438_s29 + $0x78] sm:$0xff]   ;;  %s445_s29 = scalar_lea.vmem %s4558_s11, %s4596_s18 }
  0x19   : > { %3093 = vmatpush3.bf16.xpose.msra.mxu1 %v3301_v10 }
  0x1a   : > { %3094 = vmatprep.subr.bf16.mxu1 %v3302_v13 }
  0x1b   : > { %3049 = vmatpush3.bf16.msra.mxu0 %v3279_v3 }
  0x1c   : > { %3050 = vmatprep.subr.bf16.mxu0 %v3280_v5 }
  0x1f   : > { %3051 = vmatpush3.bf16.msra.mxu0 %v3280_v5 }
  0x20   : > { %3052 = vmatprep.subr.bf16.mxu0 %v3281_v6 }
  0x21   : > { %3095 = vmatpush3.bf16.xpose.msra.mxu1 %v3302_v13 }
  0x22   : > { %3096 = vmatprep.subr.bf16.mxu1 %v3303_v16 }
  0x23   : > { %3053 = vmatpush3.bf16.msra.mxu0 %v3281_v6 }
  0x24   : > { %3054 = vmatprep.subr.bf16.mxu0 %v3282_v7 }
  0x27   : > { %3055 = vmatpush3.bf16.msra.mxu0 %v3282_v7 }
  0x28   : > { %3056 = vmatprep.subr.bf16.mxu0 %v3283_v8 }
  0x29   : > { %3097 = vmatpush3.bf16.xpose.msra.mxu1 %v3303_v16 }
  0x2a   : > { %3098 = vmatprep.subr.bf16.mxu1 %v3304_v19 }
  0x2b   : > { %3057 = vmatpush3.bf16.msra.mxu0 %v3283_v8 }
  0x2e   : > { %3059 = vmatmul.mubr.bf16.vlgmr.msra.gmra.mrb[0].mxu0 %v3285_v11 }
  0x2f   : > { %3062 = vmatprep.mubr.bf16.mxu0 %v3286_v12 }
  0x31   : > { %3099 = vmatpush3.bf16.xpose.msra.mxu1 %v3304_v19 }
  0x32   : > { %3100 = vmatprep.subr.bf16.mxu1 %v3305_v22 }
  0x36   : > { %3063 = vmatmul.mubr.bf16.gmra.mrb[4].mxu0 %v3287_v14 }
  0x37   : > { %3066 = vmatprep.mubr.bf16.mxu0 %v3288_v15 }
  0x39   : > { %3101 = vmatpush3.bf16.xpose.msra.mxu1 %v3305_v22 }
  0x3a   : > { %3102 = vmatprep.subr.bf16.mxu1 %v3306_v25 }
  0x3e   : > { %3067 = vmatmul.mubr.bf16.gmra.mrb[8].mxu0 %v3289_v17 }
  0x3f   : > { %3070 = vmatprep.mubr.bf16.mxu0 %v3290_v18 }
  0x41   : > { %3103 = vmatpush3.bf16.xpose.msra.mxu1 %v3306_v25 }
  0x42   : > { %3104 = vmatprep.subr.bf16.mxu1 %v3307_v31 }
  0x46   : > { %3071 = vmatmul.mubr.bf16.gmra.mrb[12].mxu0 %v3291_v20 }
  0x47   : > { %3074 = vmatprep.mubr.bf16.mxu0 %v3292_v21 }
  0x49   : > { %3105 = vmatpush3.bf16.xpose.msra.mxu1 %v3307_v31 }
  0x4e   : > { %3075 = vmatmul.mubr.bf16.gmra.mrb[16].mxu0 %v3293_v23 }
  0x4f   : > { %3078 = vmatprep.mubr.bf16.mxu0 %v3294_v24 }
  0x56   : > { %3079 = vmatmul.mubr.bf16.gmra.mrb[20].mxu0 %v3295_v26 }
  0x57   : > { %3082 = vmatprep.mubr.bf16.mxu0 %v3296_v27 }
  0x5e   : > { %3083 = vmatmul.mubr.bf16.gmra.mrb[24].mxu0 %v3297_v28 }
  0x5f   : > { %3086 = vmatprep.mubr.bf16.mxu0 %v3298_v29 }
  0x66   : > { %3087 = vmatmul.mubr.bf16.gmra.mrb[28].mxu0 %v3299_v30 }
 0x101   : > { %v3060_v33 = vpop.f32.mrb[0].mxu0 }
 0x102   : > { %v689_v34 = vadd.f32 %v3060_v33, %v3501_v32  ;;  %v680_v35 = vpop.f32.mrb[1].mxu0 }
 0x103   : > { %v681_v36 = vadd.f32 %v3501_v32, %v680_v35  ;;  %v3061_v37 = vpop.f32.mrb[2].mxu0 }
 0x104   : > { %809 = vst [vmem:[%s3507_s14 + $0x10] sm:$0xff] %v689_v34  ;;  %v692_v38 = vadd.f32 %v3061_v37, %v3501_v32  ;;  %v683_v39 = vpop.f32.mrb[3].mxu0 }
 0x105   : > { %807 = vst [vmem:[%s3507_s14] sm:$0xff] %v681_v36  ;;  %v684_v40 = vadd.f32 %v3501_v32, %v683_v39 }
 0x106   : > { %810 = vst [vmem:[%s3507_s14 + $0x18] sm:$0xff] %v692_v38  ;;  %v840_v42 = vpack.c.bf16 %v692_v38, %v689_v34 }
 0x107   : > { %808 = vst [vmem:[%s3507_s14 + $0x8] sm:$0xff] %v684_v40  ;;  %v839_v41 = vpack.c.bf16 %v684_v40, %v681_v36 }
 0x109   : > { %v3064_v43 = vpop.f32.mrb[4].mxu0  ;;  %3106 = vmatprep.mubr.bf16.mxu1 %v839_v41 }
 0x10a   : > { %v705_v44 = vadd.f32 %v3064_v43, %v3501_v32  ;;  %v696_v45 = vpop.f32.mrb[5].mxu0  ;;  %3107 = vmatmul.mubr.bf16.vlgmr.msra.gmra.mrb[0].mxu1 %v840_v42 }
 0x10b   : > { %v697_v46 = vadd.f32 %v3501_v32, %v696_v45  ;;  %v3065_v47 = vpop.f32.mrb[6].mxu0 }
 0x10c   : > { %813 = vst [vmem:[%s3507_s14 + $0x30] sm:$0xff] %v705_v44  ;;  %v708_v48 = vadd.f32 %v3065_v47, %v3501_v32  ;;  %v699_v49 = vpop.f32.mrb[7].mxu0 }
 0x10d   : > { %811 = vst [vmem:[%s3507_s14 + $0x20] sm:$0xff] %v697_v46  ;;  %v700_v50 = vadd.f32 %v3501_v32, %v699_v49 }
 0x10e   : > { %814 = vst [vmem:[%s3507_s14 + $0x38] sm:$0xff] %v708_v48  ;;  %v842_v52 = vpack.c.bf16 %v708_v48, %v705_v44 }
 0x10f   : > { %812 = vst [vmem:[%s3507_s14 + $0x28] sm:$0xff] %v700_v50  ;;  %v841_v51 = vpack.c.bf16 %v700_v50, %v697_v46  ;;  %v1151_v50 = vlaneseq }
 0x111   : > { %v3068_v53 = vpop.f32.mrb[8].mxu0  ;;  %3110 = vmatprep.mubr.bf16.mxu1 %v841_v51  ;;  %v3573_v51 = vand.u32 127, %v1151_v50 }
 0x112   : > { %v721_v54 = vadd.f32 %v3068_v53, %v3501_v32  ;;  %v712_v55 = vpop.f32.mrb[9].mxu0  ;;  %3111 = vmatmul.mubr.bf16.gmra.mrb[4].mxu1 %v842_v52  ;;  %v3578_v53 = vld [vmem:[%s4552_s5] ss:$0 sm:$0xff] }
 0x113   : > { %v713_v56 = vadd.f32 %v3501_v32, %v712_v55  ;;  %v3069_v57 = vpop.f32.mrb[10].mxu0  ;;  %4571 = vst [vmem:[#allocation2_spill] sm:$0xff] %v3573_v51  ;;  %vm1153_vm0 = vcmp.lt.s32.totalorder %v3573_v51, 16 }
 0x114   : > { %817 = vst [vmem:[%s3507_s14 + $0x50] sm:$0xff] %v721_v54  ;;  %v724_v58 = vadd.f32 %v3069_v57, %v3501_v32  ;;  %v715_v59 = vpop.f32.mrb[11].mxu0 }
 0x115   : > { %815 = vst [vmem:[%s3507_s14 + $0x40] sm:$0xff] %v713_v56  ;;  %v716_v60 = vadd.f32 %v3501_v32, %v715_v59 }
 0x116   : > { %818 = vst [vmem:[%s3507_s14 + $0x58] sm:$0xff] %v724_v58  ;;  %v844_v62 = vpack.c.bf16 %v724_v58, %v721_v54 }
 0x117   : > { %816 = vst [vmem:[%s3507_s14 + $0x48] sm:$0xff] %v716_v60  ;;  %v843_v61 = vpack.c.bf16 %v716_v60, %v713_v56 }
 0x119   : > { %v3072_v63 = vpop.f32.mrb[12].mxu0  ;;  %3114 = vmatprep.mubr.bf16.mxu1 %v843_v61 }
 0x11a   : > { %v737_v0 = vadd.f32 %v3072_v63, %v3501_v32  ;;  %v728_v1 = vpop.f32.mrb[13].mxu0  ;;  %3115 = vmatmul.mubr.bf16.gmra.mrb[8].mxu1 %v844_v62 }
 0x11b   : > { %v729_v2 = vadd.f32 %v3501_v32, %v728_v1  ;;  %v3073_v3 = vpop.f32.mrb[14].mxu0 }
 0x11c   : > { %821 = vst [vmem:[%s3507_s14 + $0x70] sm:$0xff] %v737_v0  ;;  %v740_v4 = vadd.f32 %v3073_v3, %v3501_v32  ;;  %v731_v5 = vpop.f32.mrb[15].mxu0 }
 0x11d   : > { %819 = vst [vmem:[%s3507_s14 + $0x60] sm:$0xff] %v729_v2  ;;  %v732_v6 = vadd.f32 %v3501_v32, %v731_v5 }
 0x11e   : > { %822 = vst [vmem:[%s3507_s14 + $0x78] sm:$0xff] %v740_v4  ;;  %v846_v8 = vpack.c.bf16 %v740_v4, %v737_v0 }
 0x11f   : > { %820 = vst [vmem:[%s3507_s14 + $0x68] sm:$0xff] %v732_v6  ;;  %v845_v7 = vpack.c.bf16 %v732_v6, %v729_v2 }
 0x121   : > { %v3076_v9 = vpop.f32.mrb[16].mxu0  ;;  %3118 = vmatprep.mubr.bf16.mxu1 %v845_v7 }
 0x122   : > { %v753_v10 = vadd.f32 %v3076_v9, %v3501_v32  ;;  %v744_v11 = vpop.f32.mrb[17].mxu0  ;;  %3119 = vmatmul.mubr.bf16.gmra.mrb[12].mxu1 %v846_v8 }
 0x123   : > { %v745_v12 = vadd.f32 %v3501_v32, %v744_v11  ;;  %v3077_v13 = vpop.f32.mrb[18].mxu0 }
 0x124   : > { %825 = vst [vmem:[%s3507_s14 + $0x90] sm:$0xff] %v753_v10  ;;  %v756_v14 = vadd.f32 %v3077_v13, %v3501_v32  ;;  %v747_v15 = vpop.f32.mrb[19].mxu0 }
 0x125   : > { %823 = vst [vmem:[%s3507_s14 + $0x80] sm:$0xff] %v745_v12  ;;  %v748_v16 = vadd.f32 %v3501_v32, %v747_v15 }
 0x126   : > { %826 = vst [vmem:[%s3507_s14 + $0x98] sm:$0xff] %v756_v14  ;;  %v848_v18 = vpack.c.bf16 %v756_v14, %v753_v10 }
 0x127   : > { %824 = vst [vmem:[%s3507_s14 + $0x88] sm:$0xff] %v748_v16  ;;  %v847_v17 = vpack.c.bf16 %v748_v16, %v745_v12 }
 0x129   : > { %v3080_v19 = vpop.f32.mrb[20].mxu0  ;;  %3122 = vmatprep.mubr.bf16.mxu1 %v847_v17 }
 0x12a   : > { %v769_v20 = vadd.f32 %v3080_v19, %v3501_v32  ;;  %v760_v21 = vpop.f32.mrb[21].mxu0  ;;  %3123 = vmatmul.mubr.bf16.gmra.mrb[16].mxu1 %v848_v18 }
 0x12b   : > { %v761_v22 = vadd.f32 %v3501_v32, %v760_v21  ;;  %v3081_v23 = vpop.f32.mrb[22].mxu0 }
 0x12c   : > { %829 = vst [vmem:[%s3507_s14 + $0xb0] sm:$0xff] %v769_v20  ;;  %v772_v24 = vadd.f32 %v3081_v23, %v3501_v32  ;;  %v763_v25 = vpop.f32.mrb[23].mxu0 }
 0x12d   : > { %827 = vst [vmem:[%s3507_s14 + $0xa0] sm:$0xff] %v761_v22  ;;  %v764_v26 = vadd.f32 %v3501_v32, %v763_v25 }
 0x12e   : > { %830 = vst [vmem:[%s3507_s14 + $0xb8] sm:$0xff] %v772_v24  ;;  %v850_v28 = vpack.c.bf16 %v772_v24, %v769_v20 }
 0x12f   : > { %828 = vst [vmem:[%s3507_s14 + $0xa8] sm:$0xff] %v764_v26  ;;  %v849_v27 = vpack.c.bf16 %v764_v26, %v761_v22 }
 0x131   : > { %v3084_v29 = vpop.f32.mrb[24].mxu0  ;;  %3126 = vmatprep.mubr.bf16.mxu1 %v849_v27 }
 0x132   : > { %v785_v30 = vadd.f32 %v3084_v29, %v3501_v32  ;;  %v776_v31 = vpop.f32.mrb[25].mxu0  ;;  %3127 = vmatmul.mubr.bf16.gmra.mrb[20].mxu1 %v850_v28 }
 0x133   : > { %v777_v33 = vadd.f32 %v3501_v32, %v776_v31  ;;  %v3085_v34 = vpop.f32.mrb[26].mxu0 }
 0x134   : > { %833 = vst [vmem:[%s3507_s14 + $0xd0] sm:$0xff] %v785_v30  ;;  %v788_v35 = vadd.f32 %v3085_v34, %v3501_v32  ;;  %v779_v36 = vpop.f32.mrb[27].mxu0 }
 0x135   : > { %831 = vst [vmem:[%s3507_s14 + $0xc0] sm:$0xff] %v777_v33  ;;  %v780_v37 = vadd.f32 %v3501_v32, %v779_v36 }
 0x136   : > { %834 = vst [vmem:[%s3507_s14 + $0xd8] sm:$0xff] %v788_v35  ;;  %v852_v39 = vpack.c.bf16 %v788_v35, %v785_v30 }
 0x137   : > { %832 = vst [vmem:[%s3507_s14 + $0xc8] sm:$0xff] %v780_v37  ;;  %v851_v38 = vpack.c.bf16 %v780_v37, %v777_v33 }
 0x139   : > { %v3088_v40 = vpop.f32.mrb[28].mxu0  ;;  %3130 = vmatprep.mubr.bf16.mxu1 %v851_v38 }
 0x13a   : > { %v801_v41 = vadd.f32 %v3088_v40, %v3501_v32  ;;  %v792_v42 = vpop.f32.mrb[29].mxu0  ;;  %3131 = vmatmul.mubr.bf16.gmra.mrb[24].mxu1 %v852_v39 }
 0x13b   : > { %v793_v43 = vadd.f32 %v3501_v32, %v792_v42  ;;  %v3089_v44 = vpop.f32.mrb[30].mxu0 }
 0x13c   : > { %837 = vst [vmem:[%s3507_s14 + $0xf0] sm:$0xff] %v801_v41  ;;  %v804_v45 = vadd.f32 %v3089_v44, %v3501_v32  ;;  %v795_v46 = vpop.f32.mrb[31].mxu0 }
 0x13d   : > { %835 = vst [vmem:[%s3507_s14 + $0xe0] sm:$0xff] %v793_v43  ;;  %v796_v47 = vadd.f32 %v3501_v32, %v795_v46 }
 0x13e   : > { %838 = vst [vmem:[%s3507_s14 + $0xf8] sm:$0xff] %v804_v45  ;;  %v854_v49 = vpack.c.bf16 %v804_v45, %v801_v41 }
 0x13f   : > { %836 = vst [vmem:[%s3507_s14 + $0xe8] sm:$0xff] %v796_v47  ;;  %v853_v48 = vpack.c.bf16 %v796_v47, %v793_v43 }
 0x141   : > { %3134 = vmatprep.mubr.bf16.mxu1 %v853_v48 }
 0x142   : > { %3135 = vmatmul.mubr.bf16.gmra.mrb[28].mxu1 %v854_v49 }
 0x1dd   : > { %v3108_v52 = vpop.f32.mrb[0].mxu1 }
 0x1de   : > { %v1083_v54 = vmul.f32 2.0, %v3108_v52  ;;  %v953_v55 = vpop.f32.mrb[1].mxu1 }
 0x1df   : > { %v1081_v56 = vmul.f32 2.0, %v953_v55  ;;  %v3109_v57 = vpop.f32.mrb[2].mxu1 }
 0x1e0   : > { %v1084_v32 = vmul.f32 2.0, %v3109_v57  ;;  %v956_v58 = vpop.f32.mrb[3].mxu1  ;;  %v1121_v59 = vsub.f32 %v3578_v53, %v1083_v54 }
 0x1e1   : > { %v1082_v60 = vmul.f32 2.0, %v956_v58  ;;  %v1119_v61 = vsub.f32 %v3578_v53, %v1081_v56 }
 0x1e2   : > { %v3585_v62 = vsel %vm1153_vm0, %v1121_v59, 1e+30  ;;  %v1122_v63 = vsub.f32 %v3578_v53, %v1084_v32 }
 0x1e3   : > { %1190 = vmin.xlane.f32.xlu1 %v3585_v62  ;;  %v3591_v0 = vsel %vm1153_vm0, %v1119_v61, 1e+30  ;;  %v1120_v1 = vsub.f32 %v3578_v53, %v1082_v60 }
 0x1e4   : > { %1186 = vmin.xlane.f32.xlu0 %v3591_v0  ;;  %v3597_v4 = vsel %vm1153_vm0, %v1122_v63, 1e+30 }
 0x1e5   : > { %v3112_v2 = vpop.f32.mrb[4].mxu1  ;;  %v3602_v8 = vsel %vm1153_vm0, %v1120_v1, 1e+30 }
 0x1e6   : > { %v969_v3 = vpop.f32.mrb[5].mxu1  ;;  %v1087_v5 = vmul.f32 2.0, %v3112_v2 }
 0x1e7   : > { %v1085_v6 = vmul.f32 2.0, %v969_v3  ;;  %1192 = vmin.xlane.f32.xlu1 %v3597_v4  ;;  %v3113_v7 = vpop.f32.mrb[6].mxu1 }
 0x1e8   : > { %1188 = vmin.xlane.f32.xlu0 %v3602_v8  ;;  %v972_v9 = vpop.f32.mrb[7].mxu1  ;;  %v1088_v10 = vmul.f32 2.0, %v3113_v7  ;;  %v1125_v15 = vsub.f32 %v3578_v53, %v1087_v5 }
 0x1e9   : > { %v1086_v11 = vmul.f32 2.0, %v972_v9  ;;  %v1123_v12 = vsub.f32 %v3578_v53, %v1085_v6 }
 0x1ea   : > { %v1126_v18 = vsub.f32 %v3578_v53, %v1088_v10  ;;  %v3621_v23 = vsel %vm1153_vm0, %v1125_v15, 1e+30 }
 0x1eb   : > { %v3608_v13 = vsel %vm1153_vm0, %v1123_v12, 1e+30  ;;  %v1124_v14 = vsub.f32 %v3578_v53, %v1086_v11 }
 0x1ec   : > { %1194 = vmin.xlane.f32.xlu0 %v3608_v13  ;;  %v3626_v27 = vsel %vm1153_vm0, %v1126_v18, 1e+30 }
 0x1ed   : > { %v3116_v16 = vpop.f32.mrb[8].mxu1  ;;  %v3615_v17 = vsel %vm1153_vm0, %v1124_v14, 1e+30 }
 0x1ee   : > { %1196 = vmin.xlane.f32.xlu1 %v3615_v17  ;;  %v985_v19 = vpop.f32.mrb[9].mxu1  ;;  %v1091_v20 = vmul.f32 2.0, %v3116_v16 }
 0x1ef   : > { %v1089_v21 = vmul.f32 2.0, %v985_v19  ;;  %v3117_v22 = vpop.f32.mrb[10].mxu1 }
 0x1f0   : > { %1198 = vmin.xlane.f32.xlu0 %v3621_v23  ;;  %v988_v24 = vpop.f32.mrb[11].mxu1  ;;  %v1092_v25 = vmul.f32 2.0, %v3117_v22  ;;  %v1129_v31 = vsub.f32 %v3578_v53, %v1091_v20 }
 0x1f1   : > { %v1090_v26 = vmul.f32 2.0, %v988_v24  ;;  %v1127_v28 = vsub.f32 %v3578_v53, %v1089_v21 }
 0x1f2   : > { %1200 = vmin.xlane.f32.xlu1 %v3626_v27  ;;  %v1130_v35 = vsub.f32 %v3578_v53, %v1092_v25  ;;  %v3645_v40 = vsel %vm1153_vm0, %v1129_v31, 1e+30 }
 0x1f3   : > { %v3632_v29 = vsel %vm1153_vm0, %v1127_v28, 1e+30  ;;  %v1128_v30 = vsub.f32 %v3578_v53, %v1090_v26 }
 0x1f4   : > { %1202 = vmin.xlane.f32.xlu0 %v3632_v29  ;;  %v3650_v44 = vsel %vm1153_vm0, %v1130_v35, 1e+30 }
 0x1f5   : > { %v3120_v33 = vpop.f32.mrb[12].mxu1  ;;  %v3639_v34 = vsel %vm1153_vm0, %v1128_v30, 1e+30 }
 0x1f6   : > { %1204 = vmin.xlane.f32.xlu1 %v3639_v34  ;;  %v1001_v36 = vpop.f32.mrb[13].mxu1  ;;  %v1095_v37 = vmul.f32 2.0, %v3120_v33 }
 0x1f7   : > { %v1093_v38 = vmul.f32 2.0, %v1001_v36  ;;  %v3121_v39 = vpop.f32.mrb[14].mxu1 }
 0x1f8   : > { %1206 = vmin.xlane.f32.xlu0 %v3645_v40  ;;  %v1004_v41 = vpop.f32.mrb[15].mxu1  ;;  %v1096_v42 = vmul.f32 2.0, %v3121_v39  ;;  %v1133_v48 = vsub.f32 %v3578_v53, %v1095_v37 }
 0x1f9   : > { %v1094_v43 = vmul.f32 2.0, %v1004_v41  ;;  %v1131_v45 = vsub.f32 %v3578_v53, %v1093_v38 }
 0x1fa   : > { %1208 = vmin.xlane.f32.xlu1 %v3650_v44  ;;  %v1134_v52 = vsub.f32 %v3578_v53, %v1096_v42  ;;  %v3669_v32 = vsel %vm1153_vm0, %v1133_v48, 1e+30 }
 0x1fb   : > { %v3656_v46 = vsel %vm1153_vm0, %v1131_v45, 1e+30  ;;  %v1132_v47 = vsub.f32 %v3578_v53, %v1094_v43 }
 0x1fc   : > { %1210 = vmin.xlane.f32.xlu0 %v3656_v46  ;;  %v3674_v61 = vsel %vm1153_vm0, %v1134_v52, 1e+30 }
 0x1fd   : > { %v3124_v49 = vpop.f32.mrb[16].mxu1  ;;  %v3663_v50 = vsel %vm1153_vm0, %v1132_v47, 1e+30 }
 0x1fe   : > { %1212 = vmin.xlane.f32.xlu1 %v3663_v50  ;;  %v1017_v54 = vpop.f32.mrb[17].mxu1  ;;  %v1099_v55 = vmul.f32 2.0, %v3124_v49 }
 0x1ff   : > { %v1097_v56 = vmul.f32 2.0, %v1017_v54  ;;  %v3125_v57 = vpop.f32.mrb[18].mxu1 }
 0x200   : > { %1214 = vmin.xlane.f32.xlu0 %v3669_v32  ;;  %v1020_v58 = vpop.f32.mrb[19].mxu1  ;;  %v1100_v59 = vmul.f32 2.0, %v3125_v57  ;;  %v1137_v3 = vsub.f32 %v3578_v53, %v1099_v55 }
 0x201   : > { %v1098_v60 = vmul.f32 2.0, %v1020_v58  ;;  %v1135_v63 = vsub.f32 %v3578_v53, %v1097_v56 }
 0x202   : > { %1216 = vmin.xlane.f32.xlu1 %v3674_v61  ;;  %v1138_v7 = vsub.f32 %v3578_v53, %v1100_v59  ;;  %v3693_v14 = vsel %vm1153_vm0, %v1137_v3, 1e+30 }
 0x203   : > { %v3680_v1 = vsel %vm1153_vm0, %v1135_v63, 1e+30  ;;  %v1136_v2 = vsub.f32 %v3578_v53, %v1098_v60 }
 0x204   : > { %1218 = vmin.xlane.f32.xlu0 %v3680_v1  ;;  %v3698_v19 = vsel %vm1153_vm0, %v1138_v7, 1e+30 }
 0x205   : > { %v3128_v5 = vpop.f32.mrb[20].mxu1  ;;  %v3687_v6 = vsel %vm1153_vm0, %v1136_v2, 1e+30 }
 0x206   : > { %1220 = vmin.xlane.f32.xlu1 %v3687_v6  ;;  %v1033_v9 = vpop.f32.mrb[21].mxu1  ;;  %v1103_v10 = vmul.f32 2.0, %v3128_v5 }
 0x207   : > { %v1101_v11 = vmul.f32 2.0, %v1033_v9  ;;  %v3129_v12 = vpop.f32.mrb[22].mxu1 }
 0x208   : > { %1222 = vmin.xlane.f32.xlu0 %v3693_v14  ;;  %v1036_v15 = vpop.f32.mrb[23].mxu1  ;;  %v1104_v16 = vmul.f32 2.0, %v3129_v12  ;;  %v1141_v24 = vsub.f32 %v3578_v53, %v1103_v10 }
 0x209   : > { %v1102_v18 = vmul.f32 2.0, %v1036_v15  ;;  %v1139_v20 = vsub.f32 %v3578_v53, %v1101_v11 }
 0x20a   : > { %1224 = vmin.xlane.f32.xlu1 %v3698_v19  ;;  %v1142_v28 = vsub.f32 %v3578_v53, %v1104_v16  ;;  %v3717_v36 = vsel %vm1153_vm0, %v1141_v24, 1e+30 }
 0x20b   : > { %v3704_v21 = vsel %vm1153_vm0, %v1139_v20, 1e+30  ;;  %v1140_v22 = vsub.f32 %v3578_v53, %v1102_v18 }
 0x20c   : > { %1226 = vmin.xlane.f32.xlu0 %v3704_v21  ;;  %v3722_v41 = vsel %vm1153_vm0, %v1142_v28, 1e+30 }
 0x20d   : > { %v3132_v25 = vpop.f32.mrb[24].mxu1  ;;  %v3711_v26 = vsel %vm1153_vm0, %v1140_v22, 1e+30 }
 0x20e   : > { %1228 = vmin.xlane.f32.xlu1 %v3711_v26  ;;  %v1049_v30 = vpop.f32.mrb[25].mxu1  ;;  %v1107_v31 = vmul.f32 2.0, %v3132_v25 }
 0x20f   : > { %v1105_v33 = vmul.f32 2.0, %v1049_v30  ;;  %v3133_v35 = vpop.f32.mrb[26].mxu1 }
 0x210   : > { %1230 = vmin.xlane.f32.xlu0 %v3717_v36  ;;  %v1052_v37 = vpop.f32.mrb[27].mxu1  ;;  %v1108_v38 = vmul.f32 2.0, %v3133_v35  ;;  %v1145_v47 = vsub.f32 %v3578_v53, %v1107_v31 }
 0x211   : > { %v1106_v39 = vmul.f32 2.0, %v1052_v37  ;;  %v1143_v42 = vsub.f32 %v3578_v53, %v1105_v33 }
 0x212   : > { %1232 = vmin.xlane.f32.xlu1 %v3722_v41  ;;  %v1146_v52 = vsub.f32 %v3578_v53, %v1108_v38  ;;  %v3741_v58 = vsel %vm1153_vm0, %v1145_v47, 1e+30 }
 0x213   : > { %v3728_v43 = vsel %vm1153_vm0, %v1143_v42, 1e+30  ;;  %v1144_v45 = vsub.f32 %v3578_v53, %v1106_v39 }
 0x214   : > { %1234 = vmin.xlane.f32.xlu0 %v3728_v43  ;;  %v3746_v2 = vsel %vm1153_vm0, %v1146_v52, 1e+30 }
 0x215   : > { %v3136_v48 = vpop.f32.mrb[28].mxu1  ;;  %v3735_v49 = vsel %vm1153_vm0, %v1144_v45, 1e+30 }
 0x216   : > { %1236 = vmin.xlane.f32.xlu1 %v3735_v49  ;;  %v1065_v54 = vpop.f32.mrb[29].mxu1  ;;  %v1111_v55 = vmul.f32 2.0, %v3136_v48 }
 0x217   : > { %v1109_v56 = vmul.f32 2.0, %v1065_v54  ;;  %v3137_v57 = vpop.f32.mrb[30].mxu1 }
 0x218   : > { %1238 = vmin.xlane.f32.xlu0 %v3741_v58  ;;  %v1068_v59 = vpop.f32.mrb[31].mxu1  ;;  %v1112_v60 = vmul.f32 2.0, %v3137_v57  ;;  %v1149_v9 = vsub.f32 %v3578_v53, %v1111_v55 }
 0x219   : > { %v1110_v63 = vmul.f32 2.0, %v1068_v59  ;;  %v1147_v3 = vsub.f32 %v3578_v53, %v1109_v56 }
 0x21a   : > { %1240 = vmin.xlane.f32.xlu1 %v3746_v2  ;;  %v1150_v11 = vsub.f32 %v3578_v53, %v1112_v60  ;;  %v3765_v12 = vsel %vm1153_vm0, %v1149_v9, 1e+30 }
 0x21b   : > { %v3752_v5 = vsel %vm1153_vm0, %v1147_v3, 1e+30  ;;  %v1148_v7 = vsub.f32 %v3578_v53, %v1110_v63 }
 0x21c   : > { %1242 = vmin.xlane.f32.xlu0 %v3752_v5  ;;  %v3770_v15 = vsel %vm1153_vm0, %v1150_v11, 1e+30 }
 0x21d   : > { %v3759_v10 = vsel %vm1153_vm0, %v1148_v7, 1e+30 }
 0x21e   : > { %1244 = vmin.xlane.f32.xlu1 %v3759_v10 }
 0x220   : > { %1246 = vmin.xlane.f32.xlu0 %v3765_v12 }
 0x222   : > { %1248 = vmin.xlane.f32.xlu1 %v3770_v15 }
 0x270   : > { %v1191_v16 = vpop.xlane.xlu1 %1190 }
 0x271   : > { %vm1252_vm1 = vcmp.eq.f32.partialorder %v3585_v62, %v1191_v16  ;;  %v1187_v18 = vpop.xlane.xlu0 %1186 }
 0x272   : > { %vm1250_vm2 = vcmp.eq.f32.partialorder %v3591_v0, %v1187_v18  ;;  %v3776_v53 = vsel %vm1252_vm1, %v3573_v51, 128 }
 0x273   : > { %v3779_v20 = vsel %vm1250_vm2, %v3573_v51, 128  ;;  %v1343_v62 = vshra.s32 %v3776_v53, 16 }
 0x274   : > { %v1193_v22 = vpop.xlane.xlu1 %1192  ;;  %v1315_v24 = vshra.s32 %v3779_v20, 16 }
 0x275   : > { %vm1253_vm3 = vcmp.eq.f32.partialorder %v3597_v4, %v1193_v22  ;;  %v1189_v25 = vpop.xlane.xlu0 %1188  ;;  %v3796_v4 = vcvt.s32.f32 %v1343_v62 }
 0x276   : > { %vm1251_vm4 = vcmp.eq.f32.partialorder %v3602_v8, %v1189_v25  ;;  %v3784_v28 = vcvt.s32.f32 %v1315_v24  ;;  %v3788_v0 = vsel %vm1253_vm3, %v3573_v51, 128 }
 0x277   : > { %v3791_v30 = vsel %vm1251_vm4, %v3573_v51, 128  ;;  %v1357_v35 = vshra.s32 %v3788_v0, 16 }
 0x278   : > { %1318 = vmin.xlane.f32.xlu0 %v3784_v28  ;;  %v1329_v31 = vshra.s32 %v3791_v30, 16 }
 0x279   : > { %v1195_v33 = vpop.xlane.xlu0 %1194  ;;  %v3814_v47 = vcvt.s32.f32 %v1357_v35 }
 0x27a   : > { %vm1254_vm5 = vcmp.eq.f32.partialorder %v3608_v13, %v1195_v33  ;;  %v3798_v8 = vcvt.s32.f32 %v1329_v31 }
 0x27b   : > { %v3802_v37 = vsel %vm1254_vm5, %v3573_v51, 128  ;;  %v1197_v38 = vpop.xlane.xlu1 %1196 }
 0x27c   : > { %vm1255_vm6 = vcmp.eq.f32.partialorder %v3615_v17, %v1197_v38  ;;  %1346 = vmin.xlane.f32.xlu0 %v3796_v4  ;;  %1332 = vmin.xlane.f32.xlu1 %v3798_v8  ;;  %v1371_v39 = vshra.s32 %v3802_v37, 16 }
 0x27d   : > { %v3809_v13 = vsel %vm1255_vm6, %v3573_v51, 128  ;;  %v1199_v42 = vpop.xlane.xlu0 %1198 }
 0x27e   : > { %vm1256_vm7 = vcmp.eq.f32.partialorder %v3621_v23, %v1199_v42  ;;  %v3812_v45 = vcvt.s32.f32 %v1371_v39  ;;  %v1385_v48 = vshra.s32 %v3809_v13, 16 }
 0x27f   : > { %v3818_v17 = vsel %vm1256_vm7, %v3573_v51, 128  ;;  %v1201_v52 = vpop.xlane.xlu1 %1200 }
 0x280   : > { %vm1257_vm8 = vcmp.eq.f32.partialorder %v3626_v27, %v1201_v52  ;;  %1374 = vmin.xlane.f32.xlu0 %v3812_v45  ;;  %1360 = vmin.xlane.f32.xlu1 %v3814_v47  ;;  %v1399_v54 = vshra.s32 %v3818_v17, 16  ;;  %v3830_v57 = vcvt.s32.f32 %v1385_v48 }
 0x281   : > { %v3825_v23 = vsel %vm1257_vm8, %v3573_v51, 128  ;;  %v1203_v55 = vpop.xlane.xlu0 %1202 }
 0x282   : > { %vm1258_vm9 = vcmp.eq.f32.partialorder %v3632_v29, %v1203_v55  ;;  %v3828_v56 = vcvt.s32.f32 %v1399_v54  ;;  %v1413_v59 = vshra.s32 %v3825_v23, 16 }
 0x283   : > { %v3834_v27 = vsel %vm1258_vm9, %v3573_v51, 128  ;;  %v1205_v60 = vpop.xlane.xlu1 %1204 }
 0x284   : > { %vm1259_vm10 = vcmp.eq.f32.partialorder %v3639_v34, %v1205_v60  ;;  %1402 = vmin.xlane.f32.xlu0 %v3828_v56  ;;  %1388 = vmin.xlane.f32.xlu1 %v3830_v57  ;;  %v1427_v63 = vshra.s32 %v3834_v27, 16  ;;  %v3846_v9 = vcvt.s32.f32 %v1413_v59 }
 0x285   : > { %v3841_v29 = vsel %vm1259_vm10, %v3573_v51, 128  ;;  %v1207_v3 = vpop.xlane.xlu0 %1206 }
 0x286   : > { %vm1260_vm11 = vcmp.eq.f32.partialorder %v3645_v40, %v1207_v3  ;;  %v3844_v7 = vcvt.s32.f32 %v1427_v63  ;;  %v1441_v11 = vshra.s32 %v3841_v29, 16 }
 0x287   : > { %v3850_v34 = vsel %vm1260_vm11, %v3573_v51, 128  ;;  %v1209_v16 = vpop.xlane.xlu1 %1208 }
 0x288   : > { %vm1261_vm12 = vcmp.eq.f32.partialorder %v3650_v44, %v1209_v16  ;;  %1430 = vmin.xlane.f32.xlu0 %v3844_v7  ;;  %1416 = vmin.xlane.f32.xlu1 %v3846_v9  ;;  %v1455_v18 = vshra.s32 %v3850_v34, 16  ;;  %v3862_v25 = vcvt.s32.f32 %v1441_v11 }
 0x289   : > { %v3857_v40 = vsel %vm1261_vm12, %v3573_v51, 128  ;;  %v1211_v22 = vpop.xlane.xlu0 %1210 }
 0x28a   : > { %vm1262_vm13 = vcmp.eq.f32.partialorder %v3656_v46, %v1211_v22  ;;  %v3860_v24 = vcvt.s32.f32 %v1455_v18  ;;  %v1469_v62 = vshra.s32 %v3857_v40, 16 }
 0x28b   : > { %v3866_v44 = vsel %vm1262_vm13, %v3573_v51, 128  ;;  %v1213_v31 = vpop.xlane.xlu1 %1212 }
 0x28c   : > { %vm1263_vm14 = vcmp.eq.f32.partialorder %v3663_v50, %v1213_v31  ;;  %1458 = vmin.xlane.f32.xlu0 %v3860_v24  ;;  %1444 = vmin.xlane.f32.xlu1 %v3862_v25  ;;  %v1483_v33 = vshra.s32 %v3866_v44, 16  ;;  %v3878_v39 = vcvt.s32.f32 %v1469_v62 }
 0x28d   : > { %v3873_v46 = vsel %vm1263_vm14, %v3573_v51, 128  ;;  %v1215_v35 = vpop.xlane.xlu0 %1214 }
 0x28e   : > { %vm1264_vm15 = vcmp.eq.f32.partialorder %v3669_v32, %v1215_v35  ;;  %v3876_v38 = vcvt.s32.f32 %v1483_v33  ;;  %v1497_v42 = vshra.s32 %v3873_v46, 16 }
 0x28f   : > { %v3882_v50 = vsel %vm1264_vm15, %v3573_v51, 128  ;;  %v1217_v48 = vpop.xlane.xlu1 %1216 }
 0x290   : > { %vm1265_vm0 = vcmp.eq.f32.partialorder %v3674_v61, %v1217_v48  ;;  %1486 = vmin.xlane.f32.xlu0 %v3876_v38  ;;  %1472 = vmin.xlane.f32.xlu1 %v3878_v39  ;;  %v1511_v52 = vshra.s32 %v3882_v50, 16  ;;  %v3894_v59 = vcvt.s32.f32 %v1497_v42 }
 0x291   : > { %v3889_v32 = vsel %vm1265_vm0, %v3573_v51, 128  ;;  %v1219_v54 = vpop.xlane.xlu0 %1218 }
 0x292   : > { %vm1266_vm1 = vcmp.eq.f32.partialorder %v3680_v1, %v1219_v54  ;;  %v3892_v55 = vcvt.s32.f32 %v1511_v52  ;;  %v1525_v60 = vshra.s32 %v3889_v32, 16 }
 0x293   : > { %v3898_v61 = vsel %vm1266_vm1, %v3573_v51, 128  ;;  %v1221_v63 = vpop.xlane.xlu1 %1220 }
 0x294   : > { %vm1267_vm2 = vcmp.eq.f32.partialorder %v3687_v6, %v1221_v63  ;;  %1514 = vmin.xlane.f32.xlu0 %v3892_v55  ;;  %1500 = vmin.xlane.f32.xlu1 %v3894_v59  ;;  %v1539_v3 = vshra.s32 %v3898_v61, 16  ;;  %v3910_v18 = vcvt.s32.f32 %v1525_v60 }
 0x295   : > { %v3905_v1 = vsel %vm1267_vm2, %v3573_v51, 128  ;;  %v1223_v11 = vpop.xlane.xlu0 %1222 }
 0x296   : > { %vm1268_vm3 = vcmp.eq.f32.partialorder %v3693_v14, %v1223_v11  ;;  %v3908_v16 = vcvt.s32.f32 %v1539_v3  ;;  %v1553_v22 = vshra.s32 %v3905_v1, 16 }
 0x297   : > { %v3914_v6 = vsel %vm1268_vm3, %v3573_v51, 128  ;;  %v1225_v62 = vpop.xlane.xlu1 %1224 }
 0x298   : > { %vm1269_vm4 = vcmp.eq.f32.partialorder %v3698_v19, %v1225_v62  ;;  %1542 = vmin.xlane.f32.xlu0 %v3908_v16  ;;  %1528 = vmin.xlane.f32.xlu1 %v3910_v18  ;;  %v1567_v31 = vshra.s32 %v3914_v6, 16  ;;  %v3926_v42 = vcvt.s32.f32 %v1553_v22 }
 0x299   : > { %v3921_v14 = vsel %vm1269_vm4, %v3573_v51, 128  ;;  %v1227_v33 = vpop.xlane.xlu0 %1226 }
 0x29a   : > { %vm1270_vm5 = vcmp.eq.f32.partialorder %v3704_v21, %v1227_v33  ;;  %v3924_v35 = vcvt.s32.f32 %v1567_v31  ;;  %v1581_v48 = vshra.s32 %v3921_v14, 16 }
 0x29b   : > { %v3930_v19 = vsel %vm1270_vm5, %v3573_v51, 128  ;;  %v1229_v52 = vpop.xlane.xlu1 %1228 }
 0x29c   : > { %vm1271_vm6 = vcmp.eq.f32.partialorder %v3711_v26, %v1229_v52  ;;  %1570 = vmin.xlane.f32.xlu0 %v3924_v35  ;;  %1556 = vmin.xlane.f32.xlu1 %v3926_v42  ;;  %v1595_v54 = vshra.s32 %v3930_v19, 16  ;;  %v3942_v3 = vcvt.s32.f32 %v1581_v48 }
 0x29d   : > { %v3937_v21 = vsel %vm1271_vm6, %v3573_v51, 128  ;;  %v1231_v60 = vpop.xlane.xlu0 %1230 }
 0x29e   : > { %vm1272_vm7 = vcmp.eq.f32.partialorder %v3717_v36, %v1231_v60  ;;  %v3940_v63 = vcvt.s32.f32 %v1595_v54  ;;  %v1609_v11 = vshra.s32 %v3937_v21, 16 }
 0x29f   : > { %v3946_v26 = vsel %vm1272_vm7, %v3573_v51, 128  ;;  %v1233_v22 = vpop.xlane.xlu1 %1232 }
 0x2a0   : > { %vm1273_vm8 = vcmp.eq.f32.partialorder %v3722_v41, %v1233_v22  ;;  %1598 = vmin.xlane.f32.xlu0 %v3940_v63  ;;  %1584 = vmin.xlane.f32.xlu1 %v3942_v3  ;;  %v1623_v62 = vshra.s32 %v3946_v26, 16  ;;  %v3958_v48 = vcvt.s32.f32 %v1609_v11 }
 0x2a1   : > { %v3953_v36 = vsel %vm1273_vm8, %v3573_v51, 128  ;;  %v1235_v31 = vpop.xlane.xlu0 %1234 }
 0x2a2   : > { %vm1274_vm9 = vcmp.eq.f32.partialorder %v3728_v43, %v1235_v31  ;;  %v3956_v33 = vcvt.s32.f32 %v1623_v62  ;;  %4572 = vst [vmem:[#allocation3_spill] sm:$0xff] %v3958_v48  ;;  %v1637_v52 = vshra.s32 %v3953_v36, 16 }
 0x2a3   : > { %v3962_v41 = vsel %vm1274_vm9, %v3573_v51, 128  ;;  %v1237_v54 = vpop.xlane.xlu1 %1236 }
 0x2a4   : > { %vm1275_vm10 = vcmp.eq.f32.partialorder %v3735_v49, %v1237_v54  ;;  %1626 = vmin.xlane.f32.xlu0 %v3956_v33  ;;  %1612 = vmin.xlane.f32.xlu1 %v3958_v48  ;;  %v1651_v60 = vshra.s32 %v3962_v41, 16  ;;  %v3974_v62 = vcvt.s32.f32 %v1637_v52 }
 0x2a5   : > { %v3969_v43 = vsel %vm1275_vm10, %v3573_v51, 128  ;;  %v1239_v22 = vpop.xlane.xlu0 %1238 }
 0x2a6   : > { %4573 = vst [vmem:[#allocation4_spill] sm:$0xff] %v3969_v43  ;;  %vm1276_vm11 = vcmp.eq.f32.partialorder %v3741_v58, %v1239_v22  ;;  %v3972_v11 = vcvt.s32.f32 %v1651_v60  ;;  %4574 = vst [vmem:[#allocation5_spill] sm:$0xff] %v3974_v62  ;;  %v1665_v31 = vshra.s32 %v3969_v43, 16 }
 0x2a7   : > { %v3978_v49 = vsel %vm1276_vm11, %v3573_v51, 128  ;;  %v1241_v54 = vpop.xlane.xlu1 %1240 }
 0x2a8   : > { %vm1277_vm12 = vcmp.eq.f32.partialorder %v3746_v2, %v1241_v54  ;;  %1654 = vmin.xlane.f32.xlu0 %v3972_v11  ;;  %1640 = vmin.xlane.f32.xlu1 %v3974_v62  ;;  %v1679_v48 = vshra.s32 %v3978_v49, 16  ;;  %v3990_v22 = vcvt.s32.f32 %v1665_v31 }
 0x2a9   : > { %v3985_v58 = vsel %vm1277_vm12, %v3573_v51, 128  ;;  %v1243_v60 = vpop.xlane.xlu0 %1242 }
 0x2aa   : > { %4575 = vst [vmem:[#allocation6_spill] sm:$0xff] %v3985_v58  ;;  %vm1278_vm13 = vcmp.eq.f32.partialorder %v3752_v5, %v1243_v60  ;;  %v3988_v52 = vcvt.s32.f32 %v1679_v48  ;;  %4576 = vst [vmem:[#allocation7_spill] sm:$0xff] %v3990_v22  ;;  %v1693_v43 = vshra.s32 %v3985_v58, 16 }
 0x2ab   : > { %v3994_v2 = vsel %vm1278_vm13, %v3573_v51, 128  ;;  %v1245_v54 = vpop.xlane.xlu1 %1244 }
 0x2ac   : > { %vm1279_vm14 = vcmp.eq.f32.partialorder %v3759_v10, %v1245_v54  ;;  %1682 = vmin.xlane.f32.xlu0 %v3988_v52  ;;  %1668 = vmin.xlane.f32.xlu1 %v3990_v22  ;;  %v1707_v62 = vshra.s32 %v3994_v2, 16  ;;  %v4006_v60 = vcvt.s32.f32 %v1693_v43 }
 0x2ad   : > { %v4001_v5 = vsel %vm1279_vm14, %v3573_v51, 128  ;;  %v1247_v48 = vpop.xlane.xlu0 %1246 }
 0x2ae   : > { %vm1280_vm15 = vcmp.eq.f32.partialorder %v3765_v12, %v1247_v48  ;;  %v4004_v31 = vcvt.s32.f32 %v1707_v62  ;;  %4577 = vst [vmem:[#allocation8_spill] sm:$0xff] %v4006_v60  ;;  %v1721_v58 = vshra.s32 %v4001_v5, 16 }
 0x2af   : > { %v4010_v10 = vsel %vm1280_vm15, %v3573_v51, 128  ;;  %v1249_v54 = vpop.xlane.xlu1 %1248 }
 0x2b0   : > { %vm1281_vm0 = vcmp.eq.f32.partialorder %v3770_v15, %v1249_v54  ;;  %1710 = vmin.xlane.f32.xlu0 %v4004_v31  ;;  %1696 = vmin.xlane.f32.xlu1 %v4006_v60  ;;  %v1735_v22 = vshra.s32 %v4010_v10, 16  ;;  %v4021_v43 = vcvt.s32.f32 %v1721_v58  ;;  %v1858_v54 = vld [vmem:[%s4550_s3] sm:$0xff]  ;;  %v1860_v58 = vld [vmem:[%s4550_s3 + $0x10] sm:$0xff] }
 0x2b1   : > { %v4017_v12 = vsel %vm1281_vm0, %v3573_v51, 128 }
 0x2b2   : > { %4578 = vst [vmem:[#allocation9_spill] sm:$0xff] %v4017_v12  ;;  %v4019_v62 = vcvt.s32.f32 %v1735_v22  ;;  %4580 = vst [vmem:[#allocation11_spill] sm:$0xff] %v4021_v43  ;;  %v1749_v48 = vshra.s32 %v4017_v12, 16  ;;  %v1859_v22 = vld [vmem:[%s4550_s3 + $0x8] sm:$0xff] }
 0x2b3   : > { %v3218_v51 = vpack.c.bf16 %v1859_v22, %v1858_v54  ;;  %v1864_v54 = vld [vmem:[%s4550_s3 + $0x30] sm:$0xff]  ;;  %v1865_v22 = vld [vmem:[%s4550_s3 + $0x38] sm:$0xff] }
 0x2b4   : > { %4579 = vst [vmem:[#allocation10_spill] sm:$0xff] %v4019_v62  ;;  %1738 = vmin.xlane.f32.xlu0 %v4019_v62  ;;  %1724 = vmin.xlane.f32.xlu1 %v4021_v43  ;;  %v4026_v15 = vcvt.s32.f32 %v1749_v48  ;;  %v1861_v48 = vld [vmem:[%s4550_s3 + $0x18] sm:$0xff]  ;;  %v1863_v62 = vld [vmem:[%s4550_s3 + $0x28] sm:$0xff] }
 0x2b5   : > { %v3222_v43 = vpack.c.bf16 %v1861_v48, %v1860_v58  ;;  %3219 = vmatprep.subr.bf16.mxu0 %v3218_v51  ;;  %3250 = vmatprep.subr.bf16.mxu1 %v3218_v51  ;;  %v3230_v58 = vpack.c.bf16 %v1865_v22, %v1864_v54  ;;  %v1869_v48 = vld [vmem:[%s4550_s3 + $0x58] sm:$0xff]  ;;  %v1871_v22 = vld [vmem:[%s4550_s3 + $0x68] sm:$0xff] }
 0x2b6   : > { %4581 = vst [vmem:[#allocation12_spill] sm:$0xff] %v4026_v15  ;;  %3221 = vmatpush3.bf16.msra.mxu0 %v3218_v51  ;;  %3258 = vmatpush3.bf16.msra.mxu1 %v3218_v51  ;;  %v1866_v51 = vld [vmem:[%s4550_s3 + $0x40] sm:$0xff] }
 0x2b7   : > { %3223 = vmatprep.subr.bf16.mxu0 %v3222_v43  ;;  %3251 = vmatprep.subr.bf16.mxu1 %v3222_v43 }
 0x2b8   : > { %1752 = vmin.xlane.f32.xlu1 %v4026_v15  ;;  %v1862_v15 = vld [vmem:[%s4550_s3 + $0x20] sm:$0xff] }
 0x2b9   : > { %v3226_v12 = vpack.c.bf16 %v1863_v62, %v1862_v15  ;;  %v1867_v62 = vld [vmem:[%s4550_s3 + $0x48] sm:$0xff] }
 0x2ba   : > { %3225 = vmatpush3.bf16.msra.mxu0 %v3222_v43  ;;  %3259 = vmatpush3.bf16.msra.mxu1 %v3222_v43  ;;  %v3234_v15 = vpack.c.bf16 %v1867_v62, %v1866_v51  ;;  %v1868_v43 = vld [vmem:[%s4550_s3 + $0x50] sm:$0xff]  ;;  %v1342_v62 = vand.u32 65535, %v3776_v53 }
 0x2bb   : > { %3227 = vmatprep.subr.bf16.mxu0 %v3226_v12  ;;  %3252 = vmatprep.subr.bf16.mxu1 %v3226_v12  ;;  %v3238_v54 = vpack.c.bf16 %v1869_v48, %v1868_v43  ;;  %v1328_v43 = vand.u32 65535, %v3791_v30 }
 0x2bd   : > { %v1330_v53 = vcvt.s32.f32 %v1328_v43 }
 0x2be   : > { %3229 = vmatpush3.bf16.msra.mxu0 %v3226_v12  ;;  %3260 = vmatpush3.bf16.msra.mxu1 %v3226_v12  ;;  %v1870_v12 = vld [vmem:[%s4550_s3 + $0x60] sm:$0xff] }
 0x2bf   : > { %3231 = vmatprep.subr.bf16.mxu0 %v3230_v58  ;;  %3253 = vmatprep.subr.bf16.mxu1 %v3230_v58  ;;  %v3242_v51 = vpack.c.bf16 %v1871_v22, %v1870_v12  ;;  %v1370_v12 = vand.u32 65535, %v3802_v37  ;;  %v1398_v37 = vand.u32 65535, %v3818_v17  ;;  %v1426_v17 = vand.u32 65535, %v3834_v27 }
 0x2c0   : > { %v1454_v27 = vand.u32 65535, %v3850_v34  ;;  %v1482_v34 = vand.u32 65535, %v3866_v44 }
 0x2c2   : > { %3233 = vmatpush3.bf16.msra.mxu0 %v3230_v58  ;;  %3261 = vmatpush3.bf16.msra.mxu1 %v3230_v58  ;;  %v1314_v58 = vand.u32 65535, %v3779_v20  ;;  %v1344_v20 = vcvt.s32.f32 %v1342_v62  ;;  %v1372_v62 = vcvt.s32.f32 %v1370_v12  ;;  %v1400_v12 = vcvt.s32.f32 %v1398_v37 }
 0x2c3   : > { %3235 = vmatprep.subr.bf16.mxu0 %v3234_v15  ;;  %3254 = vmatprep.subr.bf16.mxu1 %v3234_v15 }
 0x2c4   : > { %v1316_v60 = vcvt.s32.f32 %v1314_v58 }
 0x2c6   : > { %3237 = vmatpush3.bf16.msra.mxu0 %v3234_v15  ;;  %3262 = vmatpush3.bf16.msra.mxu1 %v3234_v15 }
 0x2c7   : > { %3239 = vmatprep.subr.bf16.mxu0 %v3238_v54  ;;  %3255 = vmatprep.subr.bf16.mxu1 %v3238_v54 }
 0x2ca   : > { %3241 = vmatpush3.bf16.msra.mxu0 %v3238_v54  ;;  %3263 = vmatpush3.bf16.msra.mxu1 %v3238_v54  ;;  %v1356_v54 = vand.u32 65535, %v3788_v0  ;;  %v1384_v0 = vand.u32 65535, %v3809_v13  ;;  %v1412_v13 = vand.u32 65535, %v3825_v23  ;;  %v1440_v23 = vand.u32 65535, %v3841_v29 }
 0x2cb   : > { %3243 = vmatprep.subr.bf16.mxu0 %v3242_v51  ;;  %3256 = vmatprep.subr.bf16.mxu1 %v3242_v51  ;;  %v1468_v29 = vand.u32 65535, %v3857_v40 }
 0x2cc   : > { %v1358_v43 = vcvt.s32.f32 %v1356_v54  ;;  %v1386_v54 = vcvt.s32.f32 %v1384_v0  ;;  %v1414_v0 = vcvt.s32.f32 %v1412_v13  ;;  %v1496_v13 = vand.u32 65535, %v3873_v46 }
 0x2cd   : > { %v1524_v46 = vand.u32 65535, %v3889_v32  ;;  %v1552_v32 = vand.u32 65535, %v3905_v1  ;;  %v1580_v1 = vand.u32 65535, %v3921_v14  ;;  %v1608_v14 = vand.u32 65535, %v3937_v21 }
 0x2ce   : > { %3245 = vmatpush3.bf16.msra.mxu0 %v3242_v51  ;;  %3264 = vmatpush3.bf16.msra.mxu1 %v3242_v51  ;;  %v1636_v21 = vand.u32 65535, %v3953_v36 }
 0x305   : > { %v4074_v48 = vpop.xlane.xlu0 %1318 }
 0x306   : > { %vm1320_vm1 = vcmp.eq.f32.partialorder %v3784_v28, %v4074_v48 }
 0x307   : > { %v1321_v15 = vsel %vm1320_vm1, %v1316_v60, inf }
 0x308   : > { %1322 = vmin.xlane.f32.xlu0 %v1321_v15 }
 0x309   : > { %v4080_v22 = vpop.xlane.xlu0 %1346  ;;  %v4082_v51 = vpop.xlane.xlu1 %1332 }
 0x30a   : > { %vm1348_vm2 = vcmp.eq.f32.partialorder %v3796_v4, %v4080_v22  ;;  %vm1334_vm3 = vcmp.eq.f32.partialorder %v3798_v8, %v4082_v51 }
 0x30b   : > { %v1349_v30 = vsel %vm1348_vm2, %v1344_v20, inf  ;;  %v1335_v28 = vsel %vm1334_vm3, %v1330_v53, inf }
 0x30c   : > { %1350 = vmin.xlane.f32.xlu0 %v1349_v30  ;;  %1336 = vmin.xlane.f32.xlu1 %v1335_v28  ;;  %v1428_v28 = vcvt.s32.f32 %v1426_v17  ;;  %v1510_v17 = vand.u32 65535, %v3882_v50  ;;  %v1538_v50 = vand.u32 65535, %v3898_v61  ;;  %v1566_v61 = vand.u32 65535, %v3914_v6 }
 0x30d   : > { %v4090_v60 = vpop.xlane.xlu0 %1374  ;;  %v4092_v58 = vpop.xlane.xlu1 %1360  ;;  %v1594_v6 = vand.u32 65535, %v3930_v19  ;;  %v1622_v19 = vand.u32 65535, %v3946_v26  ;;  %v1650_v26 = vand.u32 65535, %v3962_v41  ;;  %v1678_v41 = vand.u32 65535, %v3978_v49 }
 0x30e   : > { %vm1376_vm4 = vcmp.eq.f32.partialorder %v3812_v45, %v4090_v60  ;;  %vm1362_vm5 = vcmp.eq.f32.partialorder %v3814_v47, %v4092_v58  ;;  %v1706_v49 = vand.u32 65535, %v3994_v2  ;;  %v1734_v2 = vand.u32 65535, %v4010_v10 }
 0x30f   : > { %v1377_v4 = vsel %vm1376_vm4, %v1372_v62, inf  ;;  %v1363_v8 = vsel %vm1362_vm5, %v1358_v43, inf  ;;  %v1456_v43 = vcvt.s32.f32 %v1454_v27 }
 0x310   : > { %1378 = vmin.xlane.f32.xlu0 %v1377_v4  ;;  %1364 = vmin.xlane.f32.xlu1 %v1363_v8  ;;  %v1442_v4 = vcvt.s32.f32 %v1440_v23 }
 0x311   : > { %v4100_v15 = vpop.xlane.xlu0 %1402  ;;  %v4102_v20 = vpop.xlane.xlu1 %1388 }
 0x312   : > { %vm1404_vm6 = vcmp.eq.f32.partialorder %v3828_v56, %v4100_v15  ;;  %vm1390_vm7 = vcmp.eq.f32.partialorder %v3830_v57, %v4102_v20 }
 0x313   : > { %v1405_v45 = vsel %vm1404_vm6, %v1400_v12, inf  ;;  %v1391_v47 = vsel %vm1390_vm7, %v1386_v54, inf }
 0x314   : > { %1406 = vmin.xlane.f32.xlu0 %v1405_v45  ;;  %1392 = vmin.xlane.f32.xlu1 %v1391_v47  ;;  %v1484_v45 = vcvt.s32.f32 %v1482_v34  ;;  %v1470_v47 = vcvt.s32.f32 %v1468_v29  ;;  %v1540_v29 = vcvt.s32.f32 %v1538_v50  ;;  %v1526_v34 = vcvt.s32.f32 %v1524_v46  ;;  %v4583_v46 = vld [vmem:[#allocation4_spill] sm:$0xff] }
 0x315   : > { %v4110_v53 = vpop.xlane.xlu0 %1430  ;;  %v4112_v30 = vpop.xlane.xlu1 %1416  ;;  %v1664_v36 = vand.u32 65535, %v4583_v46  ;;  %v4591_v46 = vld [vmem:[#allocation12_spill] sm:$0xff] }
 0x316   : > { %vm1432_vm8 = vcmp.eq.f32.partialorder %v3844_v7, %v4110_v53  ;;  %vm1418_vm9 = vcmp.eq.f32.partialorder %v3846_v9, %v4112_v30  ;;  %v1872_v7 = vld [vmem:[%s4550_s3 + $0x70] sm:$0xff]  ;;  %v1873_v9 = vld [vmem:[%s4550_s3 + $0x78] sm:$0xff] }
 0x317   : > { %v1433_v56 = vsel %vm1432_vm8, %v1428_v28, inf  ;;  %v1419_v57 = vsel %vm1418_vm9, %v1414_v0, inf  ;;  %v3246_v8 = vpack.c.bf16 %v1873_v9, %v1872_v7  ;;  %v1512_v28 = vcvt.s32.f32 %v1510_v17 }
 0x318   : > { %1434 = vmin.xlane.f32.xlu0 %v1433_v56  ;;  %1420 = vmin.xlane.f32.xlu1 %v1419_v57  ;;  %v1498_v0 = vcvt.s32.f32 %v1496_v13  ;;  %v1568_v7 = vcvt.s32.f32 %v1566_v61  ;;  %v1554_v9 = vcvt.s32.f32 %v1552_v32  ;;  %v1582_v13 = vcvt.s32.f32 %v1580_v1  ;;  %v4585_v61 = vld [vmem:[#allocation6_spill] sm:$0xff] }
 0x319   : > { %v4120_v37 = vpop.xlane.xlu0 %1458  ;;  %v4122_v62 = vpop.xlane.xlu1 %1444  ;;  %3247 = vmatprep.subr.bf16.mxu0 %v3246_v8  ;;  %3257 = vmatprep.subr.bf16.mxu1 %v3246_v8  ;;  %v1666_v1 = vcvt.s32.f32 %v1664_v36 }
 0x31a   : > { %vm1460_vm10 = vcmp.eq.f32.partialorder %v3860_v24, %v4120_v37  ;;  %vm1446_vm11 = vcmp.eq.f32.partialorder %v3862_v25, %v4122_v62  ;;  %3249 = vmatpush3.bf16.msra.mxu0 %v3246_v8  ;;  %3265 = vmatpush3.bf16.msra.mxu1 %v3246_v8  ;;  %v1596_v8 = vcvt.s32.f32 %v1594_v6 }
 0x31b   : > { %v1461_v40 = vsel %vm1460_vm10, %v1456_v43, inf  ;;  %v1447_v44 = vsel %vm1446_vm11, %v1442_v4, inf }
 0x31c   : > { %1462 = vmin.xlane.f32.xlu0 %v1461_v40  ;;  %1448 = vmin.xlane.f32.xlu1 %v1447_v44 }
 0x31d   : > { %v4136_v12 = vpop.xlane.xlu0 %1486  ;;  %v4138_v54 = vpop.xlane.xlu1 %1472 }
 0x31e   : > { %vm1488_vm12 = vcmp.eq.f32.partialorder %v3876_v38, %v4136_v12  ;;  %vm1474_vm13 = vcmp.eq.f32.partialorder %v3878_v39, %v4138_v54 }
 0x31f   : > { %v1489_v24 = vsel %vm1488_vm12, %v1484_v45, inf  ;;  %v1475_v25 = vsel %vm1474_vm13, %v1470_v47, inf  ;;  %v1624_v47 = vcvt.s32.f32 %v1622_v19 }
 0x320   : > { %1490 = vmin.xlane.f32.xlu0 %v1489_v24  ;;  %1476 = vmin.xlane.f32.xlu1 %v1475_v25  ;;  %v1610_v24 = vcvt.s32.f32 %v1608_v14  ;;  %v1708_v14 = vcvt.s32.f32 %v1706_v49  ;;  %v1381_v49 = vcvt.f32.s32 %v4090_v60 }
 0x321   : > { %v4146_v23 = vpop.xlane.xlu0 %1514  ;;  %v4148_v27 = vpop.xlane.xlu1 %1500 }
 0x322   : > { %vm1516_vm14 = vcmp.eq.f32.partialorder %v3892_v55, %v4146_v23  ;;  %vm1502_vm15 = vcmp.eq.f32.partialorder %v3894_v59, %v4148_v27 }
 0x323   : > { %v1517_v38 = vsel %vm1516_vm14, %v1512_v28, inf  ;;  %v1503_v39 = vsel %vm1502_vm15, %v1498_v0, inf  ;;  %v1652_v0 = vcvt.s32.f32 %v1650_v26 }
 0x324   : > { %1518 = vmin.xlane.f32.xlu0 %v1517_v38  ;;  %1504 = vmin.xlane.f32.xlu1 %v1503_v39  ;;  %v1638_v38 = vcvt.s32.f32 %v1636_v21  ;;  %v1736_v21 = vcvt.s32.f32 %v1734_v2  ;;  %v1382_v2 = vshll.u32 %v1381_v49, 16  ;;  %v1465_v49 = vcvt.f32.s32 %v4120_v37 }
 0x325   : > { %v4156_v56 = vpop.xlane.xlu0 %1542  ;;  %v4158_v57 = vpop.xlane.xlu1 %1528  ;;  %v1493_v37 = vcvt.f32.s32 %v4136_v12 }
 0x326   : > { %vm1544_vm0 = vcmp.eq.f32.partialorder %v3908_v16, %v4156_v56  ;;  %vm1530_vm1 = vcmp.eq.f32.partialorder %v3910_v18, %v4158_v57 }
 0x327   : > { %v1545_v55 = vsel %vm1544_vm0, %v1540_v29, inf  ;;  %v1531_v59 = vsel %vm1530_vm1, %v1526_v34, inf  ;;  %v1692_v29 = vand.u32 65535, %v4585_v61  ;;  %vm2291_vm1 = vcmask 7168  }
 0x328   : > { %1546 = vmin.xlane.f32.xlu0 %v1545_v55  ;;  %1532 = vmin.xlane.f32.xlu1 %v1531_v59  ;;  %v1680_v59 = vcvt.s32.f32 %v1678_v41  ;;  %v1325_v41 = vcvt.f32.s32 %v4074_v48  ;;  %v1367_v48 = vcvt.f32.s32 %v4092_v58 }
 0x329   : > { %v4166_v43 = vpop.xlane.xlu0 %1570  ;;  %v4168_v4 = vpop.xlane.xlu1 %1556  ;;  %v1694_v19 = vcvt.s32.f32 %v1692_v29 }
 0x32a   : > { %vm1572_vm2 = vcmp.eq.f32.partialorder %v3924_v35, %v4166_v43  ;;  %vm1558_vm3 = vcmp.eq.f32.partialorder %v3926_v42, %v4168_v4  ;;  %v1368_v58 = vshll.u32 %v1367_v48, 16  ;;  %v1451_v48 = vcvt.f32.s32 %v4122_v62 }
 0x32b   : > { %v1573_v16 = vsel %vm1572_vm2, %v1568_v7, inf  ;;  %v1559_v18 = vsel %vm1558_vm3, %v1554_v9, inf  ;;  %v1720_v9 = vand.u32 65535, %v4001_v5 }
 0x32c   : > { %1574 = vmin.xlane.f32.xlu0 %v1573_v16  ;;  %1560 = vmin.xlane.f32.xlu1 %v1559_v18 }
 0x32d   : > { %v4176_v40 = vpop.xlane.xlu0 %1598  ;;  %v4178_v44 = vpop.xlane.xlu1 %1584  ;;  %v1722_v26 = vcvt.s32.f32 %v1720_v9 }
 0x32e   : > { %vm1600_vm4 = vcmp.eq.f32.partialorder %v3940_v63, %v4176_v40  ;;  %vm1586_vm5 = vcmp.eq.f32.partialorder %v3942_v3, %v4178_v44  ;;  %v4582_v63 = vld [vmem:[#allocation3_spill] sm:$0xff] }
 0x32f   : > { %v1601_v35 = vsel %vm1600_vm4, %v1596_v8, inf  ;;  %v1587_v42 = vsel %vm1586_vm5, %v1582_v13, inf }
 0x330   : > { %1602 = vmin.xlane.f32.xlu0 %v1601_v35  ;;  %1588 = vmin.xlane.f32.xlu1 %v1587_v42  ;;  %v4588_v35 = vld [vmem:[#allocation9_spill] sm:$0xff] }
 0x331   : > { %v4186_v17 = vpop.xlane.xlu0 %1626  ;;  %v4188_v45 = vpop.xlane.xlu1 %1612  ;;  %v1748_v5 = vand.u32 65535, %v4588_v35 }
 0x332   : > { %vm1628_vm6 = vcmp.eq.f32.partialorder %v3956_v33, %v4186_v17  ;;  %vm1614_vm7 = vcmp.eq.f32.partialorder %v4582_v63, %v4188_v45  ;;  %v4584_v33 = vld [vmem:[#allocation5_spill] sm:$0xff] }
 0x333   : > { %v1629_v3 = vsel %vm1628_vm6, %v1624_v47, inf  ;;  %v1615_v25 = vsel %vm1614_vm7, %v1610_v24, inf  ;;  %v4589_v47 = vld [vmem:[#allocation10_spill] sm:$0xff] }
 0x334   : > { %1630 = vmin.xlane.f32.xlu0 %v1629_v3  ;;  %1616 = vmin.xlane.f32.xlu1 %v1615_v25  ;;  %v1750_v25 = vcvt.s32.f32 %v1748_v5  ;;  %v3349_v5 = vmov 0.0  }
 0x335   : > { %v4196_v50 = vpop.xlane.xlu0 %1654  ;;  %v4198_v28 = vpop.xlane.xlu1 %1640 }
 0x336   : > { %vm1656_vm8 = vcmp.eq.f32.partialorder %v3972_v11, %v4196_v50  ;;  %vm1642_vm9 = vcmp.eq.f32.partialorder %v4584_v33, %v4198_v28  ;;  %v4586_v11 = vld [vmem:[#allocation7_spill] sm:$0xff]  ;;  %v1326_v33 = vshll.u32 %v1325_v41, 16 }
 0x337   : > { %v1657_v39 = vsel %vm1656_vm8, %v1652_v0, inf  ;;  %v1643_v32 = vsel %vm1642_vm9, %v1638_v38, inf  ;;  %v1353_v0 = vcvt.f32.s32 %v4080_v22 }
 0x338   : > { %1658 = vmin.xlane.f32.xlu0 %v1657_v39  ;;  %1644 = vmin.xlane.f32.xlu1 %v1643_v32  ;;  %v1339_v39 = vcvt.f32.s32 %v4082_v51 }
 0x339   : > { %v4206_v34 = vpop.xlane.xlu0 %1682  ;;  %v4208_v55 = vpop.xlane.xlu1 %1668  ;;  %v1354_v29 = vshll.u32 %v1353_v0, 16 }
 0x33a   : > { %vm1684_vm10 = vcmp.eq.f32.partialorder %v3988_v52, %v4206_v34  ;;  %vm1670_vm11 = vcmp.eq.f32.partialorder %v4586_v11, %v4208_v55  ;;  %v4587_v52 = vld [vmem:[#allocation8_spill] sm:$0xff] }
 0x33b   : > { %v1685_v6 = vsel %vm1684_vm10, %v1680_v59, inf  ;;  %v1671_v7 = vsel %vm1670_vm11, %v1666_v1, inf  ;;  %v1340_v1 = vshll.u32 %v1339_v39, 16 }
 0x33c   : > { %1686 = vmin.xlane.f32.xlu0 %v1685_v6  ;;  %1672 = vmin.xlane.f32.xlu1 %v1671_v7  ;;  %v4592_v6 = vld [vmem:[#allocation2_spill] sm:$0xff]  ;;  %v3348_v7 = vmov 1.0  }
 0x33d   : > { %v4216_v16 = vpop.xlane.xlu0 %1710  ;;  %v4218_v18 = vpop.xlane.xlu1 %1696 }
 0x33e   : > { %vm1712_vm12 = vcmp.eq.f32.partialorder %v4004_v31, %v4216_v16  ;;  %vm1698_vm13 = vcmp.eq.f32.partialorder %v4587_v52, %v4218_v18  ;;  %v4590_v31 = vld [vmem:[#allocation11_spill] sm:$0xff] }
 0x33f   : > { %v1713_v8 = vsel %vm1712_vm12, %v1708_v14, inf  ;;  %v1699_v13 = vsel %vm1698_vm13, %v1694_v19, inf  ;;  %v1409_v14 = vcvt.f32.s32 %v4100_v15  ;;  %v1395_v19 = vcvt.f32.s32 %v4102_v20 }
 0x340   : > { %1714 = vmin.xlane.f32.xlu0 %v1713_v8  ;;  %1700 = vmin.xlane.f32.xlu1 %v1699_v13  ;;  %v1437_v20 = vcvt.f32.s32 %v4110_v53 }
 0x341   : > { %v4225_v42 = vpop.xlane.xlu0 %1738  ;;  %v4227_v10 = vpop.xlane.xlu1 %1724 }
 0x342   : > { %vm1740_vm14 = vcmp.eq.f32.partialorder %v4589_v47, %v4225_v42  ;;  %vm1726_vm15 = vcmp.eq.f32.partialorder %v4590_v31, %v4227_v10 }
 0x343   : > { %v1741_v24 = vsel %vm1740_vm14, %v1736_v21, inf  ;;  %v1727_v63 = vsel %vm1726_vm15, %v1722_v26, inf }
 0x344   : > { %1742 = vmin.xlane.f32.xlu0 %v1741_v24  ;;  %1728 = vmin.xlane.f32.xlu1 %v1727_v63  ;;  %v1410_v24 = vshll.u32 %v1409_v14, 16  ;;  %v1396_v63 = vshll.u32 %v1395_v19, 16  ;;  %v1466_v14 = vshll.u32 %v1465_v49, 16  ;;  %v1452_v19 = vshll.u32 %v1451_v48, 16 }
 0x345   : > { %v4233_v3 = vpop.xlane.xlu1 %1752 }
 0x346   : > { %vm1754_vm0 = vcmp.eq.f32.partialorder %v4591_v46, %v4233_v3 }
 0x347   : > { %v1755_v36 = vsel %vm1754_vm0, %v1750_v25, inf  ;;  %v1423_v25 = vcvt.f32.s32 %v4112_v30  ;;  %v1438_v30 = vshll.u32 %v1437_v20, 16 }
 0x348   : > { %1756 = vmin.xlane.f32.xlu1 %v1755_v36 }
 0x395   : > { %v1323_v38 = vpop.xlane.xlu0 %1322 }
 0x396   : > { %v1324_v32 = vcvt.f32.s32 %v1323_v38 }
 0x398   : > { %v1327_v61 = vadd.s32 %v1326_v33, %v1324_v32 }
 0x399   : > { %v1351_v59 = vpop.xlane.xlu0 %1350  ;;  %v1337_v22 = vpop.xlane.xlu1 %1336 }
 0x39a   : > { %2292 = vst.msk [vmem:[%s4244_s30] sm:$0xff] %vm2291_vm1, %v1327_v61  ;;  %v1352_v51 = vcvt.f32.s32 %v1351_v59  ;;  %v1338_v11 = vcvt.f32.s32 %v1337_v22  ;;  %vm1762_vm2 = vcmp.eq.s32.totalorder %v4592_v6, %v1327_v61 }
 0x39b   : > { %3170 = vmatprep.mubr.msk.f32.mxu0 %vm1762_vm2, %v3348_v7  ;;  %v2721_v15 = vsel %vm1762_vm2, 1.0, %v3349_v5 }
 0x39c   : > { %v1355_v9 = vadd.s32 %v1354_v29, %v1352_v51  ;;  %v1341_v60 = vadd.s32 %v1340_v1, %v1338_v11  ;;  %v1424_v29 = vshll.u32 %v1423_v25, 16  ;;  %v1507_v25 = vcvt.f32.s32 %v4148_v27 }
 0x39d   : > { %v1379_v52 = vpop.xlane.xlu0 %1378  ;;  %v1365_v8 = vpop.xlane.xlu1 %1364 }
 0x39e   : > { %2294 = vst.msk [vmem:[%s4244_s30 + $0x10] sm:$0xff] %vm2291_vm1, %v1355_v9  ;;  %vm1763_vm3 = vcmp.eq.s32.totalorder %v4592_v6, %v1341_v60  ;;  %2293 = vst.msk [vmem:[%s4244_s30 + $0x8] sm:$0xff] %vm2291_vm1, %v1341_v60  ;;  %v1380_v13 = vcvt.f32.s32 %v1379_v52  ;;  %v1366_v35 = vcvt.f32.s32 %v1365_v8  ;;  %vm1764_vm4 = vcmp.eq.s32.totalorder %v4592_v6, %v1355_v9 }
 0x39f   : > { %v2722_v21 = vsel %vm1763_vm3, 1.0, %v3349_v5  ;;  %3171 = vmatmul.mubr.msk.f32.vlgmr.msra.gmra.mrb[32].mxu0 %vm1763_vm3, %v3348_v7  ;;  %v2723_v46 = vsel %vm1764_vm4, 1.0, %v3349_v5  ;;  %v1479_v52 = vcvt.f32.s32 %v4138_v54  ;;  %v1494_v54 = vshll.u32 %v1493_v37, 16 }
 0x3a0   : > { %v2426_v26 = vadd.f32 %v2722_v21, %v2721_v15  ;;  %v1383_v47 = vadd.s32 %v1382_v2, %v1380_v13  ;;  %v1369_v31 = vadd.s32 %v1368_v58, %v1366_v35  ;;  %3173 = vmatprep.mubr.msk.f32.mxu0 %vm1764_vm4, %v3348_v7 }
 0x3a1   : > { %v1407_v36 = vpop.xlane.xlu0 %1406  ;;  %v1393_v41 = vpop.xlane.xlu1 %1392 }
 0x3a2   : > { %2296 = vst.msk [vmem:[%s4244_s30 + $0x20] sm:$0xff] %vm2291_vm1, %v1383_v47  ;;  %2295 = vst.msk [vmem:[%s4244_s30 + $0x18] sm:$0xff] %vm2291_vm1, %v1369_v31  ;;  %v2427_v0 = vadd.f32 %v2723_v46, %v2426_v26  ;;  %v1408_v38 = vcvt.f32.s32 %v1407_v36  ;;  %v1394_v53 = vcvt.f32.s32 %v1393_v41  ;;  %vm1765_vm5 = vcmp.eq.s32.totalorder %v4592_v6, %v1369_v31 }
 0x3a3   : > { %v2724_v33 = vsel %vm1765_vm5, 1.0, %v3349_v5  ;;  %3174 = vmatmul.mubr.msk.f32.gmra.mrb[34].mxu0 %vm1765_vm5, %v3348_v7  ;;  %vm1766_vm6 = vcmp.eq.s32.totalorder %v4592_v6, %v1383_v47 }
 0x3a4   : > { %v1411_v39 = vadd.s32 %v1410_v24, %v1408_v38  ;;  %v1397_v32 = vadd.s32 %v1396_v63, %v1394_v53  ;;  %v2428_v61 = vadd.f32 %v2724_v33, %v2427_v0  ;;  %3176 = vmatprep.mubr.msk.f32.mxu0 %vm1766_vm6, %v3348_v7  ;;  %v2725_v59 = vsel %vm1766_vm6, 1.0, %v3349_v5 }
 0x3a5   : > { %v1435_v22 = vpop.xlane.xlu0 %1434  ;;  %v1421_v1 = vpop.xlane.xlu1 %1420  ;;  %v1480_v24 = vshll.u32 %v1479_v52, 16  ;;  %v1521_v63 = vcvt.f32.s32 %v4146_v23  ;;  %v1549_v23 = vcvt.f32.s32 %v4156_v56 }
 0x3a6   : > { %2298 = vst.msk [vmem:[%s4244_s30 + $0x30] sm:$0xff] %vm2291_vm1, %v1411_v39  ;;  %2297 = vst.msk [vmem:[%s4244_s30 + $0x28] sm:$0xff] %vm2291_vm1, %v1397_v32  ;;  %v2429_v51 = vadd.f32 %v2725_v59, %v2428_v61  ;;  %v1436_v11 = vcvt.f32.s32 %v1435_v22  ;;  %v1422_v9 = vcvt.f32.s32 %v1421_v1  ;;  %vm1767_vm7 = vcmp.eq.s32.totalorder %v4592_v6, %v1397_v32 }
 0x3a7   : > { %v2726_v60 = vsel %vm1767_vm7, 1.0, %v3349_v5  ;;  %3177 = vmatmul.mubr.msk.f32.gmra.mrb[36].mxu0 %vm1767_vm7, %v3348_v7  ;;  %vm1768_vm8 = vcmp.eq.s32.totalorder %v4592_v6, %v1411_v39  ;;  %v1522_v32 = vshll.u32 %v1521_v63, 16  ;;  %v1508_v61 = vshll.u32 %v1507_v25, 16 }
 0x3a8   : > { %v1439_v62 = vadd.s32 %v1438_v30, %v1436_v11  ;;  %v1425_v2 = vadd.s32 %v1424_v29, %v1422_v9  ;;  %v2430_v58 = vadd.f32 %v2726_v60, %v2429_v51  ;;  %3179 = vmatprep.mubr.msk.f32.mxu0 %vm1768_vm8, %v3348_v7  ;;  %v2727_v8 = vsel %vm1768_vm8, 1.0, %v3349_v5 }
 0x3a9   : > { %v1463_v13 = vpop.xlane.xlu0 %1462  ;;  %v1449_v35 = vpop.xlane.xlu1 %1448  ;;  %v1535_v29 = vcvt.f32.s32 %v4158_v57  ;;  %v1550_v57 = vshll.u32 %v1549_v23, 16 }
 0x3aa   : > { %2300 = vst.msk [vmem:[%s4244_s30 + $0x40] sm:$0xff] %vm2291_vm1, %v1439_v62  ;;  %2299 = vst.msk [vmem:[%s4244_s30 + $0x38] sm:$0xff] %vm2291_vm1, %v1425_v2  ;;  %v2431_v21 = vadd.f32 %v2727_v8, %v2430_v58  ;;  %v1464_v15 = vcvt.f32.s32 %v1463_v13  ;;  %v1450_v12 = vcvt.f32.s32 %v1449_v35  ;;  %vm1769_vm9 = vcmp.eq.s32.totalorder %v4592_v6, %v1425_v2 }
 0x3ab   : > { %v2728_v20 = vsel %vm1769_vm9, 1.0, %v3349_v5  ;;  %3180 = vmatmul.mubr.msk.f32.gmra.mrb[38].mxu0 %vm1769_vm9, %v3348_v7  ;;  %vm1770_vm10 = vcmp.eq.s32.totalorder %v4592_v6, %v1439_v62  ;;  %v1536_v37 = vshll.u32 %v1535_v29, 16  ;;  %v1577_v62 = vcvt.f32.s32 %v4166_v43 }
 0x3ac   : > { %v1467_v26 = vadd.s32 %v1466_v14, %v1464_v15  ;;  %v1453_v47 = vadd.s32 %v1452_v19, %v1450_v12  ;;  %v2432_v31 = vadd.f32 %v2728_v20, %v2431_v21  ;;  %3182 = vmatprep.mubr.msk.f32.mxu0 %vm1770_vm10, %v3348_v7  ;;  %v2729_v46 = vsel %vm1770_vm10, 1.0, %v3349_v5 }
 0x3ad   : > { %v1491_v36 = vpop.xlane.xlu0 %1490  ;;  %v1477_v41 = vpop.xlane.xlu1 %1476  ;;  %v1563_v2 = vcvt.f32.s32 %v4168_v4  ;;  %v1605_v43 = vcvt.f32.s32 %v4176_v40  ;;  %v1578_v12 = vshll.u32 %v1577_v62, 16 }
 0x3ae   : > { %2302 = vst.msk [vmem:[%s4244_s30 + $0x50] sm:$0xff] %vm2291_vm1, %v1467_v26  ;;  %2301 = vst.msk [vmem:[%s4244_s30 + $0x48] sm:$0xff] %vm2291_vm1, %v1453_v47  ;;  %v2433_v0 = vadd.f32 %v2729_v46, %v2432_v31  ;;  %v1492_v38 = vcvt.f32.s32 %v1491_v36  ;;  %v1478_v53 = vcvt.f32.s32 %v1477_v41  ;;  %vm1771_vm11 = vcmp.eq.s32.totalorder %v4592_v6, %v1453_v47 }
 0x3af   : > { %v2730_v33 = vsel %vm1771_vm11, 1.0, %v3349_v5  ;;  %3183 = vmatmul.mubr.msk.f32.gmra.mrb[40].mxu0 %vm1771_vm11, %v3348_v7  ;;  %vm1772_vm12 = vcmp.eq.s32.totalorder %v4592_v6, %v1467_v26  ;;  %v1564_v20 = vshll.u32 %v1563_v2, 16 }
 0x3b0   : > { %v1495_v27 = vadd.s32 %v1494_v54, %v1492_v38  ;;  %v1481_v30 = vadd.s32 %v1480_v24, %v1478_v53  ;;  %v2434_v39 = vadd.f32 %v2730_v33, %v2433_v0  ;;  %3185 = vmatprep.mubr.msk.f32.mxu0 %vm1772_vm12, %v3348_v7  ;;  %v2731_v49 = vsel %vm1772_vm12, 1.0, %v3349_v5 }
 0x3b1   : > { %v1519_v48 = vpop.xlane.xlu0 %1518  ;;  %v1505_v59 = vpop.xlane.xlu1 %1504  ;;  %v1591_v54 = vcvt.f32.s32 %v4178_v44  ;;  %v1606_v44 = vshll.u32 %v1605_v43, 16  ;;  %v1633_v38 = vcvt.f32.s32 %v4186_v17  ;;  %v1619_v53 = vcvt.f32.s32 %v4188_v45 }
 0x3b2   : > { %2304 = vst.msk [vmem:[%s4244_s30 + $0x60] sm:$0xff] %vm2291_vm1, %v1495_v27  ;;  %2303 = vst.msk [vmem:[%s4244_s30 + $0x58] sm:$0xff] %vm2291_vm1, %v1481_v30  ;;  %v2435_v22 = vadd.f32 %v2731_v49, %v2434_v39  ;;  %v1520_v1 = vcvt.f32.s32 %v1519_v48  ;;  %v1506_v56 = vcvt.f32.s32 %v1505_v59  ;;  %vm1773_vm13 = vcmp.eq.s32.totalorder %v4592_v6, %v1481_v30 }
 0x3b3   : > { %v2732_v51 = vsel %vm1773_vm13, 1.0, %v3349_v5  ;;  %3186 = vmatmul.mubr.msk.f32.gmra.mrb[42].mxu0 %vm1773_vm13, %v3348_v7  ;;  %vm1774_vm14 = vcmp.eq.s32.totalorder %v4592_v6, %v1495_v27  ;;  %v1592_v0 = vshll.u32 %v1591_v54, 16  ;;  %v1661_v17 = vcvt.f32.s32 %v4196_v50 }
 0x3b4   : > { %v1523_v11 = vadd.s32 %v1522_v32, %v1520_v1  ;;  %v1509_v9 = vadd.s32 %v1508_v61, %v1506_v56  ;;  %v2436_v60 = vadd.f32 %v2732_v51, %v2435_v22  ;;  %3188 = vmatprep.mubr.msk.f32.mxu0 %vm1774_vm14, %v3348_v7  ;;  %v2733_v58 = vsel %vm1774_vm14, 1.0, %v3349_v5 }
 0x3b5   : > { %v1547_v14 = vpop.xlane.xlu0 %1546  ;;  %v1533_v19 = vpop.xlane.xlu1 %1532  ;;  %v1634_v48 = vshll.u32 %v1633_v38, 16  ;;  %v1620_v59 = vshll.u32 %v1619_v53, 16  ;;  %v1647_v22 = vcvt.f32.s32 %v4198_v28  ;;  %v1662_v28 = vshll.u32 %v1661_v17, 16 }
 0x3b6   : > { %2306 = vst.msk [vmem:[%s4244_s30 + $0x70] sm:$0xff] %vm2291_vm1, %v1523_v11  ;;  %2305 = vst.msk [vmem:[%s4244_s30 + $0x68] sm:$0xff] %vm2291_vm1, %v1509_v9  ;;  %v2437_v52 = vadd.f32 %v2733_v58, %v2436_v60  ;;  %v1548_v8 = vcvt.f32.s32 %v1547_v14  ;;  %v1534_v13 = vcvt.f32.s32 %v1533_v19  ;;  %vm1775_vm15 = vcmp.eq.s32.totalorder %v4592_v6, %v1509_v9 }
 0x3b7   : > { %v2734_v35 = vsel %vm1775_vm15, 1.0, %v3349_v5  ;;  %3189 = vmatmul.mubr.msk.f32.gmra.mrb[44].mxu0 %vm1775_vm15, %v3348_v7  ;;  %vm1776_vm0 = vcmp.eq.s32.totalorder %v4592_v6, %v1523_v11  ;;  %v1648_v2 = vshll.u32 %v1647_v22, 16  ;;  %v1689_v58 = vcvt.f32.s32 %v4206_v34 }
 0x3b8   : > { %v1551_v4 = vadd.s32 %v1550_v57, %v1548_v8  ;;  %v1537_v21 = vadd.s32 %v1536_v37, %v1534_v13  ;;  %v2438_v15 = vadd.f32 %v2734_v35, %v2437_v52  ;;  %3191 = vmatprep.mubr.msk.f32.mxu0 %vm1776_vm0, %v3348_v7  ;;  %v2735_v26 = vsel %vm1776_vm0, 1.0, %v3349_v5 }
 0x3b9   : > { %v1575_v47 = vpop.xlane.xlu0 %1574  ;;  %v1561_v31 = vpop.xlane.xlu1 %1560  ;;  %v1675_v14 = vcvt.f32.s32 %v4208_v55  ;;  %v1717_v34 = vcvt.f32.s32 %v4216_v16  ;;  %v1703_v54 = vcvt.f32.s32 %v4218_v18 }
 0x3ba   : > { %2308 = vst.msk [vmem:[%s4244_s30 + $0x80] sm:$0xff] %vm2291_vm1, %v1551_v4  ;;  %2307 = vst.msk [vmem:[%s4244_s30 + $0x78] sm:$0xff] %vm2291_vm1, %v1537_v21  ;;  %v2439_v24 = vadd.f32 %v2735_v26, %v2438_v15  ;;  %v1576_v63 = vcvt.f32.s32 %v1575_v47  ;;  %v1562_v40 = vcvt.f32.s32 %v1561_v31  ;;  %vm1777_vm2 = vcmp.eq.s32.totalorder %v4592_v6, %v1537_v21 }
 0x3bb   : > { %v2736_v25 = vsel %vm1777_vm2, 1.0, %v3349_v5  ;;  %3192 = vmatmul.mubr.msk.f32.gmra.mrb[46].mxu0 %vm1777_vm2, %v3348_v7  ;;  %vm1778_vm3 = vcmp.eq.s32.totalorder %v4592_v6, %v1551_v4  ;;  %v1718_v18 = vshll.u32 %v1717_v34, 16 }
 0x3bc   : > { %v1579_v46 = vadd.s32 %v1578_v12, %v1576_v63  ;;  %v1565_v36 = vadd.s32 %v1564_v20, %v1562_v40  ;;  %v2440_v41 = vadd.f32 %v2736_v25, %v2439_v24  ;;  %3194 = vmatprep.mubr.msk.f32.mxu0 %vm1778_vm3, %v3348_v7  ;;  %v2737_v33 = vsel %vm1778_vm3, 1.0, %v3349_v5 }
 0x3bd   : > { %v1603_v23 = vpop.xlane.xlu0 %1602  ;;  %v1589_v27 = vpop.xlane.xlu1 %1588  ;;  %v1690_v12 = vshll.u32 %v1689_v58, 16  ;;  %v1676_v20 = vshll.u32 %v1675_v14, 16 }
 0x3be   : > { %2310 = vst.msk [vmem:[%s4244_s30 + $0x90] sm:$0xff] %vm2291_vm1, %v1579_v46  ;;  %2309 = vst.msk [vmem:[%s4244_s30 + $0x88] sm:$0xff] %vm2291_vm1, %v1565_v36  ;;  %v2441_v30 = vadd.f32 %v2737_v33, %v2440_v41  ;;  %v1604_v39 = vcvt.f32.s32 %v1603_v23  ;;  %v1590_v32 = vcvt.f32.s32 %v1589_v27  ;;  %vm1779_vm4 = vcmp.eq.s32.totalorder %v4592_v6, %v1565_v36 }
 0x3bf   : > { %v2738_v61 = vsel %vm1779_vm4, 1.0, %v3349_v5  ;;  %3195 = vmatmul.mubr.msk.f32.gmra.mrb[48].mxu0 %vm1779_vm4, %v3348_v7  ;;  %vm1780_vm5 = vcmp.eq.s32.totalorder %v4592_v6, %v1579_v46  ;;  %v1704_v36 = vshll.u32 %v1703_v54, 16  ;;  %v1745_v41 = vcvt.f32.s32 %v4225_v42 }
 0x3c0   : > { %v1607_v45 = vadd.s32 %v1606_v44, %v1604_v39  ;;  %v1593_v29 = vadd.s32 %v1592_v0, %v1590_v32  ;;  %v2442_v49 = vadd.f32 %v2738_v61, %v2441_v30  ;;  %3197 = vmatprep.mubr.msk.f32.mxu0 %vm1780_vm5, %v3348_v7  ;;  %v2739_v1 = vsel %vm1780_vm5, 1.0, %v3349_v5 }
 0x3c1   : > { %v1631_v56 = vpop.xlane.xlu0 %1630  ;;  %v1617_v51 = vpop.xlane.xlu1 %1616  ;;  %v1731_v0 = vcvt.f32.s32 %v4227_v10  ;;  %v1746_v61 = vshll.u32 %v1745_v41, 16 }
 0x3c2   : > { %2312 = vst.msk [vmem:[%s4244_s30 + $0xa0] sm:$0xff] %vm2291_vm1, %v1607_v45  ;;  %2311 = vst.msk [vmem:[%s4244_s30 + $0x98] sm:$0xff] %vm2291_vm1, %v1593_v29  ;;  %v2443_v57 = vadd.f32 %v2739_v1, %v2442_v49  ;;  %v1632_v11 = vcvt.f32.s32 %v1631_v56  ;;  %v1618_v50 = vcvt.f32.s32 %v1617_v51  ;;  %vm1781_vm6 = vcmp.eq.s32.totalorder %v4592_v6, %v1593_v29 }
 0x3c3   : > { %v2740_v9 = vsel %vm1781_vm6, 1.0, %v3349_v5  ;;  %3198 = vmatmul.mubr.msk.f32.gmra.mrb[50].mxu0 %vm1781_vm6, %v3348_v7  ;;  %vm1782_vm7 = vcmp.eq.s32.totalorder %v4592_v6, %v1607_v45  ;;  %v1732_v17 = vshll.u32 %v1731_v0, 16  ;;  %v1759_v45 = vcvt.f32.s32 %v4233_v3 }
 0x3c4   : > { %v1635_v60 = vadd.s32 %v1634_v48, %v1632_v11  ;;  %v1621_v37 = vadd.s32 %v1620_v59, %v1618_v50  ;;  %v2444_v62 = vadd.f32 %v2740_v9, %v2443_v57  ;;  %3200 = vmatprep.mubr.msk.f32.mxu0 %vm1782_vm7, %v3348_v7  ;;  %v2741_v19 = vsel %vm1782_vm7, 1.0, %v3349_v5 }
 0x3c5   : > { %v1659_v52 = vpop.xlane.xlu0 %1658  ;;  %v1645_v8 = vpop.xlane.xlu1 %1644  ;;  %v1760_v11 = vshll.u32 %v1759_v45, 16 }
 0x3c6   : > { %2314 = vst.msk [vmem:[%s4244_s30 + $0xb0] sm:$0xff] %vm2291_vm1, %v1635_v60  ;;  %2313 = vst.msk [vmem:[%s4244_s30 + $0xa8] sm:$0xff] %vm2291_vm1, %v1621_v37  ;;  %v2445_v13 = vadd.f32 %v2741_v19, %v2444_v62  ;;  %v1660_v35 = vcvt.f32.s32 %v1659_v52  ;;  %v1646_v43 = vcvt.f32.s32 %v1645_v8  ;;  %vm1783_vm8 = vcmp.eq.s32.totalorder %v4592_v6, %v1621_v37 }
 0x3c7   : > { %v2742_v4 = vsel %vm1783_vm8, 1.0, %v3349_v5  ;;  %3201 = vmatmul.mubr.msk.f32.gmra.mrb[52].mxu0 %vm1783_vm8, %v3348_v7  ;;  %vm1784_vm9 = vcmp.eq.s32.totalorder %v4592_v6, %v1635_v60 }
 0x3c8   : > { %v1663_v55 = vadd.s32 %v1662_v28, %v1660_v35  ;;  %v1649_v21 = vadd.s32 %v1648_v2, %v1646_v43  ;;  %v2446_v15 = vadd.f32 %v2742_v4, %v2445_v13  ;;  %3203 = vmatprep.mubr.msk.f32.mxu0 %vm1784_vm9, %v3348_v7  ;;  %v2743_v26 = vsel %vm1784_vm9, 1.0, %v3349_v5 }
 0x3c9   : > { %v1687_v47 = vpop.xlane.xlu0 %1686  ;;  %v1673_v31 = vpop.xlane.xlu1 %1672 }
 0x3ca   : > { %2316 = vst.msk [vmem:[%s4244_s30 + $0xc0] sm:$0xff] %vm2291_vm1, %v1663_v55  ;;  %2315 = vst.msk [vmem:[%s4244_s30 + $0xb8] sm:$0xff] %vm2291_vm1, %v1649_v21  ;;  %v2447_v24 = vadd.f32 %v2743_v26, %v2446_v15  ;;  %v1688_v63 = vcvt.f32.s32 %v1687_v47  ;;  %v1674_v16 = vcvt.f32.s32 %v1673_v31  ;;  %vm1785_vm10 = vcmp.eq.s32.totalorder %v4592_v6, %v1649_v21  ;;  %v3309_v15 = vld [vmem:[%s3507_s14] sm:$0xff] }
 0x3cb   : > { %v2744_v40 = vsel %vm1785_vm10, 1.0, %v3349_v5  ;;  %3204 = vmatmul.mubr.msk.f32.gmra.mrb[54].mxu0 %vm1785_vm10, %v3348_v7  ;;  %vm1786_vm11 = vcmp.eq.s32.totalorder %v4592_v6, %v1663_v55 }
 0x3cc   : > { %v1691_v25 = vadd.s32 %v1690_v12, %v1688_v63  ;;  %v1677_v44 = vadd.s32 %v1676_v20, %v1674_v16  ;;  %v2448_v46 = vadd.f32 %v2744_v40, %v2447_v24  ;;  %3206 = vmatprep.mubr.msk.f32.mxu1 %vm1786_vm11, %v3348_v7  ;;  %v2745_v38 = vsel %vm1786_vm11, 1.0, %v3349_v5  ;;  %v3310_v24 = vld [vmem:[%s3507_s14 + $0x18] sm:$0xff]  ;;  %v3311_v40 = vld [vmem:[%s3507_s14 + $0x10] sm:$0xff] }
 0x3cd   : > { %v1715_v53 = vpop.xlane.xlu0 %1714  ;;  %v1701_v33 = vpop.xlane.xlu1 %1700 }
 0x3ce   : > { %2318 = vst.msk [vmem:[%s4244_s30 + $0xd0] sm:$0xff] %vm2291_vm1, %v1691_v25  ;;  %vm1787_vm12 = vcmp.eq.s32.totalorder %v4592_v6, %v1677_v44  ;;  %2317 = vst.msk [vmem:[%s4244_s30 + $0xc8] sm:$0xff] %vm2291_vm1, %v1677_v44  ;;  %v2449_v23 = vadd.f32 %v2745_v38, %v2448_v46  ;;  %v1716_v27 = vcvt.f32.s32 %v1715_v53  ;;  %v1702_v30 = vcvt.f32.s32 %v1701_v33  ;;  %v3312_v46 = vld [vmem:[%s3507_s14 + $0x28] sm:$0xff]  ;;  %v3313_v33 = vld [vmem:[%s3507_s14 + $0x20] sm:$0xff] }
 0x3cf   : > { %v2746_v39 = vsel %vm1787_vm12, 1.0, %v3349_v5  ;;  %3207 = vmatmul.mubr.msk.f32.vlgmr.msra.gmra.mrb[32].mxu1 %vm1787_vm12, %v3348_v7  ;;  %vm1788_vm13 = vcmp.eq.s32.totalorder %v4592_v6, %v1691_v25 }
 0x3d0   : > { %v1719_v42 = vadd.s32 %v1718_v18, %v1716_v27  ;;  %v1705_v10 = vadd.s32 %v1704_v36, %v1702_v30  ;;  %3209 = vmatprep.mubr.msk.f32.mxu1 %vm1788_vm13, %v3348_v7  ;;  %v2450_v32 = vadd.f32 %v2746_v39, %v2449_v23  ;;  %v2747_v29 = vsel %vm1788_vm13, 1.0, %v3349_v5 }
 0x3d1   : > { %v1743_v49 = vpop.xlane.xlu0 %1742  ;;  %v1729_v48 = vpop.xlane.xlu1 %1728 }
 0x3d2   : > { %2320 = vst.msk [vmem:[%s4244_s30 + $0xe0] sm:$0xff] %vm2291_vm1, %v1719_v42  ;;  %2319 = vst.msk [vmem:[%s4244_s30 + $0xd8] sm:$0xff] %vm2291_vm1, %v1705_v10  ;;  %v2451_v59 = vadd.f32 %v2747_v29, %v2450_v32  ;;  %v1744_v22 = vcvt.f32.s32 %v1743_v49  ;;  %v1730_v1 = vcvt.f32.s32 %v1729_v48  ;;  %vm1789_vm14 = vcmp.eq.s32.totalorder %v4592_v6, %v1705_v10  ;;  %v3315_v29 = vld [vmem:[%s3507_s14 + $0x30] sm:$0xff] }
 0x3d3   : > { %v2748_v56 = vsel %vm1789_vm14, 1.0, %v3349_v5  ;;  %3210 = vmatmul.mubr.msk.f32.gmra.mrb[34].mxu1 %vm1789_vm14, %v3348_v7  ;;  %vm1790_vm15 = vcmp.eq.s32.totalorder %v4592_v6, %v1719_v42 }
 0x3d4   : > { %v1747_v3 = vadd.s32 %v1746_v61, %v1744_v22  ;;  %v1733_v51 = vadd.s32 %v1732_v17, %v1730_v1  ;;  %v2452_v57 = vadd.f32 %v2748_v56, %v2451_v59  ;;  %3212 = vmatprep.mubr.msk.f32.mxu1 %vm1790_vm15, %v3348_v7  ;;  %v2749_v50 = vsel %vm1790_vm15, 1.0, %v3349_v5  ;;  %v3314_v61 = vld [vmem:[%s3507_s14 + $0x38] sm:$0xff]  ;;  %v3316_v1 = vld [vmem:[%s3507_s14 + $0x48] sm:$0xff] }
 0x3d5   : > { %v1757_v9 = vpop.xlane.xlu1 %1756 }
 0x3d6   : > { %2322 = vst.msk [vmem:[%s4244_s30 + $0xf0] sm:$0xff] %vm2291_vm1, %v1747_v3  ;;  %2321 = vst.msk [vmem:[%s4244_s30 + $0xe8] sm:$0xff] %vm2291_vm1, %v1733_v51  ;;  %v2453_v28 = vadd.f32 %v2749_v50, %v2452_v57  ;;  %v1758_v60 = vcvt.f32.s32 %v1757_v9  ;;  %vm1791_vm0 = vcmp.eq.s32.totalorder %v4592_v6, %v1733_v51  ;;  %vm1792_vm2 = vcmp.eq.s32.totalorder %v4592_v6, %v1747_v3  ;;  %v3317_v50 = vld [vmem:[%s3507_s14 + $0x40] sm:$0xff] }
 0x3d7   : > { %v2750_v37 = vsel %vm1791_vm0, 1.0, %v3349_v5  ;;  %3213 = vmatmul.mubr.msk.f32.gmra.mrb[36].mxu1 %vm1791_vm0, %v3348_v7  ;;  %v2751_v58 = vsel %vm1792_vm2, 1.0, %v3349_v5 }
 0x3d8   : > { %v1761_v62 = vadd.s32 %v1760_v11, %v1758_v60  ;;  %v2454_v2 = vadd.f32 %v2750_v37, %v2453_v28  ;;  %3215 = vmatprep.mubr.msk.f32.mxu1 %vm1792_vm2, %v3348_v7 }
 0x3da   : > { %2323 = vst.msk [vmem:[%s4244_s30 + $0xf8] sm:$0xff] %vm2291_vm1, %v1761_v62  ;;  %v2455_v14 = vadd.f32 %v2751_v58, %v2454_v2  ;;  %vm1793_vm3 = vcmp.eq.s32.totalorder %v4592_v6, %v1761_v62 }
 0x3db   : > { %v2752_v19 = vsel %vm1793_vm3, 1.0, %v3349_v5  ;;  %3216 = vmatmul.mubr.msk.f32.gmra.mrb[38].mxu1 %vm1793_vm3, %v3348_v7  ;;  %v3308_v5 = vld [vmem:[%s3507_s14 + $0x8] sm:$0xff] }
 0x3dc   : > { %v2456_v52 = vadd.f32 %v2752_v19, %v2455_v14  ;;  %v3318_v14 = vld [vmem:[%s3507_s14 + $0x58] sm:$0xff] }
 0x3de   : > { %v2457_v8 = vrot.slane %v2456_v52, 4 }
 0x3e0   : > { %v2458_v13 = vadd.f32 %v2457_v8, %v2456_v52  ;;  %v3319_v8 = vld [vmem:[%s3507_s14 + $0x50] sm:$0xff] }
 0x3e2   : > { %v2459_v35 = vrot.slane %v2458_v13, 2 }
 0x3e4   : > { %v2460_v43 = vadd.f32 %v2459_v35, %v2458_v13 }
 0x3e6   : > { %v2461_v4 = vrot.slane %v2460_v43, 1 }
 0x3e8   : > { %v2462_v6 = vadd.f32 %v2461_v4, %v2460_v43 }
 0x3ea   : > { %2463 = vst [vmem:[%s445_s29] sm:$0x1] %v2462_v6  ;;  %v3320_v6 = vld [vmem:[%s3507_s14 + $0x68] sm:$0xff] }
 0x472   : > { %v3172_v7 = vpop.f32.mrb[32].mxu0 }
 0x473   : > { %2100 = vst [vmem:[%s4451_s19 + $0x8] sm:$0xff] %v3172_v7  ;;  %v2325_v34 = vsub.f32 %v3172_v7, %v3308_v5  ;;  %v1940_v55 = vpop.f32.mrb[33].mxu0 }
 0x474   : > { %2099 = vst [vmem:[%s4451_s19] sm:$0xff] %v1940_v55  ;;  %v2854_v21 = vpack.c.bf16 %v3172_v7, %v1940_v55  ;;  %v2324_v12 = vsub.f32 %v1940_v55, %v3309_v15  ;;  %v3321_v15 = vld [vmem:[%s3507_s14 + $0x60] sm:$0xff] }
 0x475   : > { %v2357_v20 = vmul.f32 %v2325_v34, %v2325_v34 }
 0x476   : > { %2855 = vst [vmem:[%s4460_s23] sm:$0xff] %v2854_v21   ;;  %v2356_v54 = vmul.f32 %v2324_v12, %v2324_v12  ;;  %v3175_v26 = vpop.f32.mrb[34].mxu0 }
 0x477   : > { %2102 = vst [vmem:[%s4451_s19 + $0x18] sm:$0xff] %v3175_v26  ;;  %v1950_v47 = vpop.f32.mrb[35].mxu0  ;;  %v2327_v63 = vsub.f32 %v3175_v26, %v3310_v24 }
 0x478   : > { %v2388_v31 = vadd.f32 %v2357_v20, %v2356_v54  ;;  %2101 = vst [vmem:[%s4451_s19 + $0x10] sm:$0xff] %v1950_v47  ;;  %v2859_v16 = vpack.c.bf16 %v3175_v26, %v1950_v47  ;;  %v2326_v18 = vsub.f32 %v1950_v47, %v3311_v40 }
 0x479   : > { %v2359_v0 = vmul.f32 %v2327_v63, %v2327_v63  ;;  %v3322_v63 = vld [vmem:[%s3507_s14 + $0x78] sm:$0xff] }
 0x47a   : > { %2931 = vst [vmem:[%s4460_s23 + $0x8] sm:$0xff] %v2859_v16   ;;  %v2358_v25 = vmul.f32 %v2326_v18, %v2326_v18  ;;  %v3178_v44 = vpop.f32.mrb[36].mxu0  ;;  %v3323_v18 = vld [vmem:[%s3507_s14 + $0x70] sm:$0xff] }
 0x47b   : > { %2104 = vst [vmem:[%s4451_s19 + $0x28] sm:$0xff] %v3178_v44  ;;  %v2329_v36 = vsub.f32 %v3178_v44, %v3312_v46  ;;  %v1960_v41 = vpop.f32.mrb[37].mxu0 }
 0x47c   : > { %v2389_v38 = vadd.f32 %v2388_v31, %v2358_v25  ;;  %2103 = vst [vmem:[%s4451_s19 + $0x20] sm:$0xff] %v1960_v41  ;;  %v2864_v53 = vpack.c.bf16 %v3178_v44, %v1960_v41  ;;  %v2328_v23 = vsub.f32 %v1960_v41, %v3313_v33  ;;  %v3324_v41 = vld [vmem:[%s3507_s14 + $0x88] sm:$0xff] }
 0x47d   : > { %v2361_v42 = vmul.f32 %v2329_v36, %v2329_v36 }
 0x47e   : > { %2932 = vst [vmem:[%s4460_s23 + $0x10] sm:$0xff] %v2864_v53   ;;  %v2360_v27 = vmul.f32 %v2328_v23, %v2328_v23  ;;  %v2390_v30 = vadd.f32 %v2389_v38, %v2359_v0  ;;  %v3181_v39 = vpop.f32.mrb[38].mxu0 }
 0x47f   : > { %2106 = vst [vmem:[%s4451_s19 + $0x38] sm:$0xff] %v3181_v39  ;;  %v1970_v10 = vpop.f32.mrb[39].mxu0  ;;  %v2331_v17 = vsub.f32 %v3181_v39, %v3314_v61 }
 0x480   : > { %v2391_v32 = vadd.f32 %v2390_v30, %v2360_v27  ;;  %2105 = vst [vmem:[%s4451_s19 + $0x30] sm:$0xff] %v1970_v10  ;;  %v2869_v45 = vpack.c.bf16 %v3181_v39, %v1970_v10  ;;  %v2330_v49 = vsub.f32 %v1970_v10, %v3315_v29  ;;  %v3325_v27 = vld [vmem:[%s3507_s14 + $0x80] sm:$0xff] }
 0x481   : > { %v2363_v51 = vmul.f32 %v2331_v17, %v2331_v17 }
 0x482   : > { %2933 = vst [vmem:[%s4460_s23 + $0x18] sm:$0xff] %v2869_v45   ;;  %v2362_v48 = vmul.f32 %v2330_v49, %v2330_v49  ;;  %v2392_v59 = vadd.f32 %v2391_v32, %v2361_v42  ;;  %v3184_v22 = vpop.f32.mrb[40].mxu0  ;;  %v3326_v45 = vld [vmem:[%s3507_s14 + $0x98] sm:$0xff] }
 0x483   : > { %2108 = vst [vmem:[%s4451_s19 + $0x48] sm:$0xff] %v3184_v22  ;;  %v2333_v56 = vsub.f32 %v3184_v22, %v3316_v1  ;;  %v1980_v3 = vpop.f32.mrb[41].mxu0 }
 0x484   : > { %v2393_v57 = vadd.f32 %v2392_v59, %v2362_v48  ;;  %2107 = vst [vmem:[%s4451_s19 + $0x40] sm:$0xff] %v1980_v3  ;;  %v2874_v11 = vpack.c.bf16 %v3184_v22, %v1980_v3  ;;  %v2332_v9 = vsub.f32 %v1980_v3, %v3317_v50  ;;  %v3327_v48 = vld [vmem:[%s3507_s14 + $0x90] sm:$0xff]  ;;  %v3328_v3 = vld [vmem:[%s3507_s14 + $0xa8] sm:$0xff] }
 0x485   : > { %v2365_v62 = vmul.f32 %v2333_v56, %v2333_v56 }
 0x486   : > { %2934 = vst [vmem:[%s4460_s23 + $0x20] sm:$0xff] %v2874_v11   ;;  %v2364_v28 = vmul.f32 %v2332_v9, %v2332_v9  ;;  %v2394_v60 = vadd.f32 %v2393_v57, %v2363_v51  ;;  %v3187_v37 = vpop.f32.mrb[42].mxu0 }
 0x487   : > { %2110 = vst [vmem:[%s4451_s19 + $0x58] sm:$0xff] %v3187_v37  ;;  %v1990_v2 = vpop.f32.mrb[43].mxu0  ;;  %v2335_v19 = vsub.f32 %v3187_v37, %v3318_v14 }
 0x488   : > { %v2395_v58 = vadd.f32 %v2394_v60, %v2364_v28  ;;  %2109 = vst [vmem:[%s4451_s19 + $0x50] sm:$0xff] %v1990_v2  ;;  %v2879_v52 = vpack.c.bf16 %v3187_v37, %v1990_v2  ;;  %v2334_v13 = vsub.f32 %v1990_v2, %v3319_v8  ;;  %v3329_v28 = vld [vmem:[%s3507_s14 + $0xa0] sm:$0xff] }
 0x489   : > { %v2367_v34 = vmul.f32 %v2335_v19, %v2335_v19 }
 0x48a   : > { %2935 = vst [vmem:[%s4460_s23 + $0x28] sm:$0xff] %v2879_v52   ;;  %v2366_v35 = vmul.f32 %v2334_v13, %v2334_v13  ;;  %v2396_v43 = vadd.f32 %v2395_v58, %v2365_v62  ;;  %v3190_v4 = vpop.f32.mrb[44].mxu0  ;;  %v3330_v52 = vld [vmem:[%s3507_s14 + $0xb8] sm:$0xff] }
 0x48b   : > { %2112 = vst [vmem:[%s4451_s19 + $0x68] sm:$0xff] %v3190_v4  ;;  %v2337_v7 = vsub.f32 %v3190_v4, %v3320_v6  ;;  %v2000_v5 = vpop.f32.mrb[45].mxu0 }
 0x48c   : > { %v2397_v55 = vadd.f32 %v2396_v43, %v2366_v35  ;;  %2111 = vst [vmem:[%s4451_s19 + $0x60] sm:$0xff] %v2000_v5  ;;  %v2884_v21 = vpack.c.bf16 %v3190_v4, %v2000_v5  ;;  %v2336_v12 = vsub.f32 %v2000_v5, %v3321_v15  ;;  %v3331_v35 = vld [vmem:[%s3507_s14 + $0xb0] sm:$0xff]  ;;  %v3332_v5 = vld [vmem:[%s3507_s14 + $0xc8] sm:$0xff] }
 0x48d   : > { %v2369_v47 = vmul.f32 %v2337_v7, %v2337_v7 }
 0x48e   : > { %2936 = vst [vmem:[%s4460_s23 + $0x30] sm:$0xff] %v2884_v21   ;;  %v2368_v20 = vmul.f32 %v2336_v12, %v2336_v12  ;;  %v2398_v54 = vadd.f32 %v2397_v55, %v2367_v34  ;;  %v3193_v26 = vpop.f32.mrb[46].mxu0 }
 0x48f   : > { %2114 = vst [vmem:[%s4451_s19 + $0x78] sm:$0xff] %v3193_v26  ;;  %v2010_v31 = vpop.f32.mrb[47].mxu0  ;;  %v2339_v16 = vsub.f32 %v3193_v26, %v3322_v63 }
 0x490   : > { %v2399_v24 = vadd.f32 %v2398_v54, %v2368_v20  ;;  %2113 = vst [vmem:[%s4451_s19 + $0x70] sm:$0xff] %v2010_v31  ;;  %v2889_v40 = vpack.c.bf16 %v3193_v26, %v2010_v31  ;;  %v2338_v25 = vsub.f32 %v2010_v31, %v3323_v18  ;;  %v3333_v20 = vld [vmem:[%s3507_s14 + $0xc0] sm:$0xff] }
 0x491   : > { %v2371_v53 = vmul.f32 %v2339_v16, %v2339_v16 }
 0x492   : > { %2937 = vst [vmem:[%s4460_s23 + $0x38] sm:$0xff] %v2889_v40   ;;  %v2370_v44 = vmul.f32 %v2338_v25, %v2338_v25  ;;  %v2400_v46 = vadd.f32 %v2399_v24, %v2369_v47  ;;  %v3196_v36 = vpop.f32.mrb[48].mxu0  ;;  %v3334_v40 = vld [vmem:[%s3507_s14 + $0xd8] sm:$0xff] }
 0x493   : > { %2116 = vst [vmem:[%s4451_s19 + $0x88] sm:$0xff] %v3196_v36  ;;  %v2341_v0 = vsub.f32 %v3196_v36, %v3324_v41  ;;  %v2020_v38 = vpop.f32.mrb[49].mxu0 }
 0x494   : > { %v2401_v33 = vadd.f32 %v2400_v46, %v2370_v44  ;;  %2115 = vst [vmem:[%s4451_s19 + $0x80] sm:$0xff] %v2020_v38  ;;  %v2894_v23 = vpack.c.bf16 %v3196_v36, %v2020_v38  ;;  %v2340_v30 = vsub.f32 %v2020_v38, %v3325_v27  ;;  %v3335_v44 = vld [vmem:[%s3507_s14 + $0xd0] sm:$0xff]  ;;  %v3336_v38 = vld [vmem:[%s3507_s14 + $0xe8] sm:$0xff] }
 0x495   : > { %v2373_v32 = vmul.f32 %v2341_v0, %v2341_v0 }
 0x496   : > { %2938 = vst [vmem:[%s4460_s23 + $0x40] sm:$0xff] %v2894_v23   ;;  %v2372_v39 = vmul.f32 %v2340_v30, %v2340_v30  ;;  %v2402_v42 = vadd.f32 %v2401_v33, %v2371_v53  ;;  %v3199_v10 = vpop.f32.mrb[50].mxu0 }
 0x497   : > { %2118 = vst [vmem:[%s4451_s19 + $0x98] sm:$0xff] %v3199_v10  ;;  %v2030_v61 = vpop.f32.mrb[51].mxu0  ;;  %v2343_v29 = vsub.f32 %v3199_v10, %v3326_v45 }
 0x498   : > { %v2403_v17 = vadd.f32 %v2402_v42, %v2372_v39  ;;  %2117 = vst [vmem:[%s4451_s19 + $0x90] sm:$0xff] %v2030_v61  ;;  %v2899_v49 = vpack.c.bf16 %v3199_v10, %v2030_v61  ;;  %v2342_v59 = vsub.f32 %v2030_v61, %v3327_v48  ;;  %v3337_v39 = vld [vmem:[%s3507_s14 + $0xe0] sm:$0xff] }
 0x499   : > { %v2375_v11 = vmul.f32 %v2343_v29, %v2343_v29 }
 0x49a   : > { %2939 = vst [vmem:[%s4460_s23 + $0x48] sm:$0xff] %v2899_v49   ;;  %v2374_v22 = vmul.f32 %v2342_v59, %v2342_v59  ;;  %v2404_v1 = vadd.f32 %v2403_v17, %v2373_v32  ;;  %v3202_v56 = vpop.f32.mrb[52].mxu0  ;;  %v3338_v49 = vld [vmem:[%s3507_s14 + $0xf8] sm:$0xff] }
 0x49b   : > { %2120 = vst [vmem:[%s4451_s19 + $0xa8] sm:$0xff] %v3202_v56  ;;  %v2345_v51 = vsub.f32 %v3202_v56, %v3328_v3  ;;  %v2040_v57 = vpop.f32.mrb[53].mxu0 }
 0x49c   : > { %v2405_v50 = vadd.f32 %v2404_v1, %v2374_v22  ;;  %2119 = vst [vmem:[%s4451_s19 + $0xa0] sm:$0xff] %v2040_v57  ;;  %v2904_v9 = vpack.c.bf16 %v3202_v56, %v2040_v57  ;;  %v2344_v60 = vsub.f32 %v2040_v57, %v3329_v28  ;;  %v3339_v22 = vld [vmem:[%s3507_s14 + $0xf0] sm:$0xff] }
 0x49d   : > { %v2377_v58 = vmul.f32 %v2345_v51, %v2345_v51 }
 0x49e   : > { %2940 = vst [vmem:[%s4460_s23 + $0x50] sm:$0xff] %v2904_v9   ;;  %v2376_v37 = vmul.f32 %v2344_v60, %v2344_v60  ;;  %v2406_v62 = vadd.f32 %v2405_v50, %v2375_v11  ;;  %v3205_v2 = vpop.f32.mrb[54].mxu0 }
 0x49f   : > { %2122 = vst [vmem:[%s4451_s19 + $0xb8] sm:$0xff] %v3205_v2  ;;  %v2050_v14 = vpop.f32.mrb[55].mxu0  ;;  %v2347_v8 = vsub.f32 %v3205_v2, %v3330_v52 }
 0x4a0   : > { %v2407_v19 = vadd.f32 %v2406_v62, %v2376_v37  ;;  %2121 = vst [vmem:[%s4451_s19 + $0xb0] sm:$0xff] %v2050_v14  ;;  %v2909_v13 = vpack.c.bf16 %v3205_v2, %v2050_v14  ;;  %v2346_v43 = vsub.f32 %v2050_v14, %v3331_v35 }
 0x4a1   : > { %v2379_v21 = vmul.f32 %v2347_v8, %v2347_v8 }
 0x4a2   : > { %2941 = vst [vmem:[%s4460_s23 + $0x58] sm:$0xff] %v2909_v13   ;;  %v2378_v4 = vmul.f32 %v2346_v43, %v2346_v43  ;;  %v2408_v6 = vadd.f32 %v2407_v19, %v2377_v58  ;;  %v3208_v7 = vpop.f32.mrb[32].mxu1 }
 0x4a3   : > { %2124 = vst [vmem:[%s4451_s19 + $0xc8] sm:$0xff] %v3208_v7  ;;  %v2349_v34 = vsub.f32 %v3208_v7, %v3332_v5  ;;  %v2060_v55 = vpop.f32.mrb[33].mxu1 }
 0x4a4   : > { %v2409_v15 = vadd.f32 %v2408_v6, %v2378_v4  ;;  %2123 = vst [vmem:[%s4451_s19 + $0xc0] sm:$0xff] %v2060_v55  ;;  %v2914_v12 = vpack.c.bf16 %v3208_v7, %v2060_v55  ;;  %v2348_v54 = vsub.f32 %v2060_v55, %v3333_v20 }
 0x4a5   : > { %v2381_v24 = vmul.f32 %v2349_v34, %v2349_v34 }
 0x4a6   : > { %v2410_v26 = vadd.f32 %v2409_v15, %v2379_v21  ;;  %2942 = vst [vmem:[%s4460_s23 + $0x60] sm:$0xff] %v2914_v12   ;;  %v2380_v47 = vmul.f32 %v2348_v54, %v2348_v54  ;;  %v3211_v31 = vpop.f32.mrb[34].mxu1 }
 0x4a7   : > { %2126 = vst [vmem:[%s4451_s19 + $0xd8] sm:$0xff] %v3211_v31  ;;  %v2070_v63 = vpop.f32.mrb[35].mxu1  ;;  %v2351_v18 = vsub.f32 %v3211_v31, %v3334_v40 }
 0x4a8   : > { %v2411_v16 = vadd.f32 %v2410_v26, %v2380_v47  ;;  %2125 = vst [vmem:[%s4451_s19 + $0xd0] sm:$0xff] %v2070_v63  ;;  %v2919_v25 = vpack.c.bf16 %v3211_v31, %v2070_v63  ;;  %v2350_v46 = vsub.f32 %v2070_v63, %v3335_v44 }
 0x4a9   : > { %v2383_v23 = vmul.f32 %v2351_v18, %v2351_v18 }
 0x4aa   : > { %2943 = vst [vmem:[%s4460_s23 + $0x68] sm:$0xff] %v2919_v25   ;;  %v2382_v36 = vmul.f32 %v2350_v46, %v2350_v46  ;;  %v2412_v41 = vadd.f32 %v2411_v16, %v2381_v24  ;;  %v3214_v0 = vpop.f32.mrb[36].mxu1 }
 0x4ab   : > { %2128 = vst [vmem:[%s4451_s19 + $0xe8] sm:$0xff] %v3214_v0  ;;  %v2353_v53 = vsub.f32 %v3214_v0, %v3336_v38  ;;  %v2080_v33 = vpop.f32.mrb[37].mxu1 }
 0x4ac   : > { %v2413_v27 = vadd.f32 %v2412_v41, %v2382_v36  ;;  %2127 = vst [vmem:[%s4451_s19 + $0xe0] sm:$0xff] %v2080_v33  ;;  %v2924_v30 = vpack.c.bf16 %v3214_v0, %v2080_v33  ;;  %v2352_v42 = vsub.f32 %v2080_v33, %v3337_v39 }
 0x4ad   : > { %v2385_v17 = vmul.f32 %v2353_v53, %v2353_v53 }
 0x4ae   : > { %2944 = vst [vmem:[%s4460_s23 + $0x70] sm:$0xff] %v2924_v30   ;;  %v2384_v10 = vmul.f32 %v2352_v42, %v2352_v42  ;;  %v2414_v32 = vadd.f32 %v2413_v27, %v2383_v23  ;;  %v3217_v61 = vpop.f32.mrb[38].mxu1 }
 0x4af   : > { %2130 = vst [vmem:[%s4451_s19 + $0xf8] sm:$0xff] %v3217_v61  ;;  %v2090_v45 = vpop.f32.mrb[39].mxu1  ;;  %v2355_v48 = vsub.f32 %v3217_v61, %v3338_v49 }
 0x4b0   : > { %v2415_v29 = vadd.f32 %v2414_v32, %v2384_v10  ;;  %2129 = vst [vmem:[%s4451_s19 + $0xf0] sm:$0xff] %v2090_v45  ;;  %v2929_v59 = vpack.c.bf16 %v3217_v61, %v2090_v45  ;;  %v2354_v1 = vsub.f32 %v2090_v45, %v3339_v22 }
 0x4b1   : > { %v2387_v51 = vmul.f32 %v2355_v48, %v2355_v48 }
 0x4b2   : > { %2945 = vst [vmem:[%s4460_s23 + $0x78] sm:$0xff] %v2929_v59   ;;  %v2386_v56 = vmul.f32 %v2354_v1, %v2354_v1  ;;  %v2416_v3 = vadd.f32 %v2415_v29, %v2385_v17 }
 0x4b4   : > { %v2417_v57 = vadd.f32 %v2416_v3, %v2386_v56 }
 0x4b6   : > { %v2418_v11 = vadd.f32 %v2417_v57, %v2387_v51 }
 0x4b8   : > { %v2419_v50 = vrot.slane %v2418_v11, 4 }
 0x4ba   : > { %v2420_v9 = vadd.f32 %v2419_v50, %v2418_v11 }
 0x4bc   : > { %v2421_v28 = vrot.slane %v2420_v9, 2 }
 0x4be   : > { %v2422_v60 = vadd.f32 %v2421_v28, %v2420_v9 }
 0x4c0   : > { %v2423_v37 = vrot.slane %v2422_v60, 1 }
 0x4c2   : > { %v2424_v62 = vadd.f32 %v2423_v37, %v2422_v60 }
 0x4c4   : > { %2425 = vst [vmem:[%s442_s27] sm:$0x1] %v2424_v62 }
 0x4c5 PF: > { %s22_s17 = sadd.s32 1, %s3346_s17  }
 0x4c6   : > { %p19_p5 = scmp.ge.s32.totalorder %s22_s17, 4  }
 0x4c8   :  { %21 = sbr.rel (!%p19_p5) target bundleno = 1 (0x1), region = 134 }

// kernel: vqvae_forward.4
= control target key start
LH: loop header
LB: loop body
LE: loop exit
PB: predicated region body
PF: predicated region fallthrough
CT: control target
= control target key end

     0   :  { %s3229_s12 = smov 0   ;;  %s3231_s13 = smov 0   ;;  %s3696_s0 = inlined_call_operand.vmem [shape: bf16[2,288,384], index: 0, kind: input, shape index: {}]   ;;  %s3697_s1 = inlined_call_operand.vmem [shape: bf16[3,384,128], index: 1, kind: input, shape index: {}]   ;;  %s3698_s2 = inlined_call_operand.vmem [shape: f32[1,128], index: 2, kind: input, shape index: {}]   ;;  %s3699_s3 = inlined_call_operand.vmem [shape: bf16[2,256,128], index: 3, kind: output, shape index: {}]  }
   0x1   :  { %s3233_s14 = smov 0   ;;  %s3235_s15 = smov 0  }
   0x2   :  { %s3237_s16 = smov 0  }
   0x3 LB: > { %s22_s17 = sadd.s32 1, %s3199_s14  ;;  %s25_s18 = sadd.s32 1, %s3203_s15  ;;  %s3207_s16 = sphi %s3237_s16, %s13_s16   ;;  %s3203_s15 = sphi %s3235_s15, %s3703_s15   ;;  %s3199_s14 = sphi %s3233_s14, %s3702_s14   ;;  %s3195_s13 = sphi %s3231_s13, %s3701_s13   ;;  %s3191_s12 = sphi %s3229_s12, %s3700_s12  }
   0x4   : > { %p23_p0 = scmp.ge.s32.totalorder %s22_s17, 2  ;;  %p2194_p1 = scmp.ge.s32.totalorder %s3207_s16, 1 }
   0x5   : > { %p151_p2 = scmp.lt.s32.totalorder %s3207_s16, 5 }
   0x6   : > { %s3705_s17 = smov (%p23_p0, %s22_s17), 0  ;;  %s3707_s18 = smov (!%p23_p0, %s25_s18), %s3203_s15 }
   0x7   : > { %p152_p3 = pnand %p2194_p1, %p151_p2  ;;  %p27_p4 = scmp.ge.s32.totalorder %s3707_s18, 2 }
   0x8   : > { %v3001_v0 = vld [vmem:[%s3697_s1 + $0x40] sm:$0xff] (!%p152_p3)   ;;  %v3004_v3 = vld [vmem:[%s3697_s1 + $0x48] sm:$0xff] (!%p152_p3)   ;;  %v3007_v6 = vld [vmem:[%s3697_s1 + $0x50] sm:$0xff] (!%p152_p3)   ;;  %p179_p5 = scmp.lt.s32.totalorder (!%p152_p3), %s3195_s13, 1  ;;  %s3298_s21 = sshll.u32 (!%p152_p3), %s3191_s12, 7 }
   0x9   : > { %s3709_s18 = smov (%p27_p4, %s3707_s18), 0  ;;  %155 = sbr.rel (%p152_p3) target bundleno = 404 (0x194), region = 32 }
   0xa   : > { %v3002_v1 = vld [vmem:[%s3697_s1 + $0x80] sm:$0xff] (!%p152_p3)   ;;  %2528 = vmatprep.subr.bf16.mxu0 (!%p152_p3), %v3001_v0  ;;  %v3005_v4 = vld [vmem:[%s3697_s1 + $0x88] sm:$0xff] (!%p152_p3)   ;;  %v3008_v7 = vld [vmem:[%s3697_s1 + $0x90] sm:$0xff] (!%p152_p3)   ;;  %s196_s28 = sshra.s32 (!%p152_p3), %s3298_s21, 3  ;;  %s763_s7 = sadd.s32 (!%p152_p3), 16, %s3298_s21 }
   0xb   : > { %v3003_v2 = vld [vmem:[%s3697_s1] sm:$0xff] (!%p152_p3)   ;;  %2768 = vmatprep.subr.bf16.mxu1 (!%p152_p3), %v3002_v1  ;;  %v3006_v5 = vld [vmem:[%s3697_s1 + $0x8] sm:$0xff] (!%p152_p3)   ;;  %v3009_v8 = vld [vmem:[%s3697_s1 + $0x10] sm:$0xff] (!%p152_p3)   ;;  %s2462_s9 = smul.u32 (!%p152_p3), 12, %s196_s28  ;;  %s764_s19 = sshra.s32 (!%p152_p3), %s763_s7, 3 }
   0xc   : > { %2529 = vmatpush3.bf16.msra.mxu0 (!%p152_p3), %v3003_v2  ;;  %2769 = vmatpush3.bf16.msra.mxu1 (!%p152_p3), %v3002_v1  ;;  %v3010_v9 = vld [vmem:[%s3697_s1 + $0x58] sm:$0xff] (!%p152_p3)   ;;  %v3013_v12 = vld [vmem:[%s3697_s1 + $0x60] sm:$0xff] (!%p152_p3)   ;;  %v3016_v15 = vld [vmem:[%s3697_s1 + $0x68] sm:$0xff] (!%p152_p3)   ;;  %s2463_s24 = smul.u32 (!%p152_p3), 12, %s764_s19  ;;  %s1364_s5 = sadd.s32 (!%p152_p3), 32, %s3298_s21 }
   0xd   : > { %2530 = vmatprep.subr.bf16.mxu0 (!%p152_p3), %v3004_v3  ;;  %2770 = vmatprep.subr.bf16.mxu1 (!%p152_p3), %v3005_v4  ;;  %v3011_v10 = vld [vmem:[%s3697_s1 + $0x98] sm:$0xff] (!%p152_p3)   ;;  %v3014_v13 = vld [vmem:[%s3697_s1 + $0xa0] sm:$0xff] (!%p152_p3)   ;;  %v3017_v16 = vld [vmem:[%s3697_s1 + $0xa8] sm:$0xff] (!%p152_p3)  }
   0xe   : > { %v3012_v11 = vld [vmem:[%s3697_s1 + $0x18] sm:$0xff] (!%p152_p3)   ;;  %v3015_v14 = vld [vmem:[%s3697_s1 + $0x20] sm:$0xff] (!%p152_p3)   ;;  %v3018_v17 = vld [vmem:[%s3697_s1 + $0x28] sm:$0xff] (!%p152_p3)  }
   0xf   : > { %v3019_v18 = vld [vmem:[%s3697_s1 + $0x70] sm:$0xff] (!%p152_p3)   ;;  %v3022_v21 = vld [vmem:[%s3697_s1 + $0x78] sm:$0xff] (!%p152_p3)   ;;  %v3030_v26 = vld [vmem:[%s3697_s1 + $0x100] sm:$0xff] (!%p152_p3)  }
  0x10   : > { %2531 = vmatpush3.bf16.msra.mxu0 %v3006_v5  ;;  %2771 = vmatpush3.bf16.msra.mxu1 %v3005_v4  ;;  %s3711_s13 = smov (!%p179_p5, %s3195_s13), 1  ;;  %v3020_v19 = vld [vmem:[%s3697_s1 + $0xb0] sm:$0xff]   ;;  %v3023_v22 = vld [vmem:[%s3697_s1 + $0xb8] sm:$0xff]   ;;  %v3031_v28 = vld [vmem:[%s3697_s1 + $0x1c0] sm:$0xff]  }
  0x11   : > { %2532 = vmatprep.subr.bf16.mxu0 %v3007_v6  ;;  %2772 = vmatprep.subr.bf16.mxu1 %v3008_v7  ;;  %s2960_s4 = smul.u32 432, %s3711_s13  ;;  %v3021_v20 = vld [vmem:[%s3697_s1 + $0x30] sm:$0xff]   ;;  %v3024_v25 = vld [vmem:[%s3697_s1 + $0x38] sm:$0xff]   ;;  %v3032_v30 = vld [vmem:[%s3697_s1 + $0xc0] sm:$0xff]  }
  0x12   : > { %v3033_v31 = vld [vmem:[%s3697_s1 + $0x180] sm:$0xff]   ;;  %v3034_v32 = vld [vmem:[%s3697_s1 + $0x108] sm:$0xff]   ;;  %v3041_v38 = vld [vmem:[%s3697_s1 + $0x110] sm:$0xff]  }
  0x13   : > { %s3329_s22 = scalar_lea.vmem %s3696_s0, %s2960_s4  ;;  %v3035_v35 = vld [vmem:[%s3697_s1 + $0xc8] sm:$0xff]   ;;  %v3043_v40 = vld [vmem:[%s3697_s1 + $0xd0] sm:$0xff]   ;;  %v3045_v42 = vld [vmem:[%s3697_s1 + $0x118] sm:$0xff]  }
  0x14   : > { %2533 = vmatpush3.bf16.msra.mxu0 %v3009_v8  ;;  %2773 = vmatpush3.bf16.msra.mxu1 %v3008_v7  ;;  %s3341_s29 = scalar_lea.vmem %s3329_s22, %s2462_s9  ;;  %v3042_v39 = vld [vmem:[%s3697_s1 + $0x1c8] sm:$0xff]   ;;  %v3046_v44 = vld [vmem:[%s3697_s1 + $0xd8] sm:$0xff]   ;;  %v3052_v48 = vld [vmem:[%s3697_s1 + $0x120] sm:$0xff]   ;;  %s3439_s7 = scalar_lea.vmem %s3329_s22, %s2463_s24 }
  0x15   : > { %2534 = vmatprep.subr.bf16.mxu0 %v3010_v9  ;;  %2774 = vmatprep.subr.bf16.mxu1 %v3011_v10  ;;  %v3027_v23 = vld [vmem:[%s3341_s29 + $0x4] ss:$12 sps:$4 sm:$0xff]   ;;  %v3028_v24 = vld [vmem:[%s3341_s29 + $0x8] ss:$12 sps:$4 sm:$0xff]   ;;  %v3025_v27 = vld [vmem:[%s3341_s29] ss:$12 sps:$4 sm:$0xff]  }
  0x16   : > { %585 = vmatprep.mubr.bf16.mxu0 %v3027_v23  ;;  %2784 = vmatprep.mubr.bf16.mxu1 %v3028_v24  ;;  %v3029_v29 = vld [vmem:[%s3341_s29 + $0x20] ss:$12 sps:$4 sm:$0xff]   ;;  %v3036_v33 = vld [vmem:[%s3341_s29 + $0x1c] ss:$12 sps:$4 sm:$0xff]   ;;  %v3038_v34 = vld [vmem:[%s3341_s29 + $0x38] ss:$12 sps:$4 sm:$0xff]  }
  0x17   : > { %v3039_v36 = vld [vmem:[%s3341_s29 + $0x18] ss:$12 sps:$4 sm:$0xff]   ;;  %v3040_v37 = vld [vmem:[%s3341_s29 + $0x50] ss:$12 sps:$4 sm:$0xff]   ;;  %v3044_v41 = vld [vmem:[%s3697_s1 + $0x188] sm:$0xff]   ;;  %s1365_s9 = sshra.s32 %s1364_s5, 3 }
  0x18   : > { %2535 = vmatpush3.bf16.msra.mxu0 %v3012_v11  ;;  %2775 = vmatpush3.bf16.msra.mxu1 %v3011_v10  ;;  %v3047_v43 = vld [vmem:[%s3341_s29 + $0x34] ss:$12 sps:$4 sm:$0xff]   ;;  %v3050_v46 = vld [vmem:[%s3341_s29 + $0x30] ss:$12 sps:$4 sm:$0xff]   ;;  %v3056_v52 = vld [vmem:[%s3697_s1 + $0x128] sm:$0xff]   ;;  %s2464_s20 = smul.u32 12, %s1365_s9 }
  0x19   : > { %2536 = vmatprep.subr.bf16.mxu0 %v3013_v12  ;;  %2776 = vmatprep.subr.bf16.mxu1 %v3014_v13  ;;  %v3049_v45 = vld [vmem:[%s3341_s29 + $0x68] ss:$12 sps:$4 sm:$0xff]   ;;  %v3051_v47 = vld [vmem:[%s3341_s29 + $0x80] ss:$12 sps:$4 sm:$0xff]   ;;  %v3060_v55 = vld [vmem:[%s3341_s29 + $0x98] ss:$12 sps:$4 sm:$0xff]  }
  0x1a   : > { %v3053_v49 = vld [vmem:[%s3697_s1 + $0x1d0] sm:$0xff]   ;;  %v3054_v50 = vld [vmem:[%s3697_s1 + $0xe0] sm:$0xff]   ;;  %v3057_v53 = vld [vmem:[%s3697_s1 + $0xe8] sm:$0xff]   ;;  %s3496_s30 = scalar_lea.vmem %s3329_s22, %s2464_s20 }
  0x1b   : > { %v3055_v51 = vld [vmem:[%s3697_s1 + $0x190] sm:$0xff]   ;;  %v3058_v54 = vld [vmem:[%s3341_s29 + $0x4c] ss:$12 sps:$4 sm:$0xff]   ;;  %v3075_v4 = vld [vmem:[%s3697_s1 + $0x140] sm:$0xff]  }
  0x1c   : > { %2537 = vmatpush3.bf16.msra.mxu0 %v3015_v14  ;;  %2777 = vmatpush3.bf16.msra.mxu1 %v3014_v13  ;;  %v3061_v56 = vld [vmem:[%s3341_s29 + $0x48] ss:$12 sps:$4 sm:$0xff]   ;;  %v3062_v57 = vld [vmem:[%s3341_s29 + $0xb0] ss:$12 sps:$4 sm:$0xff]   ;;  %v3071_v1 = vld [vmem:[%s3439_s7] ss:$12 sps:$4 sm:$0xff]  }
  0x1d   : > { %2538 = vmatprep.subr.bf16.mxu0 %v3016_v15  ;;  %2778 = vmatprep.subr.bf16.mxu1 %v3017_v16  ;;  %v3063_v58 = vld [vmem:[%s3697_s1 + $0x130] sm:$0xff]   ;;  %v3064_v59 = vld [vmem:[%s3697_s1 + $0x1d8] sm:$0xff]   ;;  %v3074_v3 = vld [vmem:[%s3341_s29 + $0x60] ss:$12 sps:$4 sm:$0xff]  }
  0x1e   : > { %v3065_v60 = vld [vmem:[%s3697_s1 + $0xf0] sm:$0xff]   ;;  %v3066_v61 = vld [vmem:[%s3697_s1 + $0x198] sm:$0xff]   ;;  %v3076_v5 = vld [vmem:[%s3697_s1 + $0x1e0] sm:$0xff]  }
  0x1f   : > { %v3067_v62 = vld [vmem:[%s3697_s1 + $0x138] sm:$0xff]   ;;  %v3069_v0 = vld [vmem:[%s3341_s29 + $0x64] ss:$12 sps:$4 sm:$0xff]   ;;  %v3084_v11 = vld [vmem:[%s3697_s1 + $0x148] sm:$0xff]  }
  0x20   : > { %2539 = vmatpush3.bf16.msra.mxu0 %v3018_v17  ;;  %2779 = vmatpush3.bf16.msra.mxu1 %v3017_v16  ;;  %v3068_v63 = vld [vmem:[%s3697_s1 + $0xf8] sm:$0xff]   ;;  %v3073_v2 = vld [vmem:[%s3439_s7 + $0x4] ss:$12 sps:$4 sm:$0xff]   ;;  %v3085_v12 = vld [vmem:[%s3697_s1 + $0x1e8] sm:$0xff]  }
  0x21   : > { %2540 = vmatprep.subr.bf16.mxu0 %v3019_v18  ;;  %2780 = vmatprep.subr.bf16.mxu1 %v3020_v19  ;;  %v3077_v6 = vld [vmem:[%s3697_s1 + $0x1a0] sm:$0xff]   ;;  %v3078_v7 = vld [vmem:[%s3341_s29 + $0x7c] ss:$12 sps:$4 sm:$0xff]   ;;  %v3093_v16 = vld [vmem:[%s3697_s1 + $0x150] sm:$0xff]  }
  0x22   : > { %v3080_v8 = vld [vmem:[%s3439_s7 + $0x1c] ss:$12 sps:$4 sm:$0xff]   ;;  %v3082_v9 = vld [vmem:[%s3341_s29 + $0x78] ss:$12 sps:$4 sm:$0xff]   ;;  %v3087_v14 = vld [vmem:[%s3341_s29 + $0x94] ss:$12 sps:$4 sm:$0xff]  }
  0x23   : > { %v3083_v10 = vld [vmem:[%s3439_s7 + $0x18] ss:$12 sps:$4 sm:$0xff]   ;;  %v3086_v13 = vld [vmem:[%s3697_s1 + $0x1a8] sm:$0xff]   ;;  %v3089_v15 = vld [vmem:[%s3439_s7 + $0x34] ss:$12 sps:$4 sm:$0xff]  }
  0x24   : > { %2541 = vmatpush3.bf16.msra.mxu0 %v3021_v20  ;;  %2781 = vmatpush3.bf16.msra.mxu1 %v3020_v19  ;;  %v3091_v17 = vld [vmem:[%s3341_s29 + $0x90] ss:$12 sps:$4 sm:$0xff]  }
  0x25   : > { %2542 = vmatprep.subr.bf16.mxu0 %v3022_v21  ;;  %2782 = vmatprep.subr.bf16.mxu1 %v3023_v22  ;;  %v3094_v18 = vld [vmem:[%s3697_s1 + $0x1f0] sm:$0xff]   ;;  %v3096_v21 = vld [vmem:[%s3341_s29 + $0xac] ss:$12 sps:$4 sm:$0xff]  }
  0x26   : > { %v3095_v19 = vld [vmem:[%s3697_s1 + $0x1b0] sm:$0xff]   ;;  %v3102_v23 = vld [vmem:[%s3697_s1 + $0x158] sm:$0xff]  }
  0x27   : > { %v3092_v20 = vld [vmem:[%s3439_s7 + $0x30] ss:$12 sps:$4 sm:$0xff]  }
  0x28   : > { %2543 = vmatpush3.bf16.msra.mxu0 %v3024_v25  ;;  %2783 = vmatpush3.bf16.msra.mxu1 %v3023_v22  ;;  %v3098_v22 = vld [vmem:[%s3439_s7 + $0x4c] ss:$12 sps:$4 sm:$0xff]  }
  0x29   : > { %2608 = vmatprep.subr.bf16.mxu1 %v3030_v26  ;;  %2688 = vmatprep.subr.bf16.mxu0 %v3031_v28  ;;  %v3103_v24 = vld [vmem:[%s3697_s1 + $0x1f8] sm:$0xff]   ;;  %v3100_v26 = vld [vmem:[%s3341_s29 + $0xa8] ss:$12 sps:$4 sm:$0xff]   ;;  %v3105_v28 = vld [vmem:[%s3439_s7 + $0x64] ss:$12 sps:$4 sm:$0xff]  }
  0x2a   : > { %v3104_v25 = vld [vmem:[%s3697_s1 + $0x1b8] sm:$0xff]  }
  0x2b   : > { %586 = vmatmul.mubr.bf16.vlgmr.msra.gmra.mrb[0].mxu0 %v3025_v27  ;;  %2785 = vmatmul.mubr.bf16.vlgmr.msra.gmra.mrb[0].mxu1 %v3029_v29  ;;  %v3101_v27 = vld [vmem:[%s3439_s7 + $0x48] ss:$12 sps:$4 sm:$0xff]   ;;  %v3109_v29 = vld [vmem:[%s3496_s30 + $0x4] ss:$12 sps:$4 sm:$0xff]  }
  0x2c   : > { %2609 = vmatpush3.bf16.msra.mxu1 %v3032_v30  ;;  %2689 = vmatpush3.bf16.msra.mxu0 %v3033_v31  ;;  %v3111_v30 = vld [vmem:[%s3697_s1 + $0x160] sm:$0xff]  }
  0x2d   : > { %2610 = vmatprep.subr.bf16.mxu1 %v3034_v32  ;;  %593 = vmatprep.mubr.bf16.mxu0 %v3036_v33  ;;  %v3508_v31 = vld [vmem:[%s3697_s1 + $0x200] sm:$0xff]   ;;  %v3118_v32 = vld [vmem:[%s3697_s1 + $0x168] sm:$0xff]  }
  0x2e   : > { %2788 = vmatprep.mubr.bf16.mxu1 %v3038_v34  ;;  %2690 = vmatprep.subr.bf16.mxu0 %v3042_v39  ;;  %v3107_v33 = vld [vmem:[%s3496_s30] ss:$12 sps:$4 sm:$0xff]   ;;  %v3117_v39 = vld [vmem:[%s3439_s7 + $0x78] ss:$12 sps:$4 sm:$0xff]  }
  0x2f   : > { %v3110_v34 = vld [vmem:[%s3439_s7 + $0x60] ss:$12 sps:$4 sm:$0xff]  }
  0x30   : > { %2611 = vmatpush3.bf16.msra.mxu1 %v3035_v35  ;;  %2691 = vmatpush3.bf16.msra.mxu0 %v3044_v41  ;;  %v3113_v35 = vld [vmem:[%s3439_s7 + $0x7c] ss:$12 sps:$4 sm:$0xff]  }
  0x31   : > { %2612 = vmatprep.subr.bf16.mxu1 %v3041_v38  ;;  %2692 = vmatprep.subr.bf16.mxu0 %v3053_v49  ;;  %v3524_v38 = vld [vmem:[%s3697_s1 + $0x208] sm:$0xff]   ;;  %v3134_v41 = vld [vmem:[%s3697_s1 + $0x178] sm:$0xff]  }
  0x32   : > { %v3129_v49 = vld [vmem:[%s3439_s7 + $0xac] ss:$12 sps:$4 sm:$0xff]  }
  0x33   : > { %594 = vmatmul.mubr.bf16.gmra.mrb[4].mxu0 %v3039_v36  ;;  %2789 = vmatmul.mubr.bf16.gmra.mrb[4].mxu1 %v3040_v37  ;;  %v3115_v36 = vld [vmem:[%s3496_s30 + $0x1c] ss:$12 sps:$4 sm:$0xff]   ;;  %v3126_v37 = vld [vmem:[%s3697_s1 + $0x170] sm:$0xff]  }
  0x34   : > { %2613 = vmatpush3.bf16.msra.mxu1 %v3043_v40  ;;  %601 = vmatprep.mubr.bf16.mxu0 %v3047_v43  ;;  %v3532_v40 = vld [vmem:[%s3697_s1 + $0x210] sm:$0xff]  }
  0x35   : > { %2614 = vmatprep.subr.bf16.mxu1 %v3045_v42  ;;  %2792 = vmatprep.mubr.bf16.mxu1 %v3049_v45  ;;  %v3119_v42 = vld [vmem:[%s3496_s30 + $0x18] ss:$12 sps:$4 sm:$0xff]   ;;  %v3121_v43 = vld [vmem:[%s3439_s7 + $0x94] ss:$12 sps:$4 sm:$0xff]  }
  0x36   : > { %2693 = vmatpush3.bf16.msra.mxu0 %v3055_v51  ;;  %v3136_v45 = vld [vmem:[%s3697_s1 + $0x218] sm:$0xff]   ;;  %v3148_v51 = vld [vmem:[%s3697_s1 + $0x228] sm:$0xff]  }
  0x37   : > { %2694 = vmatprep.subr.bf16.mxu0 %v3064_v59  ;;  %v3141_v59 = vld [vmem:[%s3496_s30 + $0x60] ss:$12 sps:$4 sm:$0xff]  }
  0x38   : > { %2615 = vmatpush3.bf16.msra.mxu1 %v3046_v44  ;;  %v3123_v44 = vld [vmem:[%s3496_s30 + $0x34] ss:$12 sps:$4 sm:$0xff]  }
  0x39   : > { %2616 = vmatprep.subr.bf16.mxu1 %v3052_v48  ;;  %v3142_v48 = vld [vmem:[%s3697_s1 + $0x220] sm:$0xff]  }
  0x3a   : > { %2695 = vmatpush3.bf16.msra.mxu0 %v3066_v61  ;;  %v3144_v61 = vld [vmem:[%s3496_s30 + $0x7c] ss:$12 sps:$4 sm:$0xff]  }
  0x3b   : > { %602 = vmatmul.mubr.bf16.gmra.mrb[8].mxu0 %v3050_v46  ;;  %2793 = vmatmul.mubr.bf16.gmra.mrb[8].mxu1 %v3051_v47  ;;  %v3125_v46 = vld [vmem:[%s3439_s7 + $0x90] ss:$12 sps:$4 sm:$0xff]  }
  0x3c   : > { %2617 = vmatpush3.bf16.msra.mxu1 %v3054_v50  ;;  %609 = vmatprep.mubr.bf16.mxu0 %v3058_v54  ;;  %v3127_v47 = vld [vmem:[%s3496_s30 + $0x30] ss:$12 sps:$4 sm:$0xff]   ;;  %v3131_v50 = vld [vmem:[%s3496_s30 + $0x4c] ss:$12 sps:$4 sm:$0xff]  }
  0x3d   : > { %2618 = vmatprep.subr.bf16.mxu1 %v3056_v52  ;;  %2796 = vmatprep.mubr.bf16.mxu1 %v3060_v55  ;;  %v3133_v52 = vld [vmem:[%s3439_s7 + $0xa8] ss:$12 sps:$4 sm:$0xff]  }
  0x3e   : > { %2696 = vmatprep.subr.bf16.mxu0 %v3076_v5  ;;  %v3154_v54 = vld [vmem:[%s3697_s1 + $0x230] sm:$0xff]   ;;  %v3156_v5 = vld [vmem:[%s3496_s30 + $0xac] ss:$12 sps:$4 sm:$0xff]  }
  0x3f   : > { %2697 = vmatpush3.bf16.msra.mxu0 %v3077_v6  ;;  %v3137_v55 = vld [vmem:[%s3439_s7 + $0x8] ss:$12 sps:$4 sm:$0xff]   ;;  %v3158_v6 = vld [vmem:[%s3439_s7 + $0xb0] ss:$12 sps:$4 sm:$0xff]  }
  0x40   : > { %2619 = vmatpush3.bf16.msra.mxu1 %v3057_v53  ;;  %2698 = vmatprep.subr.bf16.mxu0 %v3085_v12  ;;  %v3135_v53 = vld [vmem:[%s3496_s30 + $0x48] ss:$12 sps:$4 sm:$0xff]   ;;  %v3165_v12 = vld [vmem:[%s3496_s30 + $0x38] ss:$12 sps:$4 sm:$0xff]  }
  0x41   : > { %2620 = vmatprep.subr.bf16.mxu1 %v3063_v58  ;;  %v3140_v58 = vld [vmem:[%s3439_s7 + $0x20] ss:$12 sps:$4 sm:$0xff]  }
  0x43   : > { %610 = vmatmul.mubr.bf16.gmra.mrb[12].mxu0 %v3061_v56  ;;  %2797 = vmatmul.mubr.bf16.gmra.mrb[12].mxu1 %v3062_v57  ;;  %v3138_v56 = vld [vmem:[%s3496_s30 + $0x64] ss:$12 sps:$4 sm:$0xff]   ;;  %v3160_v57 = vld [vmem:[%s3697_s1 + $0x238] sm:$0xff]  }
  0x44   : > { %2621 = vmatpush3.bf16.msra.mxu1 %v3065_v60  ;;  %617 = vmatprep.mubr.bf16.mxu0 %v3069_v0  ;;  %v3143_v60 = vld [vmem:[%s3439_s7 + $0x38] ss:$12 sps:$4 sm:$0xff]   ;;  %v3149_v0 = vld [vmem:[%s3439_s7 + $0x68] ss:$12 sps:$4 sm:$0xff]  }
  0x45   : > { %2622 = vmatprep.subr.bf16.mxu1 %v3067_v62  ;;  %1154 = vmatprep.mubr.bf16.mxu1 %v3073_v2  ;;  %v3146_v62 = vld [vmem:[%s3439_s7 + $0x50] ss:$12 sps:$4 sm:$0xff]   ;;  %v3152_v2 = vld [vmem:[%s3439_s7 + $0x80] ss:$12 sps:$4 sm:$0xff]  }
  0x46   : > { %2699 = vmatpush3.bf16.msra.mxu0 %v3086_v13  ;;  %v3166_v13 = vld [vmem:[%s3496_s30 + $0x98] ss:$12 sps:$4 sm:$0xff]  }
  0x47   : > { %2700 = vmatprep.subr.bf16.mxu0 %v3094_v18 }
  0x48   : > { %2623 = vmatpush3.bf16.msra.mxu1 %v3068_v63  ;;  %v3147_v63 = vld [vmem:[%s3496_s30 + $0x78] ss:$12 sps:$4 sm:$0xff]  }
  0x49   : > { %2800 = vmatprep.subr.bf16.mxu1 %v3075_v4 }
  0x4a   : > { %2701 = vmatpush3.bf16.msra.mxu0 %v3095_v19 }
  0x4b   : > { %618 = vmatmul.mubr.bf16.gmra.mrb[16].mxu0 %v3074_v3  ;;  %1155 = vmatmul.mubr.bf16.vlgmr.msra.gmra.mrb[16].mxu1 %v3071_v1  ;;  %v3150_v1 = vld [vmem:[%s3496_s30 + $0x94] ss:$12 sps:$4 sm:$0xff]   ;;  %v3153_v3 = vld [vmem:[%s3496_s30 + $0x90] ss:$12 sps:$4 sm:$0xff]  }
  0x4c   : > { %2801 = vmatpush3.bf16.msra.mxu1 %v3075_v4  ;;  %625 = vmatprep.mubr.bf16.mxu0 %v3078_v7  ;;  %v3155_v4 = vld [vmem:[%s3439_s7 + $0x98] ss:$12 sps:$4 sm:$0xff]   ;;  %v3159_v7 = vld [vmem:[%s3496_s30 + $0xa8] ss:$12 sps:$4 sm:$0xff]   ;;  %s2196_s7 = sshll.u32 %s3191_s12, 4 }
  0x4d   : > { %1162 = vmatprep.mubr.bf16.mxu1 %v3080_v8  ;;  %2802 = vmatprep.subr.bf16.mxu1 %v3084_v11  ;;  %v3161_v8 = vld [vmem:[%s3496_s30 + $0x8] ss:$12 sps:$4 sm:$0xff]   ;;  %p187_p6 = scmp.lt.s32.totalorder %s2196_s7, 31 }
  0x4e   : > { %2702 = vmatprep.subr.bf16.mxu0 %v3103_v24 }
  0x4f   : > { %2703 = vmatpush3.bf16.msra.mxu0 %v3104_v25  ;;  %s3713_s7 = smov (!%p187_p6, %s2196_s7), 31 }
  0x50   : > { %2803 = vmatpush3.bf16.msra.mxu1 %v3084_v11  ;;  %2832 = vmatprep.subr.bf16.mxu0 %v3508_v31  ;;  %v3164_v11 = vld [vmem:[%s3496_s30 + $0x80] ss:$12 sps:$4 sm:$0xff]  }
  0x51   : > { %2804 = vmatprep.subr.bf16.mxu1 %v3093_v16 }
  0x53   : > { %626 = vmatmul.mubr.bf16.gmra.mrb[20].mxu0 %v3082_v9  ;;  %1163 = vmatmul.mubr.bf16.gmra.mrb[20].mxu1 %v3083_v10  ;;  %v3162_v9 = vld [vmem:[%s3496_s30 + $0x68] ss:$12 sps:$4 sm:$0xff]   ;;  %v3163_v10 = vld [vmem:[%s3496_s30 + $0x20] ss:$12 sps:$4 sm:$0xff]  }
  0x54   : > { %633 = vmatprep.mubr.bf16.mxu0 %v3087_v14  ;;  %1170 = vmatprep.mubr.bf16.mxu1 %v3089_v15  ;;  %v3167_v14 = vld [vmem:[%s3496_s30 + $0x50] ss:$12 sps:$4 sm:$0xff]  }
  0x55   : > { %2805 = vmatpush3.bf16.msra.mxu1 %v3093_v16  ;;  %v3168_v15 = vld [vmem:[%s3496_s30 + $0xb0] ss:$12 sps:$4 sm:$0xff]   ;;  %s2197_s30 = sshll.u32 %s3711_s13, 5 }
  0x56   : > { %2806 = vmatprep.subr.bf16.mxu1 %v3102_v23  ;;  %s190_s12 = sadd.s32 %s2197_s30, %s3713_s7 }
  0x57   : > { %s2198_s13 = sshll.u32 %s190_s12, 2 }
  0x58   : > { %s3658_s19 = scalar_lea.vmem %s3699_s3, %s2198_s13 }
  0x59   : > { %2807 = vmatpush3.bf16.msra.mxu1 %v3102_v23 }
  0x5a   : > { %2808 = vmatprep.subr.bf16.mxu1 %v3111_v30 }
  0x5b   : > { %634 = vmatmul.mubr.bf16.gmra.mrb[24].mxu0 %v3091_v17  ;;  %1171 = vmatmul.mubr.bf16.gmra.mrb[24].mxu1 %v3092_v20 }
  0x5c   : > { %641 = vmatprep.mubr.bf16.mxu0 %v3096_v21  ;;  %1178 = vmatprep.mubr.bf16.mxu1 %v3098_v22 }
  0x5d   : > { %2809 = vmatpush3.bf16.msra.mxu1 %v3111_v30 }
  0x5e   : > { %2810 = vmatprep.subr.bf16.mxu1 %v3118_v32 }
  0x61   : > { %2811 = vmatpush3.bf16.msra.mxu1 %v3118_v32 }
  0x62   : > { %2812 = vmatprep.subr.bf16.mxu1 %v3126_v37 }
  0x63   : > { %642 = vmatmul.mubr.bf16.gmra.mrb[28].mxu0 %v3100_v26  ;;  %1179 = vmatmul.mubr.bf16.gmra.mrb[28].mxu1 %v3101_v27 }
  0x64   : > { %1186 = vmatprep.mubr.bf16.mxu1 %v3105_v28  ;;  %1755 = vmatprep.mubr.bf16.mxu0 %v3109_v29 }
  0x65   : > { %2813 = vmatpush3.bf16.msra.mxu1 %v3126_v37 }
  0x66   : > { %2814 = vmatprep.subr.bf16.mxu1 %v3134_v41 }
  0x69   : > { %2815 = vmatpush3.bf16.msra.mxu1 %v3134_v41 }
  0x6a   : > { %2864 = vmatprep.subr.bf16.mxu1 %v3508_v31 }
  0x6b   : > { %1187 = vmatmul.mubr.bf16.gmra.mrb[32].mxu1 %v3110_v34  ;;  %1756 = vmatmul.mubr.bf16.vlgmr.msra.gmra.mrb[32].mxu0 %v3107_v33 }
  0x6c   : > { %2833 = vmatpush3.bf16.msra.mxu0 %v3508_v31  ;;  %1194 = vmatprep.mubr.bf16.mxu1 %v3113_v35 }
  0x6d   : > { %1763 = vmatprep.mubr.bf16.mxu0 %v3115_v36  ;;  %2834 = vmatprep.subr.bf16.mxu0 %v3524_v38 }
  0x70   : > { %2835 = vmatpush3.bf16.msra.mxu0 %v3524_v38 }
  0x71   : > { %2836 = vmatprep.subr.bf16.mxu0 %v3532_v40 }
  0x73   : > { %1195 = vmatmul.mubr.bf16.gmra.mrb[36].mxu1 %v3117_v39  ;;  %1764 = vmatmul.mubr.bf16.gmra.mrb[36].mxu0 %v3119_v42 }
  0x74   : > { %1202 = vmatprep.mubr.bf16.mxu1 %v3121_v43  ;;  %1771 = vmatprep.mubr.bf16.mxu0 %v3123_v44 }
  0x75   : > { %2837 = vmatpush3.bf16.msra.mxu0 %v3532_v40 }
  0x76   : > { %2838 = vmatprep.subr.bf16.mxu0 %v3136_v45 }
  0x79   : > { %2839 = vmatpush3.bf16.msra.mxu0 %v3136_v45 }
  0x7a   : > { %2840 = vmatprep.subr.bf16.mxu0 %v3142_v48 }
  0x7b   : > { %1203 = vmatmul.mubr.bf16.gmra.mrb[40].mxu1 %v3125_v46  ;;  %1772 = vmatmul.mubr.bf16.gmra.mrb[40].mxu0 %v3127_v47 }
  0x7c   : > { %1210 = vmatprep.mubr.bf16.mxu1 %v3129_v49  ;;  %1779 = vmatprep.mubr.bf16.mxu0 %v3131_v50 }
  0x7d   : > { %2841 = vmatpush3.bf16.msra.mxu0 %v3142_v48 }
  0x7e   : > { %2842 = vmatprep.subr.bf16.mxu0 %v3148_v51 }
  0x81   : > { %2843 = vmatpush3.bf16.msra.mxu0 %v3148_v51 }
  0x82   : > { %2844 = vmatprep.subr.bf16.mxu0 %v3154_v54 }
  0x83   : > { %1211 = vmatmul.mubr.bf16.gmra.mrb[44].mxu1 %v3133_v52  ;;  %1780 = vmatmul.mubr.bf16.gmra.mrb[44].mxu0 %v3135_v53 }
  0x84   : > { %2816 = vmatprep.mubr.bf16.mxu1 %v3137_v55  ;;  %1787 = vmatprep.mubr.bf16.mxu0 %v3138_v56 }
  0x85   : > { %2845 = vmatpush3.bf16.msra.mxu0 %v3154_v54 }
  0x86   : > { %2846 = vmatprep.subr.bf16.mxu0 %v3160_v57 }
  0x89   : > { %2847 = vmatpush3.bf16.msra.mxu0 %v3160_v57 }
  0x8b   : > { %2817 = vmatmul.mubr.bf16.vlgmr.msra.gmra.mrb[0].mxu1 %v3140_v58  ;;  %1788 = vmatmul.mubr.bf16.gmra.mrb[48].mxu0 %v3141_v59 }
  0x8c   : > { %2872 = vmatpush3.bf16.msra.mxu1 %v3508_v31  ;;  %2820 = vmatprep.mubr.bf16.mxu1 %v3143_v60 }
  0x8d   : > { %2865 = vmatprep.subr.bf16.mxu1 %v3524_v38  ;;  %1795 = vmatprep.mubr.bf16.mxu0 %v3144_v61 }
  0x90   : > { %2873 = vmatpush3.bf16.msra.mxu1 %v3524_v38 }
  0x91   : > { %2866 = vmatprep.subr.bf16.mxu1 %v3532_v40 }
  0x93   : > { %2821 = vmatmul.mubr.bf16.gmra.mrb[4].mxu1 %v3146_v62  ;;  %1796 = vmatmul.mubr.bf16.gmra.mrb[52].mxu0 %v3147_v63 }
  0x94   : > { %2874 = vmatpush3.bf16.msra.mxu1 %v3532_v40  ;;  %2824 = vmatprep.mubr.bf16.mxu1 %v3149_v0 }
  0x95   : > { %2867 = vmatprep.subr.bf16.mxu1 %v3136_v45  ;;  %1803 = vmatprep.mubr.bf16.mxu0 %v3150_v1 }
  0x98   : > { %2875 = vmatpush3.bf16.msra.mxu1 %v3136_v45 }
  0x99   : > { %2868 = vmatprep.subr.bf16.mxu1 %v3142_v48 }
  0x9b   : > { %2825 = vmatmul.mubr.bf16.gmra.mrb[8].mxu1 %v3152_v2  ;;  %1804 = vmatmul.mubr.bf16.gmra.mrb[56].mxu0 %v3153_v3 }
  0x9c   : > { %2876 = vmatpush3.bf16.msra.mxu1 %v3142_v48  ;;  %2828 = vmatprep.mubr.bf16.mxu1 %v3155_v4 }
  0x9d   : > { %2869 = vmatprep.subr.bf16.mxu1 %v3148_v51  ;;  %1811 = vmatprep.mubr.bf16.mxu0 %v3156_v5 }
  0xa0   : > { %2877 = vmatpush3.bf16.msra.mxu1 %v3148_v51 }
  0xa1   : > { %2870 = vmatprep.subr.bf16.mxu1 %v3154_v54 }
  0xa3   : > { %2829 = vmatmul.mubr.bf16.gmra.mrb[12].mxu1 %v3158_v6  ;;  %1812 = vmatmul.mubr.bf16.gmra.mrb[60].mxu0 %v3159_v7 }
  0xa4   : > { %2878 = vmatpush3.bf16.msra.mxu1 %v3154_v54  ;;  %2848 = vmatprep.mubr.bf16.mxu0 %v3161_v8 }
  0xa5   : > { %2871 = vmatprep.subr.bf16.mxu1 %v3160_v57  ;;  %2856 = vmatprep.mubr.bf16.mxu1 %v3162_v9 }
  0xa8   : > { %2879 = vmatpush3.bf16.msra.mxu1 %v3160_v57 }
  0xab   : > { %2849 = vmatmul.mubr.bf16.vlgmr.msra.gmra.mrb[64].mxu0 %v3163_v10  ;;  %2857 = vmatmul.mubr.bf16.vlgmr.msra.gmra.mrb[8].mxu1 %v3164_v11 }
  0xac   : > { %2852 = vmatprep.mubr.bf16.mxu0 %v3165_v12  ;;  %2860 = vmatprep.mubr.bf16.mxu1 %v3166_v13 }
  0xb3   : > { %2853 = vmatmul.mubr.bf16.gmra.mrb[68].mxu0 %v3167_v14  ;;  %2861 = vmatmul.mubr.bf16.gmra.mrb[12].mxu1 %v3168_v15 }
  0xfe   : > { %v2544_v16 = vpop.f32.mrb[0].mxu0 }
  0xff   : > { %v2545_v17 = vpop.f32.mrb[1].mxu0 }
 0x100   : > { %v2546_v18 = vadd.f32 %v2545_v17, %v2544_v16  ;;  %v2547_v19 = vpop.f32.mrb[2].mxu0 }
 0x101   : > { %v2548_v20 = vpop.f32.mrb[3].mxu0 }
 0x102   : > { %v2549_v21 = vadd.f32 %v2548_v20, %v2547_v19 }
 0x106   : > { %v2550_v22 = vpop.f32.mrb[4].mxu0 }
 0x107   : > { %v2551_v23 = vpop.f32.mrb[5].mxu0 }
 0x108   : > { %v2552_v24 = vadd.f32 %v2551_v23, %v2550_v22  ;;  %v2553_v25 = vpop.f32.mrb[6].mxu0 }
 0x109   : > { %v2554_v26 = vpop.f32.mrb[7].mxu0 }
 0x10a   : > { %v2555_v27 = vadd.f32 %v2554_v26, %v2553_v25 }
 0x10e   : > { %v2556_v28 = vpop.f32.mrb[8].mxu0 }
 0x10f   : > { %v2557_v29 = vpop.f32.mrb[9].mxu0 }
 0x110   : > { %v2558_v30 = vadd.f32 %v2557_v29, %v2556_v28  ;;  %v2559_v31 = vpop.f32.mrb[10].mxu0 }
 0x111   : > { %v2560_v32 = vpop.f32.mrb[11].mxu0 }
 0x112   : > { %v2561_v33 = vadd.f32 %v2560_v32, %v2559_v31 }
 0x116   : > { %v2562_v34 = vpop.f32.mrb[12].mxu0 }
 0x117   : > { %v2563_v35 = vpop.f32.mrb[13].mxu0 }
 0x118   : > { %v2564_v36 = vadd.f32 %v2563_v35, %v2562_v34  ;;  %v2565_v37 = vpop.f32.mrb[14].mxu0 }
 0x119   : > { %v2566_v38 = vpop.f32.mrb[15].mxu0 }
 0x11a   : > { %v2567_v39 = vadd.f32 %v2566_v38, %v2565_v37 }
 0x11e   : > { %v2568_v40 = vpop.f32.mrb[16].mxu0  ;;  %v2624_v41 = vpop.f32.mrb[16].mxu1 }
 0x11f   : > { %v2569_v42 = vpop.f32.mrb[17].mxu0  ;;  %v2625_v43 = vpop.f32.mrb[17].mxu1 }
 0x120   : > { %v2570_v44 = vadd.f32 %v2569_v42, %v2568_v40  ;;  %v2626_v45 = vadd.f32 %v2625_v43, %v2624_v41  ;;  %v2571_v46 = vpop.f32.mrb[18].mxu0  ;;  %v2627_v47 = vpop.f32.mrb[18].mxu1 }
 0x121   : > { %v2572_v48 = vpop.f32.mrb[19].mxu0  ;;  %v2628_v49 = vpop.f32.mrb[19].mxu1 }
 0x122   : > { %v2573_v50 = vadd.f32 %v2572_v48, %v2571_v46  ;;  %v2629_v51 = vadd.f32 %v2628_v49, %v2627_v47  ;;  %v3594_v52 = vadd.f32 %v2626_v45, %v2546_v18 }
 0x124   : > { %v3596_v53 = vadd.f32 %v2629_v51, %v2549_v21 }
 0x126   : > { %v2574_v54 = vpop.f32.mrb[20].mxu0  ;;  %v2630_v55 = vpop.f32.mrb[20].mxu1 }
 0x127   : > { %v2575_v56 = vpop.f32.mrb[21].mxu0  ;;  %v2631_v57 = vpop.f32.mrb[21].mxu1 }
 0x128   : > { %v2576_v58 = vadd.f32 %v2575_v56, %v2574_v54  ;;  %v2632_v59 = vadd.f32 %v2631_v57, %v2630_v55  ;;  %v2577_v60 = vpop.f32.mrb[22].mxu0  ;;  %v2633_v61 = vpop.f32.mrb[22].mxu1 }
 0x129   : > { %v2578_v62 = vpop.f32.mrb[23].mxu0  ;;  %v2634_v63 = vpop.f32.mrb[23].mxu1 }
 0x12a   : > { %v2579_v0 = vadd.f32 %v2578_v62, %v2577_v60  ;;  %v2635_v1 = vadd.f32 %v2634_v63, %v2633_v61  ;;  %v3598_v2 = vadd.f32 %v2632_v59, %v2552_v24 }
 0x12c   : > { %v3600_v3 = vadd.f32 %v2635_v1, %v2555_v27 }
 0x12e   : > { %v2580_v4 = vpop.f32.mrb[24].mxu0  ;;  %v2636_v5 = vpop.f32.mrb[24].mxu1 }
 0x12f   : > { %v2581_v6 = vpop.f32.mrb[25].mxu0  ;;  %v2637_v7 = vpop.f32.mrb[25].mxu1 }
 0x130   : > { %v2582_v8 = vadd.f32 %v2581_v6, %v2580_v4  ;;  %v2638_v9 = vadd.f32 %v2637_v7, %v2636_v5  ;;  %v2583_v10 = vpop.f32.mrb[26].mxu0  ;;  %v2639_v11 = vpop.f32.mrb[26].mxu1 }
 0x131   : > { %v2584_v12 = vpop.f32.mrb[27].mxu0  ;;  %v2640_v13 = vpop.f32.mrb[27].mxu1 }
 0x132   : > { %v2585_v14 = vadd.f32 %v2584_v12, %v2583_v10  ;;  %v2641_v15 = vadd.f32 %v2640_v13, %v2639_v11  ;;  %v3602_v16 = vadd.f32 %v2638_v9, %v2558_v30 }
 0x134   : > { %v3604_v17 = vadd.f32 %v2641_v15, %v2561_v33 }
 0x136   : > { %v2586_v18 = vpop.f32.mrb[28].mxu0  ;;  %v2642_v19 = vpop.f32.mrb[28].mxu1 }
 0x137   : > { %v2587_v20 = vpop.f32.mrb[29].mxu0  ;;  %v2643_v21 = vpop.f32.mrb[29].mxu1 }
 0x138   : > { %v2588_v22 = vadd.f32 %v2587_v20, %v2586_v18  ;;  %v2644_v23 = vadd.f32 %v2643_v21, %v2642_v19  ;;  %v2589_v24 = vpop.f32.mrb[30].mxu0  ;;  %v2645_v25 = vpop.f32.mrb[30].mxu1 }
 0x139   : > { %v2590_v26 = vpop.f32.mrb[31].mxu0  ;;  %v2646_v27 = vpop.f32.mrb[31].mxu1 }
 0x13a   : > { %v2591_v28 = vadd.f32 %v2590_v26, %v2589_v24  ;;  %v2647_v29 = vadd.f32 %v2646_v27, %v2645_v25  ;;  %v3606_v31 = vadd.f32 %v2644_v23, %v2564_v36 }
 0x13c   : > { %v3608_v32 = vadd.f32 %v2647_v29, %v2567_v39 }
 0x13e   : > { %v2648_v30 = vpop.f32.mrb[32].mxu1  ;;  %v2704_v34 = vpop.f32.mrb[32].mxu0 }
 0x13f   : > { %v2649_v33 = vpop.f32.mrb[33].mxu1  ;;  %v2705_v35 = vpop.f32.mrb[33].mxu0 }
 0x140   : > { %v2650_v37 = vadd.f32 %v2649_v33, %v2648_v30  ;;  %v3610_v38 = vadd.f32 %v2705_v35, %v2704_v34  ;;  %v2651_v40 = vpop.f32.mrb[34].mxu1  ;;  %v2707_v41 = vpop.f32.mrb[34].mxu0 }
 0x141   : > { %v2652_v42 = vpop.f32.mrb[35].mxu1  ;;  %v2708_v43 = vpop.f32.mrb[35].mxu0 }
 0x142   : > { %v2915_v45 = vadd.f32 %v2650_v37, %v2570_v44  ;;  %v2653_v46 = vadd.f32 %v2652_v42, %v2651_v40  ;;  %v2709_v47 = vadd.f32 %v2708_v43, %v2707_v41 }
 0x144   : > { %v2921_v48 = vadd.f32 %v2653_v46, %v2573_v50 }
 0x146   : > { %v2654_v49 = vpop.f32.mrb[36].mxu1  ;;  %v2710_v36 = vpop.f32.mrb[36].mxu0 }
 0x147   : > { %v2655_v51 = vpop.f32.mrb[37].mxu1  ;;  %v2711_v39 = vpop.f32.mrb[37].mxu0 }
 0x148   : > { %v2656_v54 = vadd.f32 %v2655_v51, %v2654_v49  ;;  %v2712_v55 = vadd.f32 %v2711_v39, %v2710_v36  ;;  %v2657_v56 = vpop.f32.mrb[38].mxu1  ;;  %v2713_v57 = vpop.f32.mrb[38].mxu0 }
 0x149   : > { %v2658_v59 = vpop.f32.mrb[39].mxu1  ;;  %v2714_v60 = vpop.f32.mrb[39].mxu0 }
 0x14a   : > { %v3612_v61 = vadd.f32 %v2656_v54, %v2576_v58  ;;  %v2659_v62 = vadd.f32 %v2658_v59, %v2657_v56  ;;  %v2715_v63 = vadd.f32 %v2714_v60, %v2713_v57 }
 0x14c   : > { %v3614_v1 = vadd.f32 %v2659_v62, %v2579_v0 }
 0x14e   : > { %v2660_v44 = vpop.f32.mrb[40].mxu1  ;;  %v2716_v4 = vpop.f32.mrb[40].mxu0 }
 0x14f   : > { %v2661_v5 = vpop.f32.mrb[41].mxu1  ;;  %v2717_v50 = vpop.f32.mrb[41].mxu0 }
 0x150   : > { %v2662_v6 = vadd.f32 %v2661_v5, %v2660_v44  ;;  %v2718_v7 = vadd.f32 %v2717_v50, %v2716_v4  ;;  %v2663_v9 = vpop.f32.mrb[42].mxu1  ;;  %v2719_v10 = vpop.f32.mrb[42].mxu0 }
 0x151   : > { %v2664_v11 = vpop.f32.mrb[43].mxu1  ;;  %v2720_v12 = vpop.f32.mrb[43].mxu0 }
 0x152   : > { %v3616_v13 = vadd.f32 %v2662_v6, %v2582_v8  ;;  %v2665_v15 = vadd.f32 %v2664_v11, %v2663_v9  ;;  %v2721_v18 = vadd.f32 %v2720_v12, %v2719_v10 }
 0x154   : > { %v2933_v58 = vadd.f32 %v2665_v15, %v2585_v14 }
 0x156   : > { %v2666_v19 = vpop.f32.mrb[44].mxu1  ;;  %v2722_v20 = vpop.f32.mrb[44].mxu0 }
 0x157   : > { %v2667_v21 = vpop.f32.mrb[45].mxu1  ;;  %v2723_v0 = vpop.f32.mrb[45].mxu0 }
 0x158   : > { %v2668_v23 = vadd.f32 %v2667_v21, %v2666_v19  ;;  %v2724_v24 = vadd.f32 %v2723_v0, %v2722_v20  ;;  %v2669_v25 = vpop.f32.mrb[46].mxu1  ;;  %v2725_v26 = vpop.f32.mrb[46].mxu0 }
 0x159   : > { %v2670_v27 = vpop.f32.mrb[47].mxu1  ;;  %v2726_v29 = vpop.f32.mrb[47].mxu0 }
 0x15a   : > { %v2924_v30 = vadd.f32 %v2668_v23, %v2588_v22  ;;  %v2671_v34 = vadd.f32 %v2670_v27, %v2669_v25  ;;  %v2727_v33 = vadd.f32 %v2726_v29, %v2725_v26  ;;  %v3645_v29 = vld [vmem:[%s3698_s2] ss:$0 sm:$0xff] }
 0x15c   : > { %v2930_v35 = vadd.f32 %v2671_v34, %v2591_v28 }
 0x15e   : > { %v2818_v37 = vpop.f32.mrb[0].mxu1  ;;  %v2728_v8 = vpop.f32.mrb[48].mxu0 }
 0x15f   : > { %v2881_v40 = vadd.f32 %v3598_v2, %v2818_v37  ;;  %v1253_v41 = vpop.f32.mrb[1].mxu1  ;;  %v2729_v14 = vpop.f32.mrb[49].mxu0 }
 0x160   : > { %v2885_v42 = vadd.f32 %v3594_v52, %v1253_v41  ;;  %v2730_v43 = vadd.f32 %v2729_v14, %v2728_v8  ;;  %v2819_v46 = vpop.f32.mrb[2].mxu1  ;;  %v2731_v49 = vpop.f32.mrb[50].mxu0 }
 0x161   : > { %v2889_v36 = vadd.f32 %v3600_v3, %v2819_v46  ;;  %v1256_v51 = vpop.f32.mrb[3].mxu1  ;;  %v2732_v39 = vpop.f32.mrb[51].mxu0  ;;  %v2882_v54 = vadd.f32 %v2881_v40, %v2712_v55 }
 0x162   : > { %v2893_v22 = vadd.f32 %v3596_v53, %v1256_v51  ;;  %v2733_v56 = vadd.f32 %v2732_v39, %v2731_v49  ;;  %v2886_v28 = vadd.f32 %v2885_v42, %v3610_v38  ;;  %v2916_v57 = vadd.f32 %v2915_v45, %v2730_v43 }
 0x163   : > { %v2890_v59 = vadd.f32 %v2889_v36, %v2715_v63 }
 0x164   : > { %v2894_v2 = vadd.f32 %v2893_v22, %v2709_v47  ;;  %v2922_v60 = vadd.f32 %v2921_v48, %v2733_v56 }
 0x166   : > { %v2822_v62 = vpop.f32.mrb[4].mxu1  ;;  %v2734_v44 = vpop.f32.mrb[52].mxu0 }
 0x167   : > { %v2897_v52 = vadd.f32 %v3606_v31, %v2822_v62  ;;  %v1269_v4 = vpop.f32.mrb[5].mxu1  ;;  %v2735_v5 = vpop.f32.mrb[53].mxu0 }
 0x168   : > { %v2901_v3 = vadd.f32 %v3602_v16, %v1269_v4  ;;  %v2736_v50 = vadd.f32 %v2735_v5, %v2734_v44  ;;  %v2823_v6 = vpop.f32.mrb[6].mxu1  ;;  %v2737_v55 = vpop.f32.mrb[54].mxu0 }
 0x169   : > { %v2905_v53 = vadd.f32 %v3608_v32, %v2823_v6  ;;  %v1272_v9 = vpop.f32.mrb[7].mxu1  ;;  %v2738_v10 = vpop.f32.mrb[55].mxu0  ;;  %v3626_v38 = vadd.f32 %v2897_v52, %v2724_v24 }
 0x16a   : > { %v2909_v45 = vadd.f32 %v3604_v17, %v1272_v9  ;;  %v2739_v47 = vadd.f32 %v2738_v10, %v2737_v55  ;;  %v2913_v48 = vadd.f32 %v3612_v61, %v2736_v50  ;;  %v3630_v31 = vadd.f32 %v2901_v3, %v2718_v7 }
 0x16b   : > { %v3632_v63 = vadd.f32 %v2905_v53, %v2727_v33 }
 0x16c   : > { %v2919_v16 = vadd.f32 %v3614_v1, %v2739_v47  ;;  %v3635_v11 = vadd.f32 %v2909_v45, %v2721_v18 }
 0x16e   : > { %v2740_v12 = vpop.f32.mrb[56].mxu0 }
 0x16f   : > { %v2741_v32 = vpop.f32.mrb[57].mxu0 }
 0x170   : > { %v2742_v15 = vadd.f32 %v2741_v32, %v2740_v12  ;;  %v2743_v19 = vpop.f32.mrb[58].mxu0 }
 0x171   : > { %v2744_v20 = vpop.f32.mrb[59].mxu0 }
 0x172   : > { %v2745_v21 = vadd.f32 %v2744_v20, %v2743_v19  ;;  %v2928_v17 = vadd.f32 %v3616_v13, %v2742_v15 }
 0x174   : > { %v3638_v0 = vadd.f32 %v2933_v58, %v2745_v21 }
 0x176   : > { %v2746_v61 = vpop.f32.mrb[60].mxu0 }
 0x177   : > { %v2747_v7 = vpop.f32.mrb[61].mxu0 }
 0x178   : > { %v2748_v23 = vadd.f32 %v2747_v7, %v2746_v61  ;;  %v2749_v24 = vpop.f32.mrb[62].mxu0 }
 0x179   : > { %v2750_v1 = vpop.f32.mrb[63].mxu0 }
 0x17a   : > { %v2751_v18 = vadd.f32 %v2750_v1, %v2749_v24  ;;  %v2925_v25 = vadd.f32 %v2924_v30, %v2748_v23 }
 0x17c   : > { %v2931_v26 = vadd.f32 %v2930_v35, %v2751_v18 }
 0x17e   : > { %v2850_v27 = vpop.f32.mrb[64].mxu0  ;;  %v2858_v13 = vpop.f32.mrb[8].mxu1 }
 0x17f   : > { %v2883_v58 = vadd.f32 %v2882_v54, %v2850_v27  ;;  %v2914_v34 = vadd.f32 %v2913_v48, %v2858_v13  ;;  %v1854_v33 = vpop.f32.mrb[65].mxu0  ;;  %v1886_v37 = vpop.f32.mrb[9].mxu1 }
 0x180   : > { %v2887_v8 = vadd.f32 %v2886_v28, %v1854_v33  ;;  %v2917_v40 = vadd.f32 %v2916_v57, %v1886_v37  ;;  %v2851_v41 = vpop.f32.mrb[66].mxu0  ;;  %v2859_v14 = vpop.f32.mrb[10].mxu1 }
 0x181   : > { %v1990_v30 = vadd.f32 %v2883_v58, %v3645_v29  ;;  %v1998_v35 = vadd.f32 %v2914_v34, %v3645_v29  ;;  %v2891_v42 = vadd.f32 %v2890_v59, %v2851_v41  ;;  %v2920_v43 = vadd.f32 %v2919_v16, %v2859_v14  ;;  %v1857_v46 = vpop.f32.mrb[67].mxu0  ;;  %v1889_v49 = vpop.f32.mrb[11].mxu1 }
 0x182   : > { %v1988_v36 = vadd.f32 %v2887_v8, %v3645_v29  ;;  %v1996_v51 = vadd.f32 %v2917_v40, %v3645_v29  ;;  %v2895_v39 = vadd.f32 %v2894_v2, %v1857_v46  ;;  %v2923_v54 = vadd.f32 %v2922_v60, %v1889_v49 }
 0x183   : > { %v1991_v22 = vadd.f32 %v2891_v42, %v3645_v29  ;;  %v1999_v56 = vadd.f32 %v2920_v43, %v3645_v29  ;;  %v2006_v62 = vmax.f32 %v1990_v30, 0.0  ;;  %v2014_v59 = vmax.f32 %v1998_v35, 0.0 }
 0x184   : > { %v1989_v28 = vadd.f32 %v2895_v39, %v3645_v29  ;;  %v1997_v57 = vadd.f32 %v2923_v54, %v3645_v29  ;;  %v2004_v4 = vmax.f32 %v1988_v36, 0.0  ;;  %v2012_v5 = vmax.f32 %v1996_v51, 0.0 }
 0x185   : > { %v2007_v44 = vmax.f32 %v1991_v22, 0.0  ;;  %v2015_v52 = vmax.f32 %v1999_v56, 0.0 }
 0x186   : > { %v2005_v2 = vmax.f32 %v1989_v28, 0.0  ;;  %v2013_v60 = vmax.f32 %v1997_v57, 0.0  ;;  %v2854_v3 = vpop.f32.mrb[68].mxu0  ;;  %v2862_v50 = vpop.f32.mrb[12].mxu1 }
 0x187   : > { %v2489_v6 = vpack.c.bf16 %v2007_v44, %v2006_v62  ;;  %v2509_v55 = vpack.c.bf16 %v2015_v52, %v2014_v59  ;;  %v2899_v53 = vadd.f32 %v3626_v38, %v2854_v3  ;;  %v2926_v9 = vadd.f32 %v2925_v25, %v2862_v50  ;;  %v1870_v10 = vpop.f32.mrb[69].mxu0  ;;  %v1902_v45 = vpop.f32.mrb[13].mxu1 }
 0x188   : > { %v2484_v47 = vpack.c.bf16 %v2005_v2, %v2004_v4  ;;  %v2504_v48 = vpack.c.bf16 %v2013_v60, %v2012_v5  ;;  %v2903_v16 = vadd.f32 %v3630_v31, %v1870_v10  ;;  %v2929_v12 = vadd.f32 %v2928_v17, %v1902_v45  ;;  %v2855_v32 = vpop.f32.mrb[70].mxu0  ;;  %v2863_v15 = vpop.f32.mrb[14].mxu1 }
 0x189   : > { %2521 = vst [vmem:[%s3658_s19 + $0x8] sm:$0xff] %v2489_v6   ;;  %2525 = vst [vmem:[%s3658_s19 + $0x28] sm:$0xff] %v2509_v55   ;;  %v1994_v19 = vadd.f32 %v2899_v53, %v3645_v29  ;;  %v2002_v20 = vadd.f32 %v2926_v9, %v3645_v29  ;;  %v2907_v38 = vadd.f32 %v3632_v63, %v2855_v32  ;;  %v1873_v61 = vpop.f32.mrb[71].mxu0  ;;  %v1905_v7 = vpop.f32.mrb[15].mxu1 }
 0x18a   : > { %v2932_v21 = vadd.f32 %v2931_v26, %v2863_v15  ;;  %2485 = vst [vmem:[%s3658_s19] sm:$0xff] %v2484_v47   ;;  %2524 = vst [vmem:[%s3658_s19 + $0x20] sm:$0xff] %v2504_v48   ;;  %v1992_v23 = vadd.f32 %v2903_v16, %v3645_v29  ;;  %v2000_v31 = vadd.f32 %v2929_v12, %v3645_v29 }
 0x18b   : > { %v2911_v17 = vadd.f32 %v3635_v11, %v1873_v61  ;;  %v2935_v24 = vadd.f32 %v3638_v0, %v1905_v7  ;;  %v1995_v1 = vadd.f32 %v2907_v38, %v3645_v29  ;;  %v2010_v26 = vmax.f32 %v1994_v19, 0.0 }
 0x18c   : > { %v2003_v18 = vadd.f32 %v2932_v21, %v3645_v29  ;;  %v2018_v27 = vmax.f32 %v2002_v20, 0.0  ;;  %v2008_v34 = vmax.f32 %v1992_v23, 0.0  ;;  %v2016_v11 = vmax.f32 %v2000_v31, 0.0 }
 0x18d   : > { %v1993_v63 = vadd.f32 %v2911_v17, %v3645_v29  ;;  %v2001_v25 = vadd.f32 %v2935_v24, %v3645_v29  ;;  %v2011_v13 = vmax.f32 %v1995_v1, 0.0 }
 0x18e   : > { %v2019_v58 = vmax.f32 %v2003_v18, 0.0 }
 0x18f   : > { %v2009_v33 = vmax.f32 %v1993_v63, 0.0  ;;  %v2017_v0 = vmax.f32 %v2001_v25, 0.0  ;;  %v2499_v37 = vpack.c.bf16 %v2011_v13, %v2010_v26 }
 0x190   : > { %v2519_v8 = vpack.c.bf16 %v2019_v58, %v2018_v27 }
 0x191   : > { %v2494_v40 = vpack.c.bf16 %v2009_v33, %v2008_v34  ;;  %v2514_v41 = vpack.c.bf16 %v2017_v0, %v2016_v11  ;;  %2523 = vst [vmem:[%s3658_s19 + $0x18] sm:$0xff] %v2499_v37  }
 0x192   : > { %2527 = vst [vmem:[%s3658_s19 + $0x38] sm:$0xff] %v2519_v8  }
 0x193   : > { %2522 = vst [vmem:[%s3658_s19 + $0x10] sm:$0xff] %v2494_v40   ;;  %2526 = vst [vmem:[%s3658_s19 + $0x30] sm:$0xff] %v2514_v41  }
 0x194 PF: > { %s13_s16 = sadd.s32 1, %s3207_s16   ;;  %s3700_s12 = smov %s3199_s14 }
 0x195   : > { %p10_p7 = scmp.ge.s32.totalorder %s13_s16, 6   ;;  %s3701_s13 = smov %s3203_s15 }
 0x196   : > { %s3702_s14 = smov %s3705_s17  ;;  %s3703_s15 = smov %s3709_s18 }
 0x197   :  { %12 = sbr.rel (!%p10_p7) target bundleno = 3 (0x3), region = 67 }

// kernel: vqvae_forward.7
= control target key start
LH: loop header
LB: loop body
LE: loop exit
PB: predicated region body
PF: predicated region fallthrough
CT: control target
= control target key end

     0   :  { %s3070_s12 = smov 0   ;;  %s3072_s13 = smov 0   ;;  %s3539_s0 = inlined_call_operand.vmem [shape: bf16[2,288,384], index: 0, kind: input, shape index: {}]   ;;  %s3540_s1 = inlined_call_operand.vmem [shape: bf16[3,384,128], index: 1, kind: input, shape index: {}]   ;;  %s3541_s2 = inlined_call_operand.vmem [shape: f32[1,128], index: 2, kind: input, shape index: {}]   ;;  %s3542_s3 = inlined_call_operand.vmem [shape: f32[2,256,128], index: 3, kind: output, shape index: {}]  }
   0x1   :  { %s3074_s14 = smov 0   ;;  %s3076_s15 = smov 0  }
   0x2   :  { %s3078_s16 = smov 0  }
   0x3 LB: > { %s22_s17 = sadd.s32 1, %s3040_s14  ;;  %s25_s18 = sadd.s32 1, %s3044_s15  ;;  %s3048_s16 = sphi %s3078_s16, %s13_s16   ;;  %s3044_s15 = sphi %s3076_s15, %s3546_s15   ;;  %s3040_s14 = sphi %s3074_s14, %s3545_s14   ;;  %s3036_s13 = sphi %s3072_s13, %s3544_s13   ;;  %s3032_s12 = sphi %s3070_s12, %s3543_s12  }
   0x4   : > { %p23_p0 = scmp.ge.s32.totalorder %s22_s17, 2  ;;  %p2114_p1 = scmp.ge.s32.totalorder %s3048_s16, 1 }
   0x5   : > { %p151_p2 = scmp.lt.s32.totalorder %s3048_s16, 5 }
   0x6   : > { %s3548_s17 = smov (%p23_p0, %s22_s17), 0  ;;  %s3550_s18 = smov (!%p23_p0, %s25_s18), %s3044_s15 }
   0x7   : > { %p152_p3 = pnand %p2114_p1, %p151_p2  ;;  %p27_p4 = scmp.ge.s32.totalorder %s3550_s18, 2 }
   0x8   : > { %v2842_v0 = vld [vmem:[%s3540_s1 + $0x40] sm:$0xff] (!%p152_p3)   ;;  %v2845_v3 = vld [vmem:[%s3540_s1 + $0x48] sm:$0xff] (!%p152_p3)   ;;  %v2848_v6 = vld [vmem:[%s3540_s1 + $0x50] sm:$0xff] (!%p152_p3)   ;;  %p179_p5 = scmp.lt.s32.totalorder (!%p152_p3), %s3036_s13, 1  ;;  %s3139_s21 = sshll.u32 (!%p152_p3), %s3032_s12, 7 }
   0x9   : > { %s3552_s18 = smov (%p27_p4, %s3550_s18), 0  ;;  %155 = sbr.rel (%p152_p3) target bundleno = 399 (0x18f), region = 32 }
   0xa   : > { %v2843_v1 = vld [vmem:[%s3540_s1 + $0x80] sm:$0xff] (!%p152_p3)   ;;  %2369 = vmatprep.subr.bf16.mxu0 (!%p152_p3), %v2842_v0  ;;  %v2846_v4 = vld [vmem:[%s3540_s1 + $0x88] sm:$0xff] (!%p152_p3)   ;;  %v2849_v7 = vld [vmem:[%s3540_s1 + $0x90] sm:$0xff] (!%p152_p3)   ;;  %s196_s28 = sshra.s32 (!%p152_p3), %s3139_s21, 3  ;;  %s763_s7 = sadd.s32 (!%p152_p3), 16, %s3139_s21 }
   0xb   : > { %v2844_v2 = vld [vmem:[%s3540_s1] sm:$0xff] (!%p152_p3)   ;;  %2609 = vmatprep.subr.bf16.mxu1 (!%p152_p3), %v2843_v1  ;;  %v2847_v5 = vld [vmem:[%s3540_s1 + $0x8] sm:$0xff] (!%p152_p3)   ;;  %v2850_v8 = vld [vmem:[%s3540_s1 + $0x10] sm:$0xff] (!%p152_p3)   ;;  %s2366_s9 = smul.u32 (!%p152_p3), 12, %s196_s28  ;;  %s764_s19 = sshra.s32 (!%p152_p3), %s763_s7, 3 }
   0xc   : > { %2370 = vmatpush3.bf16.msra.mxu0 (!%p152_p3), %v2844_v2  ;;  %2610 = vmatpush3.bf16.msra.mxu1 (!%p152_p3), %v2843_v1  ;;  %v2851_v9 = vld [vmem:[%s3540_s1 + $0x58] sm:$0xff] (!%p152_p3)   ;;  %v2854_v12 = vld [vmem:[%s3540_s1 + $0x60] sm:$0xff] (!%p152_p3)   ;;  %v2857_v15 = vld [vmem:[%s3540_s1 + $0x68] sm:$0xff] (!%p152_p3)   ;;  %s2367_s24 = smul.u32 (!%p152_p3), 12, %s764_s19  ;;  %s1364_s5 = sadd.s32 (!%p152_p3), 32, %s3139_s21 }
   0xd   : > { %2371 = vmatprep.subr.bf16.mxu0 (!%p152_p3), %v2845_v3  ;;  %2611 = vmatprep.subr.bf16.mxu1 (!%p152_p3), %v2846_v4  ;;  %v2852_v10 = vld [vmem:[%s3540_s1 + $0x98] sm:$0xff] (!%p152_p3)   ;;  %v2855_v13 = vld [vmem:[%s3540_s1 + $0xa0] sm:$0xff] (!%p152_p3)   ;;  %v2858_v16 = vld [vmem:[%s3540_s1 + $0xa8] sm:$0xff] (!%p152_p3)  }
   0xe   : > { %v2853_v11 = vld [vmem:[%s3540_s1 + $0x18] sm:$0xff] (!%p152_p3)   ;;  %v2856_v14 = vld [vmem:[%s3540_s1 + $0x20] sm:$0xff] (!%p152_p3)   ;;  %v2859_v17 = vld [vmem:[%s3540_s1 + $0x28] sm:$0xff] (!%p152_p3)  }
   0xf   : > { %v2860_v18 = vld [vmem:[%s3540_s1 + $0x70] sm:$0xff] (!%p152_p3)   ;;  %v2863_v21 = vld [vmem:[%s3540_s1 + $0x78] sm:$0xff] (!%p152_p3)   ;;  %v2871_v26 = vld [vmem:[%s3540_s1 + $0x100] sm:$0xff] (!%p152_p3)  }
  0x10   : > { %2372 = vmatpush3.bf16.msra.mxu0 %v2847_v5  ;;  %2612 = vmatpush3.bf16.msra.mxu1 %v2846_v4  ;;  %s3554_s13 = smov (!%p179_p5, %s3036_s13), 1  ;;  %v2861_v19 = vld [vmem:[%s3540_s1 + $0xb0] sm:$0xff]   ;;  %v2864_v22 = vld [vmem:[%s3540_s1 + $0xb8] sm:$0xff]   ;;  %v2872_v28 = vld [vmem:[%s3540_s1 + $0x1c0] sm:$0xff]  }
  0x11   : > { %2373 = vmatprep.subr.bf16.mxu0 %v2848_v6  ;;  %2613 = vmatprep.subr.bf16.mxu1 %v2849_v7  ;;  %s2801_s4 = smul.u32 432, %s3554_s13  ;;  %v2862_v20 = vld [vmem:[%s3540_s1 + $0x30] sm:$0xff]   ;;  %v2865_v25 = vld [vmem:[%s3540_s1 + $0x38] sm:$0xff]   ;;  %v2873_v30 = vld [vmem:[%s3540_s1 + $0xc0] sm:$0xff]  }
  0x12   : > { %v2874_v31 = vld [vmem:[%s3540_s1 + $0x180] sm:$0xff]   ;;  %v2875_v32 = vld [vmem:[%s3540_s1 + $0x108] sm:$0xff]   ;;  %v2882_v38 = vld [vmem:[%s3540_s1 + $0x110] sm:$0xff]  }
  0x13   : > { %s3170_s22 = scalar_lea.vmem %s3539_s0, %s2801_s4  ;;  %v2876_v35 = vld [vmem:[%s3540_s1 + $0xc8] sm:$0xff]   ;;  %v2884_v40 = vld [vmem:[%s3540_s1 + $0xd0] sm:$0xff]   ;;  %v2886_v42 = vld [vmem:[%s3540_s1 + $0x118] sm:$0xff]  }
  0x14   : > { %2374 = vmatpush3.bf16.msra.mxu0 %v2850_v8  ;;  %2614 = vmatpush3.bf16.msra.mxu1 %v2849_v7  ;;  %s3182_s29 = scalar_lea.vmem %s3170_s22, %s2366_s9  ;;  %v2883_v39 = vld [vmem:[%s3540_s1 + $0x1c8] sm:$0xff]   ;;  %v2887_v44 = vld [vmem:[%s3540_s1 + $0xd8] sm:$0xff]   ;;  %v2893_v48 = vld [vmem:[%s3540_s1 + $0x120] sm:$0xff]   ;;  %s3280_s7 = scalar_lea.vmem %s3170_s22, %s2367_s24 }
  0x15   : > { %2375 = vmatprep.subr.bf16.mxu0 %v2851_v9  ;;  %2615 = vmatprep.subr.bf16.mxu1 %v2852_v10  ;;  %v2868_v23 = vld [vmem:[%s3182_s29 + $0x4] ss:$12 sps:$4 sm:$0xff]   ;;  %v2869_v24 = vld [vmem:[%s3182_s29 + $0x8] ss:$12 sps:$4 sm:$0xff]   ;;  %v2866_v27 = vld [vmem:[%s3182_s29] ss:$12 sps:$4 sm:$0xff]  }
  0x16   : > { %585 = vmatprep.mubr.bf16.mxu0 %v2868_v23  ;;  %2625 = vmatprep.mubr.bf16.mxu1 %v2869_v24  ;;  %v2870_v29 = vld [vmem:[%s3182_s29 + $0x20] ss:$12 sps:$4 sm:$0xff]   ;;  %v2877_v33 = vld [vmem:[%s3182_s29 + $0x1c] ss:$12 sps:$4 sm:$0xff]   ;;  %v2879_v34 = vld [vmem:[%s3182_s29 + $0x38] ss:$12 sps:$4 sm:$0xff]  }
  0x17   : > { %v2880_v36 = vld [vmem:[%s3182_s29 + $0x18] ss:$12 sps:$4 sm:$0xff]   ;;  %v2881_v37 = vld [vmem:[%s3182_s29 + $0x50] ss:$12 sps:$4 sm:$0xff]   ;;  %v2885_v41 = vld [vmem:[%s3540_s1 + $0x188] sm:$0xff]   ;;  %s1365_s9 = sshra.s32 %s1364_s5, 3 }
  0x18   : > { %2376 = vmatpush3.bf16.msra.mxu0 %v2853_v11  ;;  %2616 = vmatpush3.bf16.msra.mxu1 %v2852_v10  ;;  %v2888_v43 = vld [vmem:[%s3182_s29 + $0x34] ss:$12 sps:$4 sm:$0xff]   ;;  %v2891_v46 = vld [vmem:[%s3182_s29 + $0x30] ss:$12 sps:$4 sm:$0xff]   ;;  %v2897_v52 = vld [vmem:[%s3540_s1 + $0x128] sm:$0xff]   ;;  %s2368_s20 = smul.u32 12, %s1365_s9 }
  0x19   : > { %2377 = vmatprep.subr.bf16.mxu0 %v2854_v12  ;;  %2617 = vmatprep.subr.bf16.mxu1 %v2855_v13  ;;  %v2890_v45 = vld [vmem:[%s3182_s29 + $0x68] ss:$12 sps:$4 sm:$0xff]   ;;  %v2892_v47 = vld [vmem:[%s3182_s29 + $0x80] ss:$12 sps:$4 sm:$0xff]   ;;  %v2901_v55 = vld [vmem:[%s3182_s29 + $0x98] ss:$12 sps:$4 sm:$0xff]  }
  0x1a   : > { %v2894_v49 = vld [vmem:[%s3540_s1 + $0x1d0] sm:$0xff]   ;;  %v2895_v50 = vld [vmem:[%s3540_s1 + $0xe0] sm:$0xff]   ;;  %v2898_v53 = vld [vmem:[%s3540_s1 + $0xe8] sm:$0xff]   ;;  %s3337_s30 = scalar_lea.vmem %s3170_s22, %s2368_s20 }
  0x1b   : > { %v2896_v51 = vld [vmem:[%s3540_s1 + $0x190] sm:$0xff]   ;;  %v2899_v54 = vld [vmem:[%s3182_s29 + $0x4c] ss:$12 sps:$4 sm:$0xff]   ;;  %v2916_v4 = vld [vmem:[%s3540_s1 + $0x140] sm:$0xff]  }
  0x1c   : > { %2378 = vmatpush3.bf16.msra.mxu0 %v2856_v14  ;;  %2618 = vmatpush3.bf16.msra.mxu1 %v2855_v13  ;;  %v2902_v56 = vld [vmem:[%s3182_s29 + $0x48] ss:$12 sps:$4 sm:$0xff]   ;;  %v2903_v57 = vld [vmem:[%s3182_s29 + $0xb0] ss:$12 sps:$4 sm:$0xff]   ;;  %v2912_v1 = vld [vmem:[%s3280_s7] ss:$12 sps:$4 sm:$0xff]  }
  0x1d   : > { %2379 = vmatprep.subr.bf16.mxu0 %v2857_v15  ;;  %2619 = vmatprep.subr.bf16.mxu1 %v2858_v16  ;;  %v2904_v58 = vld [vmem:[%s3540_s1 + $0x130] sm:$0xff]   ;;  %v2905_v59 = vld [vmem:[%s3540_s1 + $0x1d8] sm:$0xff]   ;;  %v2915_v3 = vld [vmem:[%s3182_s29 + $0x60] ss:$12 sps:$4 sm:$0xff]  }
  0x1e   : > { %v2906_v60 = vld [vmem:[%s3540_s1 + $0xf0] sm:$0xff]   ;;  %v2907_v61 = vld [vmem:[%s3540_s1 + $0x198] sm:$0xff]   ;;  %v2917_v5 = vld [vmem:[%s3540_s1 + $0x1e0] sm:$0xff]  }
  0x1f   : > { %v2908_v62 = vld [vmem:[%s3540_s1 + $0x138] sm:$0xff]   ;;  %v2910_v0 = vld [vmem:[%s3182_s29 + $0x64] ss:$12 sps:$4 sm:$0xff]   ;;  %v2925_v11 = vld [vmem:[%s3540_s1 + $0x148] sm:$0xff]  }
  0x20   : > { %2380 = vmatpush3.bf16.msra.mxu0 %v2859_v17  ;;  %2620 = vmatpush3.bf16.msra.mxu1 %v2858_v16  ;;  %v2909_v63 = vld [vmem:[%s3540_s1 + $0xf8] sm:$0xff]   ;;  %v2914_v2 = vld [vmem:[%s3280_s7 + $0x4] ss:$12 sps:$4 sm:$0xff]   ;;  %v2926_v12 = vld [vmem:[%s3540_s1 + $0x1e8] sm:$0xff]  }
  0x21   : > { %2381 = vmatprep.subr.bf16.mxu0 %v2860_v18  ;;  %2621 = vmatprep.subr.bf16.mxu1 %v2861_v19  ;;  %v2918_v6 = vld [vmem:[%s3540_s1 + $0x1a0] sm:$0xff]   ;;  %v2919_v7 = vld [vmem:[%s3182_s29 + $0x7c] ss:$12 sps:$4 sm:$0xff]   ;;  %v2934_v16 = vld [vmem:[%s3540_s1 + $0x150] sm:$0xff]  }
  0x22   : > { %v2921_v8 = vld [vmem:[%s3280_s7 + $0x1c] ss:$12 sps:$4 sm:$0xff]   ;;  %v2923_v9 = vld [vmem:[%s3182_s29 + $0x78] ss:$12 sps:$4 sm:$0xff]   ;;  %v2928_v14 = vld [vmem:[%s3182_s29 + $0x94] ss:$12 sps:$4 sm:$0xff]  }
  0x23   : > { %v2924_v10 = vld [vmem:[%s3280_s7 + $0x18] ss:$12 sps:$4 sm:$0xff]   ;;  %v2927_v13 = vld [vmem:[%s3540_s1 + $0x1a8] sm:$0xff]   ;;  %v2930_v15 = vld [vmem:[%s3280_s7 + $0x34] ss:$12 sps:$4 sm:$0xff]  }
  0x24   : > { %2382 = vmatpush3.bf16.msra.mxu0 %v2862_v20  ;;  %2622 = vmatpush3.bf16.msra.mxu1 %v2861_v19  ;;  %v2932_v17 = vld [vmem:[%s3182_s29 + $0x90] ss:$12 sps:$4 sm:$0xff]  }
  0x25   : > { %2383 = vmatprep.subr.bf16.mxu0 %v2863_v21  ;;  %2623 = vmatprep.subr.bf16.mxu1 %v2864_v22  ;;  %v2935_v18 = vld [vmem:[%s3540_s1 + $0x1f0] sm:$0xff]   ;;  %v2937_v21 = vld [vmem:[%s3182_s29 + $0xac] ss:$12 sps:$4 sm:$0xff]  }
  0x26   : > { %v2936_v19 = vld [vmem:[%s3540_s1 + $0x1b0] sm:$0xff]   ;;  %v2943_v23 = vld [vmem:[%s3540_s1 + $0x158] sm:$0xff]  }
  0x27   : > { %v2933_v20 = vld [vmem:[%s3280_s7 + $0x30] ss:$12 sps:$4 sm:$0xff]  }
  0x28   : > { %2384 = vmatpush3.bf16.msra.mxu0 %v2865_v25  ;;  %2624 = vmatpush3.bf16.msra.mxu1 %v2864_v22  ;;  %v2939_v22 = vld [vmem:[%s3280_s7 + $0x4c] ss:$12 sps:$4 sm:$0xff]  }
  0x29   : > { %2449 = vmatprep.subr.bf16.mxu1 %v2871_v26  ;;  %2529 = vmatprep.subr.bf16.mxu0 %v2872_v28  ;;  %v2944_v24 = vld [vmem:[%s3540_s1 + $0x1f8] sm:$0xff]   ;;  %v2941_v26 = vld [vmem:[%s3182_s29 + $0xa8] ss:$12 sps:$4 sm:$0xff]   ;;  %v2946_v28 = vld [vmem:[%s3280_s7 + $0x64] ss:$12 sps:$4 sm:$0xff]  }
  0x2a   : > { %v2945_v25 = vld [vmem:[%s3540_s1 + $0x1b8] sm:$0xff]  }
  0x2b   : > { %586 = vmatmul.mubr.bf16.vlgmr.msra.gmra.mrb[0].mxu0 %v2866_v27  ;;  %2626 = vmatmul.mubr.bf16.vlgmr.msra.gmra.mrb[0].mxu1 %v2870_v29  ;;  %v2942_v27 = vld [vmem:[%s3280_s7 + $0x48] ss:$12 sps:$4 sm:$0xff]   ;;  %v2950_v29 = vld [vmem:[%s3337_s30 + $0x4] ss:$12 sps:$4 sm:$0xff]  }
  0x2c   : > { %2450 = vmatpush3.bf16.msra.mxu1 %v2873_v30  ;;  %2530 = vmatpush3.bf16.msra.mxu0 %v2874_v31  ;;  %v2952_v30 = vld [vmem:[%s3540_s1 + $0x160] sm:$0xff]  }
  0x2d   : > { %2451 = vmatprep.subr.bf16.mxu1 %v2875_v32  ;;  %593 = vmatprep.mubr.bf16.mxu0 %v2877_v33  ;;  %v3349_v31 = vld [vmem:[%s3540_s1 + $0x200] sm:$0xff]   ;;  %v2959_v32 = vld [vmem:[%s3540_s1 + $0x168] sm:$0xff]  }
  0x2e   : > { %2629 = vmatprep.mubr.bf16.mxu1 %v2879_v34  ;;  %2531 = vmatprep.subr.bf16.mxu0 %v2883_v39  ;;  %v2948_v33 = vld [vmem:[%s3337_s30] ss:$12 sps:$4 sm:$0xff]   ;;  %v2958_v39 = vld [vmem:[%s3280_s7 + $0x78] ss:$12 sps:$4 sm:$0xff]  }
  0x2f   : > { %v2951_v34 = vld [vmem:[%s3280_s7 + $0x60] ss:$12 sps:$4 sm:$0xff]  }
  0x30   : > { %2452 = vmatpush3.bf16.msra.mxu1 %v2876_v35  ;;  %2532 = vmatpush3.bf16.msra.mxu0 %v2885_v41  ;;  %v2954_v35 = vld [vmem:[%s3280_s7 + $0x7c] ss:$12 sps:$4 sm:$0xff]  }
  0x31   : > { %2453 = vmatprep.subr.bf16.mxu1 %v2882_v38  ;;  %2533 = vmatprep.subr.bf16.mxu0 %v2894_v49  ;;  %v3365_v38 = vld [vmem:[%s3540_s1 + $0x208] sm:$0xff]   ;;  %v2975_v41 = vld [vmem:[%s3540_s1 + $0x178] sm:$0xff]  }
  0x32   : > { %v2970_v49 = vld [vmem:[%s3280_s7 + $0xac] ss:$12 sps:$4 sm:$0xff]  }
  0x33   : > { %594 = vmatmul.mubr.bf16.gmra.mrb[4].mxu0 %v2880_v36  ;;  %2630 = vmatmul.mubr.bf16.gmra.mrb[4].mxu1 %v2881_v37  ;;  %v2956_v36 = vld [vmem:[%s3337_s30 + $0x1c] ss:$12 sps:$4 sm:$0xff]   ;;  %v2967_v37 = vld [vmem:[%s3540_s1 + $0x170] sm:$0xff]  }
  0x34   : > { %2454 = vmatpush3.bf16.msra.mxu1 %v2884_v40  ;;  %601 = vmatprep.mubr.bf16.mxu0 %v2888_v43  ;;  %v3373_v40 = vld [vmem:[%s3540_s1 + $0x210] sm:$0xff]  }
  0x35   : > { %2455 = vmatprep.subr.bf16.mxu1 %v2886_v42  ;;  %2633 = vmatprep.mubr.bf16.mxu1 %v2890_v45  ;;  %v2960_v42 = vld [vmem:[%s3337_s30 + $0x18] ss:$12 sps:$4 sm:$0xff]   ;;  %v2962_v43 = vld [vmem:[%s3280_s7 + $0x94] ss:$12 sps:$4 sm:$0xff]  }
  0x36   : > { %2534 = vmatpush3.bf16.msra.mxu0 %v2896_v51  ;;  %v2977_v45 = vld [vmem:[%s3540_s1 + $0x218] sm:$0xff]   ;;  %v2989_v51 = vld [vmem:[%s3540_s1 + $0x228] sm:$0xff]  }
  0x37   : > { %2535 = vmatprep.subr.bf16.mxu0 %v2905_v59  ;;  %v2982_v59 = vld [vmem:[%s3337_s30 + $0x60] ss:$12 sps:$4 sm:$0xff]  }
  0x38   : > { %2456 = vmatpush3.bf16.msra.mxu1 %v2887_v44  ;;  %v2964_v44 = vld [vmem:[%s3337_s30 + $0x34] ss:$12 sps:$4 sm:$0xff]  }
  0x39   : > { %2457 = vmatprep.subr.bf16.mxu1 %v2893_v48  ;;  %v2983_v48 = vld [vmem:[%s3540_s1 + $0x220] sm:$0xff]  }
  0x3a   : > { %2536 = vmatpush3.bf16.msra.mxu0 %v2907_v61  ;;  %v2985_v61 = vld [vmem:[%s3337_s30 + $0x7c] ss:$12 sps:$4 sm:$0xff]  }
  0x3b   : > { %602 = vmatmul.mubr.bf16.gmra.mrb[8].mxu0 %v2891_v46  ;;  %2634 = vmatmul.mubr.bf16.gmra.mrb[8].mxu1 %v2892_v47  ;;  %v2966_v46 = vld [vmem:[%s3280_s7 + $0x90] ss:$12 sps:$4 sm:$0xff]  }
  0x3c   : > { %2458 = vmatpush3.bf16.msra.mxu1 %v2895_v50  ;;  %609 = vmatprep.mubr.bf16.mxu0 %v2899_v54  ;;  %v2968_v47 = vld [vmem:[%s3337_s30 + $0x30] ss:$12 sps:$4 sm:$0xff]   ;;  %v2972_v50 = vld [vmem:[%s3337_s30 + $0x4c] ss:$12 sps:$4 sm:$0xff]  }
  0x3d   : > { %2459 = vmatprep.subr.bf16.mxu1 %v2897_v52  ;;  %2637 = vmatprep.mubr.bf16.mxu1 %v2901_v55  ;;  %v2974_v52 = vld [vmem:[%s3280_s7 + $0xa8] ss:$12 sps:$4 sm:$0xff]  }
  0x3e   : > { %2537 = vmatprep.subr.bf16.mxu0 %v2917_v5  ;;  %v2995_v54 = vld [vmem:[%s3540_s1 + $0x230] sm:$0xff]   ;;  %v2997_v5 = vld [vmem:[%s3337_s30 + $0xac] ss:$12 sps:$4 sm:$0xff]  }
  0x3f   : > { %2538 = vmatpush3.bf16.msra.mxu0 %v2918_v6  ;;  %v2978_v55 = vld [vmem:[%s3280_s7 + $0x8] ss:$12 sps:$4 sm:$0xff]   ;;  %v2999_v6 = vld [vmem:[%s3280_s7 + $0xb0] ss:$12 sps:$4 sm:$0xff]  }
  0x40   : > { %2460 = vmatpush3.bf16.msra.mxu1 %v2898_v53  ;;  %2539 = vmatprep.subr.bf16.mxu0 %v2926_v12  ;;  %v2976_v53 = vld [vmem:[%s3337_s30 + $0x48] ss:$12 sps:$4 sm:$0xff]   ;;  %v3006_v12 = vld [vmem:[%s3337_s30 + $0x38] ss:$12 sps:$4 sm:$0xff]  }
  0x41   : > { %2461 = vmatprep.subr.bf16.mxu1 %v2904_v58  ;;  %v2981_v58 = vld [vmem:[%s3280_s7 + $0x20] ss:$12 sps:$4 sm:$0xff]  }
  0x43   : > { %610 = vmatmul.mubr.bf16.gmra.mrb[12].mxu0 %v2902_v56  ;;  %2638 = vmatmul.mubr.bf16.gmra.mrb[12].mxu1 %v2903_v57  ;;  %v2979_v56 = vld [vmem:[%s3337_s30 + $0x64] ss:$12 sps:$4 sm:$0xff]   ;;  %v3001_v57 = vld [vmem:[%s3540_s1 + $0x238] sm:$0xff]  }
  0x44   : > { %2462 = vmatpush3.bf16.msra.mxu1 %v2906_v60  ;;  %617 = vmatprep.mubr.bf16.mxu0 %v2910_v0  ;;  %v2984_v60 = vld [vmem:[%s3280_s7 + $0x38] ss:$12 sps:$4 sm:$0xff]   ;;  %v2990_v0 = vld [vmem:[%s3280_s7 + $0x68] ss:$12 sps:$4 sm:$0xff]  }
  0x45   : > { %2463 = vmatprep.subr.bf16.mxu1 %v2908_v62  ;;  %1154 = vmatprep.mubr.bf16.mxu1 %v2914_v2  ;;  %v2987_v62 = vld [vmem:[%s3280_s7 + $0x50] ss:$12 sps:$4 sm:$0xff]   ;;  %v2993_v2 = vld [vmem:[%s3280_s7 + $0x80] ss:$12 sps:$4 sm:$0xff]  }
  0x46   : > { %2540 = vmatpush3.bf16.msra.mxu0 %v2927_v13  ;;  %v3007_v13 = vld [vmem:[%s3337_s30 + $0x98] ss:$12 sps:$4 sm:$0xff]  }
  0x47   : > { %2541 = vmatprep.subr.bf16.mxu0 %v2935_v18 }
  0x48   : > { %2464 = vmatpush3.bf16.msra.mxu1 %v2909_v63  ;;  %v2988_v63 = vld [vmem:[%s3337_s30 + $0x78] ss:$12 sps:$4 sm:$0xff]  }
  0x49   : > { %2641 = vmatprep.subr.bf16.mxu1 %v2916_v4 }
  0x4a   : > { %2542 = vmatpush3.bf16.msra.mxu0 %v2936_v19 }
  0x4b   : > { %618 = vmatmul.mubr.bf16.gmra.mrb[16].mxu0 %v2915_v3  ;;  %1155 = vmatmul.mubr.bf16.vlgmr.msra.gmra.mrb[16].mxu1 %v2912_v1  ;;  %v2991_v1 = vld [vmem:[%s3337_s30 + $0x94] ss:$12 sps:$4 sm:$0xff]   ;;  %v2994_v3 = vld [vmem:[%s3337_s30 + $0x90] ss:$12 sps:$4 sm:$0xff]  }
  0x4c   : > { %2642 = vmatpush3.bf16.msra.mxu1 %v2916_v4  ;;  %625 = vmatprep.mubr.bf16.mxu0 %v2919_v7  ;;  %v2996_v4 = vld [vmem:[%s3280_s7 + $0x98] ss:$12 sps:$4 sm:$0xff]   ;;  %v3000_v7 = vld [vmem:[%s3337_s30 + $0xa8] ss:$12 sps:$4 sm:$0xff]   ;;  %s2116_s7 = sshll.u32 %s3032_s12, 4 }
  0x4d   : > { %1162 = vmatprep.mubr.bf16.mxu1 %v2921_v8  ;;  %2643 = vmatprep.subr.bf16.mxu1 %v2925_v11  ;;  %v3002_v8 = vld [vmem:[%s3337_s30 + $0x8] ss:$12 sps:$4 sm:$0xff]   ;;  %p187_p6 = scmp.lt.s32.totalorder %s2116_s7, 31 }
  0x4e   : > { %2543 = vmatprep.subr.bf16.mxu0 %v2944_v24 }
  0x4f   : > { %2544 = vmatpush3.bf16.msra.mxu0 %v2945_v25  ;;  %s3556_s7 = smov (!%p187_p6, %s2116_s7), 31 }
  0x50   : > { %2644 = vmatpush3.bf16.msra.mxu1 %v2925_v11  ;;  %2673 = vmatprep.subr.bf16.mxu0 %v3349_v31  ;;  %v3005_v11 = vld [vmem:[%s3337_s30 + $0x80] ss:$12 sps:$4 sm:$0xff]  }
  0x51   : > { %2645 = vmatprep.subr.bf16.mxu1 %v2934_v16 }
  0x53   : > { %626 = vmatmul.mubr.bf16.gmra.mrb[20].mxu0 %v2923_v9  ;;  %1163 = vmatmul.mubr.bf16.gmra.mrb[20].mxu1 %v2924_v10  ;;  %v3003_v9 = vld [vmem:[%s3337_s30 + $0x68] ss:$12 sps:$4 sm:$0xff]   ;;  %v3004_v10 = vld [vmem:[%s3337_s30 + $0x20] ss:$12 sps:$4 sm:$0xff]  }
  0x54   : > { %633 = vmatprep.mubr.bf16.mxu0 %v2928_v14  ;;  %1170 = vmatprep.mubr.bf16.mxu1 %v2930_v15  ;;  %v3008_v14 = vld [vmem:[%s3337_s30 + $0x50] ss:$12 sps:$4 sm:$0xff]  }
  0x55   : > { %2646 = vmatpush3.bf16.msra.mxu1 %v2934_v16  ;;  %v3009_v15 = vld [vmem:[%s3337_s30 + $0xb0] ss:$12 sps:$4 sm:$0xff]   ;;  %s2117_s30 = sshll.u32 %s3554_s13, 5 }
  0x56   : > { %2647 = vmatprep.subr.bf16.mxu1 %v2943_v23  ;;  %s190_s9 = sadd.s32 %s2117_s30, %s3556_s7 }
  0x57   : > { %s2118_s12 = sshll.u32 %s190_s9, 3 }
  0x58   : > { %s3499_s19 = scalar_lea.vmem %s3542_s3, %s2118_s12 }
  0x59   : > { %2648 = vmatpush3.bf16.msra.mxu1 %v2943_v23 }
  0x5a   : > { %2649 = vmatprep.subr.bf16.mxu1 %v2952_v30 }
  0x5b   : > { %634 = vmatmul.mubr.bf16.gmra.mrb[24].mxu0 %v2932_v17  ;;  %1171 = vmatmul.mubr.bf16.gmra.mrb[24].mxu1 %v2933_v20 }
  0x5c   : > { %641 = vmatprep.mubr.bf16.mxu0 %v2937_v21  ;;  %1178 = vmatprep.mubr.bf16.mxu1 %v2939_v22 }
  0x5d   : > { %2650 = vmatpush3.bf16.msra.mxu1 %v2952_v30 }
  0x5e   : > { %2651 = vmatprep.subr.bf16.mxu1 %v2959_v32 }
  0x61   : > { %2652 = vmatpush3.bf16.msra.mxu1 %v2959_v32 }
  0x62   : > { %2653 = vmatprep.subr.bf16.mxu1 %v2967_v37 }
  0x63   : > { %642 = vmatmul.mubr.bf16.gmra.mrb[28].mxu0 %v2941_v26  ;;  %1179 = vmatmul.mubr.bf16.gmra.mrb[28].mxu1 %v2942_v27 }
  0x64   : > { %1186 = vmatprep.mubr.bf16.mxu1 %v2946_v28  ;;  %1755 = vmatprep.mubr.bf16.mxu0 %v2950_v29 }
  0x65   : > { %2654 = vmatpush3.bf16.msra.mxu1 %v2967_v37 }
  0x66   : > { %2655 = vmatprep.subr.bf16.mxu1 %v2975_v41 }
  0x69   : > { %2656 = vmatpush3.bf16.msra.mxu1 %v2975_v41 }
  0x6a   : > { %2705 = vmatprep.subr.bf16.mxu1 %v3349_v31 }
  0x6b   : > { %1187 = vmatmul.mubr.bf16.gmra.mrb[32].mxu1 %v2951_v34  ;;  %1756 = vmatmul.mubr.bf16.vlgmr.msra.gmra.mrb[32].mxu0 %v2948_v33 }
  0x6c   : > { %2674 = vmatpush3.bf16.msra.mxu0 %v3349_v31  ;;  %1194 = vmatprep.mubr.bf16.mxu1 %v2954_v35 }
  0x6d   : > { %1763 = vmatprep.mubr.bf16.mxu0 %v2956_v36  ;;  %2675 = vmatprep.subr.bf16.mxu0 %v3365_v38 }
  0x70   : > { %2676 = vmatpush3.bf16.msra.mxu0 %v3365_v38 }
  0x71   : > { %2677 = vmatprep.subr.bf16.mxu0 %v3373_v40 }
  0x73   : > { %1195 = vmatmul.mubr.bf16.gmra.mrb[36].mxu1 %v2958_v39  ;;  %1764 = vmatmul.mubr.bf16.gmra.mrb[36].mxu0 %v2960_v42 }
  0x74   : > { %1202 = vmatprep.mubr.bf16.mxu1 %v2962_v43  ;;  %1771 = vmatprep.mubr.bf16.mxu0 %v2964_v44 }
  0x75   : > { %2678 = vmatpush3.bf16.msra.mxu0 %v3373_v40 }
  0x76   : > { %2679 = vmatprep.subr.bf16.mxu0 %v2977_v45 }
  0x79   : > { %2680 = vmatpush3.bf16.msra.mxu0 %v2977_v45 }
  0x7a   : > { %2681 = vmatprep.subr.bf16.mxu0 %v2983_v48 }
  0x7b   : > { %1203 = vmatmul.mubr.bf16.gmra.mrb[40].mxu1 %v2966_v46  ;;  %1772 = vmatmul.mubr.bf16.gmra.mrb[40].mxu0 %v2968_v47 }
  0x7c   : > { %1210 = vmatprep.mubr.bf16.mxu1 %v2970_v49  ;;  %1779 = vmatprep.mubr.bf16.mxu0 %v2972_v50 }
  0x7d   : > { %2682 = vmatpush3.bf16.msra.mxu0 %v2983_v48 }
  0x7e   : > { %2683 = vmatprep.subr.bf16.mxu0 %v2989_v51 }
  0x81   : > { %2684 = vmatpush3.bf16.msra.mxu0 %v2989_v51 }
  0x82   : > { %2685 = vmatprep.subr.bf16.mxu0 %v2995_v54 }
  0x83   : > { %1211 = vmatmul.mubr.bf16.gmra.mrb[44].mxu1 %v2974_v52  ;;  %1780 = vmatmul.mubr.bf16.gmra.mrb[44].mxu0 %v2976_v53 }
  0x84   : > { %2657 = vmatprep.mubr.bf16.mxu1 %v2978_v55  ;;  %1787 = vmatprep.mubr.bf16.mxu0 %v2979_v56 }
  0x85   : > { %2686 = vmatpush3.bf16.msra.mxu0 %v2995_v54 }
  0x86   : > { %2687 = vmatprep.subr.bf16.mxu0 %v3001_v57 }
  0x89   : > { %2688 = vmatpush3.bf16.msra.mxu0 %v3001_v57 }
  0x8b   : > { %2658 = vmatmul.mubr.bf16.vlgmr.msra.gmra.mrb[0].mxu1 %v2981_v58  ;;  %1788 = vmatmul.mubr.bf16.gmra.mrb[48].mxu0 %v2982_v59 }
  0x8c   : > { %2713 = vmatpush3.bf16.msra.mxu1 %v3349_v31  ;;  %2661 = vmatprep.mubr.bf16.mxu1 %v2984_v60 }
  0x8d   : > { %2706 = vmatprep.subr.bf16.mxu1 %v3365_v38  ;;  %1795 = vmatprep.mubr.bf16.mxu0 %v2985_v61 }
  0x90   : > { %2714 = vmatpush3.bf16.msra.mxu1 %v3365_v38 }
  0x91   : > { %2707 = vmatprep.subr.bf16.mxu1 %v3373_v40 }
  0x93   : > { %2662 = vmatmul.mubr.bf16.gmra.mrb[4].mxu1 %v2987_v62  ;;  %1796 = vmatmul.mubr.bf16.gmra.mrb[52].mxu0 %v2988_v63 }
  0x94   : > { %2715 = vmatpush3.bf16.msra.mxu1 %v3373_v40  ;;  %2665 = vmatprep.mubr.bf16.mxu1 %v2990_v0 }
  0x95   : > { %2708 = vmatprep.subr.bf16.mxu1 %v2977_v45  ;;  %1803 = vmatprep.mubr.bf16.mxu0 %v2991_v1 }
  0x98   : > { %2716 = vmatpush3.bf16.msra.mxu1 %v2977_v45 }
  0x99   : > { %2709 = vmatprep.subr.bf16.mxu1 %v2983_v48 }
  0x9b   : > { %2666 = vmatmul.mubr.bf16.gmra.mrb[8].mxu1 %v2993_v2  ;;  %1804 = vmatmul.mubr.bf16.gmra.mrb[56].mxu0 %v2994_v3 }
  0x9c   : > { %2717 = vmatpush3.bf16.msra.mxu1 %v2983_v48  ;;  %2669 = vmatprep.mubr.bf16.mxu1 %v2996_v4 }
  0x9d   : > { %2710 = vmatprep.subr.bf16.mxu1 %v2989_v51  ;;  %1811 = vmatprep.mubr.bf16.mxu0 %v2997_v5 }
  0xa0   : > { %2718 = vmatpush3.bf16.msra.mxu1 %v2989_v51 }
  0xa1   : > { %2711 = vmatprep.subr.bf16.mxu1 %v2995_v54 }
  0xa3   : > { %2670 = vmatmul.mubr.bf16.gmra.mrb[12].mxu1 %v2999_v6  ;;  %1812 = vmatmul.mubr.bf16.gmra.mrb[60].mxu0 %v3000_v7 }
  0xa4   : > { %2719 = vmatpush3.bf16.msra.mxu1 %v2995_v54  ;;  %2689 = vmatprep.mubr.bf16.mxu0 %v3002_v8 }
  0xa5   : > { %2712 = vmatprep.subr.bf16.mxu1 %v3001_v57  ;;  %2697 = vmatprep.mubr.bf16.mxu1 %v3003_v9 }
  0xa8   : > { %2720 = vmatpush3.bf16.msra.mxu1 %v3001_v57 }
  0xab   : > { %2690 = vmatmul.mubr.bf16.vlgmr.msra.gmra.mrb[64].mxu0 %v3004_v10  ;;  %2698 = vmatmul.mubr.bf16.vlgmr.msra.gmra.mrb[8].mxu1 %v3005_v11 }
  0xac   : > { %2693 = vmatprep.mubr.bf16.mxu0 %v3006_v12  ;;  %2701 = vmatprep.mubr.bf16.mxu1 %v3007_v13 }
  0xb3   : > { %2694 = vmatmul.mubr.bf16.gmra.mrb[68].mxu0 %v3008_v14  ;;  %2702 = vmatmul.mubr.bf16.gmra.mrb[12].mxu1 %v3009_v15 }
  0xfe   : > { %v2385_v16 = vpop.f32.mrb[0].mxu0 }
  0xff   : > { %v2386_v17 = vpop.f32.mrb[1].mxu0 }
 0x100   : > { %v2387_v18 = vadd.f32 %v2386_v17, %v2385_v16  ;;  %v2388_v19 = vpop.f32.mrb[2].mxu0 }
 0x101   : > { %v2389_v20 = vpop.f32.mrb[3].mxu0 }
 0x102   : > { %v2390_v21 = vadd.f32 %v2389_v20, %v2388_v19 }
 0x106   : > { %v2391_v22 = vpop.f32.mrb[4].mxu0 }
 0x107   : > { %v2392_v23 = vpop.f32.mrb[5].mxu0 }
 0x108   : > { %v2393_v24 = vadd.f32 %v2392_v23, %v2391_v22  ;;  %v2394_v25 = vpop.f32.mrb[6].mxu0 }
 0x109   : > { %v2395_v26 = vpop.f32.mrb[7].mxu0 }
 0x10a   : > { %v2396_v27 = vadd.f32 %v2395_v26, %v2394_v25 }
 0x10e   : > { %v2397_v28 = vpop.f32.mrb[8].mxu0 }
 0x10f   : > { %v2398_v29 = vpop.f32.mrb[9].mxu0 }
 0x110   : > { %v2399_v30 = vadd.f32 %v2398_v29, %v2397_v28  ;;  %v2400_v31 = vpop.f32.mrb[10].mxu0 }
 0x111   : > { %v2401_v32 = vpop.f32.mrb[11].mxu0 }
 0x112   : > { %v2402_v33 = vadd.f32 %v2401_v32, %v2400_v31 }
 0x116   : > { %v2403_v34 = vpop.f32.mrb[12].mxu0 }
 0x117   : > { %v2404_v35 = vpop.f32.mrb[13].mxu0 }
 0x118   : > { %v2405_v36 = vadd.f32 %v2404_v35, %v2403_v34  ;;  %v2406_v37 = vpop.f32.mrb[14].mxu0 }
 0x119   : > { %v2407_v38 = vpop.f32.mrb[15].mxu0 }
 0x11a   : > { %v2408_v39 = vadd.f32 %v2407_v38, %v2406_v37 }
 0x11e   : > { %v2409_v40 = vpop.f32.mrb[16].mxu0  ;;  %v2465_v41 = vpop.f32.mrb[16].mxu1 }
 0x11f   : > { %v2410_v42 = vpop.f32.mrb[17].mxu0  ;;  %v2466_v43 = vpop.f32.mrb[17].mxu1 }
 0x120   : > { %v2411_v44 = vadd.f32 %v2410_v42, %v2409_v40  ;;  %v2467_v45 = vadd.f32 %v2466_v43, %v2465_v41  ;;  %v2412_v46 = vpop.f32.mrb[18].mxu0  ;;  %v2468_v47 = vpop.f32.mrb[18].mxu1 }
 0x121   : > { %v2413_v48 = vpop.f32.mrb[19].mxu0  ;;  %v2469_v49 = vpop.f32.mrb[19].mxu1 }
 0x122   : > { %v2414_v50 = vadd.f32 %v2413_v48, %v2412_v46  ;;  %v2470_v51 = vadd.f32 %v2469_v49, %v2468_v47  ;;  %v3435_v52 = vadd.f32 %v2467_v45, %v2387_v18 }
 0x124   : > { %v3437_v53 = vadd.f32 %v2470_v51, %v2390_v21 }
 0x126   : > { %v2415_v54 = vpop.f32.mrb[20].mxu0  ;;  %v2471_v55 = vpop.f32.mrb[20].mxu1 }
 0x127   : > { %v2416_v56 = vpop.f32.mrb[21].mxu0  ;;  %v2472_v57 = vpop.f32.mrb[21].mxu1 }
 0x128   : > { %v2417_v58 = vadd.f32 %v2416_v56, %v2415_v54  ;;  %v2473_v59 = vadd.f32 %v2472_v57, %v2471_v55  ;;  %v2418_v60 = vpop.f32.mrb[22].mxu0  ;;  %v2474_v61 = vpop.f32.mrb[22].mxu1 }
 0x129   : > { %v2419_v62 = vpop.f32.mrb[23].mxu0  ;;  %v2475_v63 = vpop.f32.mrb[23].mxu1 }
 0x12a   : > { %v2420_v0 = vadd.f32 %v2419_v62, %v2418_v60  ;;  %v2476_v1 = vadd.f32 %v2475_v63, %v2474_v61  ;;  %v3439_v2 = vadd.f32 %v2473_v59, %v2393_v24 }
 0x12c   : > { %v3441_v3 = vadd.f32 %v2476_v1, %v2396_v27 }
 0x12e   : > { %v2421_v4 = vpop.f32.mrb[24].mxu0  ;;  %v2477_v5 = vpop.f32.mrb[24].mxu1 }
 0x12f   : > { %v2422_v6 = vpop.f32.mrb[25].mxu0  ;;  %v2478_v7 = vpop.f32.mrb[25].mxu1 }
 0x130   : > { %v2423_v8 = vadd.f32 %v2422_v6, %v2421_v4  ;;  %v2479_v9 = vadd.f32 %v2478_v7, %v2477_v5  ;;  %v2424_v10 = vpop.f32.mrb[26].mxu0  ;;  %v2480_v11 = vpop.f32.mrb[26].mxu1 }
 0x131   : > { %v2425_v12 = vpop.f32.mrb[27].mxu0  ;;  %v2481_v13 = vpop.f32.mrb[27].mxu1 }
 0x132   : > { %v2426_v14 = vadd.f32 %v2425_v12, %v2424_v10  ;;  %v2482_v15 = vadd.f32 %v2481_v13, %v2480_v11  ;;  %v3443_v16 = vadd.f32 %v2479_v9, %v2399_v30 }
 0x134   : > { %v3445_v17 = vadd.f32 %v2482_v15, %v2402_v33 }
 0x136   : > { %v2427_v18 = vpop.f32.mrb[28].mxu0  ;;  %v2483_v19 = vpop.f32.mrb[28].mxu1 }
 0x137   : > { %v2428_v20 = vpop.f32.mrb[29].mxu0  ;;  %v2484_v21 = vpop.f32.mrb[29].mxu1 }
 0x138   : > { %v2429_v22 = vadd.f32 %v2428_v20, %v2427_v18  ;;  %v2485_v23 = vadd.f32 %v2484_v21, %v2483_v19  ;;  %v2430_v24 = vpop.f32.mrb[30].mxu0  ;;  %v2486_v25 = vpop.f32.mrb[30].mxu1 }
 0x139   : > { %v2431_v26 = vpop.f32.mrb[31].mxu0  ;;  %v2487_v27 = vpop.f32.mrb[31].mxu1 }
 0x13a   : > { %v2432_v28 = vadd.f32 %v2431_v26, %v2430_v24  ;;  %v2488_v29 = vadd.f32 %v2487_v27, %v2486_v25  ;;  %v3447_v31 = vadd.f32 %v2485_v23, %v2405_v36 }
 0x13c   : > { %v3449_v32 = vadd.f32 %v2488_v29, %v2408_v39 }
 0x13e   : > { %v2489_v30 = vpop.f32.mrb[32].mxu1  ;;  %v2545_v34 = vpop.f32.mrb[32].mxu0 }
 0x13f   : > { %v2490_v33 = vpop.f32.mrb[33].mxu1  ;;  %v2546_v35 = vpop.f32.mrb[33].mxu0 }
 0x140   : > { %v2491_v37 = vadd.f32 %v2490_v33, %v2489_v30  ;;  %v3451_v38 = vadd.f32 %v2546_v35, %v2545_v34  ;;  %v2492_v40 = vpop.f32.mrb[34].mxu1  ;;  %v2548_v41 = vpop.f32.mrb[34].mxu0 }
 0x141   : > { %v2493_v42 = vpop.f32.mrb[35].mxu1  ;;  %v2549_v43 = vpop.f32.mrb[35].mxu0 }
 0x142   : > { %v2756_v45 = vadd.f32 %v2491_v37, %v2411_v44  ;;  %v2494_v46 = vadd.f32 %v2493_v42, %v2492_v40  ;;  %v2550_v47 = vadd.f32 %v2549_v43, %v2548_v41 }
 0x144   : > { %v2762_v48 = vadd.f32 %v2494_v46, %v2414_v50 }
 0x146   : > { %v2495_v49 = vpop.f32.mrb[36].mxu1  ;;  %v2551_v36 = vpop.f32.mrb[36].mxu0 }
 0x147   : > { %v2496_v51 = vpop.f32.mrb[37].mxu1  ;;  %v2552_v39 = vpop.f32.mrb[37].mxu0 }
 0x148   : > { %v2497_v54 = vadd.f32 %v2496_v51, %v2495_v49  ;;  %v2553_v55 = vadd.f32 %v2552_v39, %v2551_v36  ;;  %v2498_v56 = vpop.f32.mrb[38].mxu1  ;;  %v2554_v57 = vpop.f32.mrb[38].mxu0 }
 0x149   : > { %v2499_v59 = vpop.f32.mrb[39].mxu1  ;;  %v2555_v60 = vpop.f32.mrb[39].mxu0 }
 0x14a   : > { %v3453_v61 = vadd.f32 %v2497_v54, %v2417_v58  ;;  %v2500_v62 = vadd.f32 %v2499_v59, %v2498_v56  ;;  %v2556_v63 = vadd.f32 %v2555_v60, %v2554_v57 }
 0x14c   : > { %v3455_v1 = vadd.f32 %v2500_v62, %v2420_v0 }
 0x14e   : > { %v2501_v44 = vpop.f32.mrb[40].mxu1  ;;  %v2557_v4 = vpop.f32.mrb[40].mxu0 }
 0x14f   : > { %v2502_v5 = vpop.f32.mrb[41].mxu1  ;;  %v2558_v50 = vpop.f32.mrb[41].mxu0 }
 0x150   : > { %v2503_v6 = vadd.f32 %v2502_v5, %v2501_v44  ;;  %v2559_v7 = vadd.f32 %v2558_v50, %v2557_v4  ;;  %v2504_v9 = vpop.f32.mrb[42].mxu1  ;;  %v2560_v10 = vpop.f32.mrb[42].mxu0 }
 0x151   : > { %v2505_v11 = vpop.f32.mrb[43].mxu1  ;;  %v2561_v12 = vpop.f32.mrb[43].mxu0 }
 0x152   : > { %v3457_v13 = vadd.f32 %v2503_v6, %v2423_v8  ;;  %v2506_v15 = vadd.f32 %v2505_v11, %v2504_v9  ;;  %v2562_v18 = vadd.f32 %v2561_v12, %v2560_v10 }
 0x154   : > { %v3459_v58 = vadd.f32 %v2506_v15, %v2426_v14 }
 0x156   : > { %v2507_v19 = vpop.f32.mrb[44].mxu1  ;;  %v2563_v20 = vpop.f32.mrb[44].mxu0 }
 0x157   : > { %v2508_v0 = vpop.f32.mrb[45].mxu1  ;;  %v2564_v21 = vpop.f32.mrb[45].mxu0 }
 0x158   : > { %v2509_v23 = vadd.f32 %v2508_v0, %v2507_v19  ;;  %v2565_v24 = vadd.f32 %v2564_v21, %v2563_v20  ;;  %v2510_v25 = vpop.f32.mrb[46].mxu1  ;;  %v2566_v26 = vpop.f32.mrb[46].mxu0 }
 0x159   : > { %v2511_v27 = vpop.f32.mrb[47].mxu1  ;;  %v2567_v29 = vpop.f32.mrb[47].mxu0 }
 0x15a   : > { %v3461_v30 = vadd.f32 %v2509_v23, %v2429_v22  ;;  %v2512_v34 = vadd.f32 %v2511_v27, %v2510_v25  ;;  %v2568_v33 = vadd.f32 %v2567_v29, %v2566_v26 }
 0x15c   : > { %v2771_v8 = vadd.f32 %v2512_v34, %v2432_v28 }
 0x15e   : > { %v2659_v35 = vpop.f32.mrb[0].mxu1  ;;  %v2569_v37 = vpop.f32.mrb[48].mxu0 }
 0x15f   : > { %v2722_v14 = vadd.f32 %v3439_v2, %v2659_v35  ;;  %v1253_v40 = vpop.f32.mrb[1].mxu1  ;;  %v2570_v41 = vpop.f32.mrb[49].mxu0 }
 0x160   : > { %v2726_v42 = vadd.f32 %v3435_v52, %v1253_v40  ;;  %v2571_v43 = vadd.f32 %v2570_v41, %v2569_v37  ;;  %v2660_v46 = vpop.f32.mrb[2].mxu1  ;;  %v2572_v49 = vpop.f32.mrb[50].mxu0 }
 0x161   : > { %v2730_v36 = vadd.f32 %v3441_v3, %v2660_v46  ;;  %v1256_v51 = vpop.f32.mrb[3].mxu1  ;;  %v2573_v39 = vpop.f32.mrb[51].mxu0  ;;  %v2723_v22 = vadd.f32 %v2722_v14, %v2553_v55 }
 0x162   : > { %v2734_v54 = vadd.f32 %v3437_v53, %v1256_v51  ;;  %v2574_v56 = vadd.f32 %v2573_v39, %v2572_v49  ;;  %v2727_v28 = vadd.f32 %v2726_v42, %v3451_v38  ;;  %v2757_v57 = vadd.f32 %v2756_v45, %v2571_v43 }
 0x163   : > { %v2731_v59 = vadd.f32 %v2730_v36, %v2556_v63 }
 0x164   : > { %v3468_v2 = vadd.f32 %v2734_v54, %v2550_v47  ;;  %v3470_v60 = vadd.f32 %v2762_v48, %v2574_v56 }
 0x166   : > { %v2663_v52 = vpop.f32.mrb[4].mxu1  ;;  %v2575_v62 = vpop.f32.mrb[52].mxu0 }
 0x167   : > { %v2738_v44 = vadd.f32 %v3447_v31, %v2663_v52  ;;  %v1269_v4 = vpop.f32.mrb[5].mxu1  ;;  %v2576_v3 = vpop.f32.mrb[53].mxu0 }
 0x168   : > { %v2742_v5 = vadd.f32 %v3443_v16, %v1269_v4  ;;  %v2577_v55 = vadd.f32 %v2576_v3, %v2575_v62  ;;  %v2664_v53 = vpop.f32.mrb[6].mxu1  ;;  %v2578_v50 = vpop.f32.mrb[54].mxu0 }
 0x169   : > { %v2746_v38 = vadd.f32 %v3449_v32, %v2664_v53  ;;  %v1272_v45 = vpop.f32.mrb[7].mxu1  ;;  %v2579_v63 = vpop.f32.mrb[55].mxu0  ;;  %v3475_v47 = vadd.f32 %v2738_v44, %v2565_v24 }
 0x16a   : > { %v2750_v48 = vadd.f32 %v3445_v17, %v1272_v45  ;;  %v2580_v6 = vadd.f32 %v2579_v63, %v2578_v50  ;;  %v2754_v9 = vadd.f32 %v3453_v61, %v2577_v55  ;;  %v3479_v31 = vadd.f32 %v2742_v5, %v2559_v7 }
 0x16b   : > { %v3481_v10 = vadd.f32 %v2746_v38, %v2568_v33 }
 0x16c   : > { %v2760_v16 = vadd.f32 %v3455_v1, %v2580_v6  ;;  %v3484_v11 = vadd.f32 %v2750_v48, %v2562_v18 }
 0x16e   : > { %v2581_v12 = vpop.f32.mrb[56].mxu0 }
 0x16f   : > { %v2582_v32 = vpop.f32.mrb[57].mxu0 }
 0x170   : > { %v2583_v15 = vadd.f32 %v2582_v32, %v2581_v12  ;;  %v2584_v19 = vpop.f32.mrb[58].mxu0 }
 0x171   : > { %v2585_v20 = vpop.f32.mrb[59].mxu0 }
 0x172   : > { %v2586_v0 = vadd.f32 %v2585_v20, %v2584_v19  ;;  %v2769_v17 = vadd.f32 %v3457_v13, %v2583_v15  ;;  %v2363_v13 = vld [vmem:[%s3541_s2] ss:$0 sm:$0xff] }
 0x174   : > { %v3489_v61 = vadd.f32 %v3459_v58, %v2586_v0 }
 0x176   : > { %v2587_v7 = vpop.f32.mrb[60].mxu0 }
 0x177   : > { %v2588_v21 = vpop.f32.mrb[61].mxu0 }
 0x178   : > { %v2589_v1 = vadd.f32 %v2588_v21, %v2587_v7  ;;  %v2590_v18 = vpop.f32.mrb[62].mxu0 }
 0x179   : > { %v2591_v23 = vpop.f32.mrb[63].mxu0 }
 0x17a   : > { %v2592_v24 = vadd.f32 %v2591_v23, %v2590_v18  ;;  %v2766_v25 = vadd.f32 %v3461_v30, %v2589_v1 }
 0x17c   : > { %v2772_v26 = vadd.f32 %v2771_v8, %v2592_v24 }
 0x17e   : > { %v2691_v27 = vpop.f32.mrb[64].mxu0  ;;  %v2699_v58 = vpop.f32.mrb[8].mxu1 }
 0x17f   : > { %v2724_v29 = vadd.f32 %v2723_v22, %v2691_v27  ;;  %v2755_v34 = vadd.f32 %v2754_v9, %v2699_v58  ;;  %v1854_v33 = vpop.f32.mrb[65].mxu0  ;;  %v1886_v35 = vpop.f32.mrb[9].mxu1 }
 0x180   : > { %v2728_v30 = vadd.f32 %v2727_v28, %v1854_v33  ;;  %v2758_v8 = vadd.f32 %v2757_v57, %v1886_v35  ;;  %v2692_v37 = vpop.f32.mrb[66].mxu0  ;;  %v2700_v14 = vpop.f32.mrb[10].mxu1 }
 0x181   : > { %v1990_v40 = vadd.f32 %v2724_v29, %v2363_v13  ;;  %v1998_v41 = vadd.f32 %v2755_v34, %v2363_v13  ;;  %v2732_v42 = vadd.f32 %v2731_v59, %v2692_v37  ;;  %v2761_v43 = vadd.f32 %v2760_v16, %v2700_v14  ;;  %v1857_v46 = vpop.f32.mrb[67].mxu0  ;;  %v1889_v49 = vpop.f32.mrb[11].mxu1 }
 0x182   : > { %v1988_v36 = vadd.f32 %v2728_v30, %v2363_v13  ;;  %v1996_v51 = vadd.f32 %v2758_v8, %v2363_v13  ;;  %v2736_v39 = vadd.f32 %v3468_v2, %v1857_v46  ;;  %v2764_v22 = vadd.f32 %v3470_v60, %v1889_v49 }
 0x183   : > { %2006 = vst [vmem:[%s3499_s19 + $0x10] sm:$0xff] %v1990_v40  ;;  %2014 = vst [vmem:[%s3499_s19 + $0x50] sm:$0xff] %v1998_v41  ;;  %v1991_v54 = vadd.f32 %v2732_v42, %v2363_v13  ;;  %v1999_v56 = vadd.f32 %v2761_v43, %v2363_v13 }
 0x184   : > { %2004 = vst [vmem:[%s3499_s19] sm:$0xff] %v1988_v36  ;;  %2012 = vst [vmem:[%s3499_s19 + $0x40] sm:$0xff] %v1996_v51  ;;  %v1989_v28 = vadd.f32 %v2736_v39, %v2363_v13  ;;  %v1997_v57 = vadd.f32 %v2764_v22, %v2363_v13 }
 0x185   : > { %2007 = vst [vmem:[%s3499_s19 + $0x18] sm:$0xff] %v1991_v54  ;;  %2015 = vst [vmem:[%s3499_s19 + $0x58] sm:$0xff] %v1999_v56 }
 0x186   : > { %2005 = vst [vmem:[%s3499_s19 + $0x8] sm:$0xff] %v1989_v28  ;;  %2013 = vst [vmem:[%s3499_s19 + $0x48] sm:$0xff] %v1997_v57  ;;  %v2695_v59 = vpop.f32.mrb[68].mxu0  ;;  %v2703_v52 = vpop.f32.mrb[12].mxu1 }
 0x187   : > { %v2740_v62 = vadd.f32 %v3475_v47, %v2695_v59  ;;  %v2767_v44 = vadd.f32 %v2766_v25, %v2703_v52  ;;  %v1870_v2 = vpop.f32.mrb[69].mxu0  ;;  %v1902_v60 = vpop.f32.mrb[13].mxu1 }
 0x188   : > { %v2744_v4 = vadd.f32 %v3479_v31, %v1870_v2  ;;  %v2770_v3 = vadd.f32 %v2769_v17, %v1902_v60  ;;  %v2696_v5 = vpop.f32.mrb[70].mxu0  ;;  %v2704_v55 = vpop.f32.mrb[14].mxu1 }
 0x189   : > { %v1994_v53 = vadd.f32 %v2740_v62, %v2363_v13  ;;  %v2002_v50 = vadd.f32 %v2767_v44, %v2363_v13  ;;  %v2748_v38 = vadd.f32 %v3481_v10, %v2696_v5  ;;  %v2773_v45 = vadd.f32 %v2772_v26, %v2704_v55  ;;  %v1873_v63 = vpop.f32.mrb[71].mxu0  ;;  %v1905_v47 = vpop.f32.mrb[15].mxu1 }
 0x18a   : > { %v1992_v48 = vadd.f32 %v2744_v4, %v2363_v13  ;;  %v2000_v6 = vadd.f32 %v2770_v3, %v2363_v13  ;;  %v2752_v9 = vadd.f32 %v3484_v11, %v1873_v63  ;;  %v2776_v31 = vadd.f32 %v3489_v61, %v1905_v47 }
 0x18b   : > { %2010 = vst [vmem:[%s3499_s19 + $0x30] sm:$0xff] %v1994_v53  ;;  %2018 = vst [vmem:[%s3499_s19 + $0x70] sm:$0xff] %v2002_v50  ;;  %v1995_v16 = vadd.f32 %v2748_v38, %v2363_v13  ;;  %v2003_v12 = vadd.f32 %v2773_v45, %v2363_v13 }
 0x18c   : > { %2008 = vst [vmem:[%s3499_s19 + $0x20] sm:$0xff] %v1992_v48  ;;  %2016 = vst [vmem:[%s3499_s19 + $0x60] sm:$0xff] %v2000_v6  ;;  %v1993_v10 = vadd.f32 %v2752_v9, %v2363_v13  ;;  %v2001_v32 = vadd.f32 %v2776_v31, %v2363_v13 }
 0x18d   : > { %2011 = vst [vmem:[%s3499_s19 + $0x38] sm:$0xff] %v1995_v16  ;;  %2019 = vst [vmem:[%s3499_s19 + $0x78] sm:$0xff] %v2003_v12 }
 0x18e   : > { %2009 = vst [vmem:[%s3499_s19 + $0x28] sm:$0xff] %v1993_v10  ;;  %2017 = vst [vmem:[%s3499_s19 + $0x68] sm:$0xff] %v2001_v32 }
 0x18f PF: > { %s13_s16 = sadd.s32 1, %s3048_s16   ;;  %s3543_s12 = smov %s3040_s14 }
 0x190   : > { %p10_p7 = scmp.ge.s32.totalorder %s13_s16, 6   ;;  %s3544_s13 = smov %s3044_s15 }
 0x191   : > { %s3545_s14 = smov %s3548_s17  ;;  %s3546_s15 = smov %s3552_s18 }
 0x192   :  { %12 = sbr.rel (!%p10_p7) target bundleno = 3 (0x3), region = 67 }

</bundles_post_ra>
